<compile_context>
chip_gen: v7x
topology: tpu7x:2x2x1
jax: 0.10.0
libtpu: 0.0.40
codegen_flags: <defaults>
</compile_context>

<pallas_src>
import jax
import jax.numpy as jnp
from jax.experimental import pallas as pl
from jax.experimental.pallas import tpu as pltpu

BOARD_SIZE = 9
FILTERS = 64
BLOCKS = 6
IN_PLANES = 6
BN_EPS = 1e-5
NP_LANE = 2          # samples packed on the lane axis (block-diagonal weights); capped at 2


# ---------------------------------------------------------------------------
# Geometry helpers (shared by wrapper and kernel)
# ---------------------------------------------------------------------------
def _geometry(H, W):
    """Flat padded-board geometry.

    The (H+2)x(W+2) zero-padded board is flattened row-major onto the sublane
    axis.  `start` (flat index of board position (0,0)) is rounded up to a
    multiple of 16 so the per-layer bf16 activation store is sublane-aligned.
    Pb covers the largest shifted 3x3-tap read so every read stays in-bounds.
    """
    Wp = W + 2
    L = H * Wp
    start = ((Wp + 1 + 15) // 16) * 16
    Pb = ((start + Wp + 1 + L + 15) // 16) * 16
    return Wp, L, start, Pb


def _tap_offsets(Wp):
    # tap t = ky*3 + kx  ->  flat offset relative to the output position
    return [(dy - 1) * Wp + (dx - 1) for dy in range(3) for dx in range(3)]


# ---------------------------------------------------------------------------
# The fused Pallas kernel: one grid step = one residual block
# (stem gated at blk==0, heads gated at blk==last); batch groups on axis 0.
# ---------------------------------------------------------------------------
def _make_fused_kernel(NP, H, W, num_blocks):
    Wp, L, start, Pb = _geometry(H, W)
    F = FILTERS
    NPF = NP * F
    offsets = _tap_offsets(Wp)

    def kernel(xcol_ref, wstem_ref, stem_b_ref,
               wblk_ref, blk_b_ref, mask_ref,
               head_wc_ref, head_bi_ref,
               pol_w0_ref, pol_w1_ref, pol_bl_ref,
               val_w1_ref, val_b1_ref, val_w2_ref, val_b2_ref,
               pol_out_ref, val_out_ref,
               act_a, act_b):
        blk = pl.program_id(1)
        mask = mask_ref[...]                                  # (L, NPF) f32, pre-broadcast

        # ---- stem: conv3x3 + (folded)BN + ReLU; zero the scratch once per group ----
        @pl.when(blk == 0)
        def _stem():
            act_a[...] = jnp.zeros_like(act_a)
            act_b[...] = jnp.zeros_like(act_b)
            y = jnp.dot(xcol_ref[...], wstem_ref[...],
                        preferred_element_type=jnp.float32)
            y = jnp.maximum(y + stem_b_ref[...], 0.0) * mask
            act_a[pl.ds(start, L), :] = y.astype(act_a.dtype)

        # ---- one residual block per grid step (per-tap accumulated matmuls) --------
        def conv3x3(src_ref, conv_idx):
            acc = jnp.dot(src_ref[pl.ds(start + offsets[0], L), :],
                          wblk_ref[conv_idx, 0],
                          preferred_element_type=jnp.float32)
            for t in range(1, 9):
                acc = acc + jnp.dot(src_ref[pl.ds(start + offsets[t], L), :],
                                    wblk_ref[conv_idx, t],
                                    preferred_element_type=jnp.float32)
            return acc

        y = conv3x3(act_a, 0)
        y = jnp.maximum(y + blk_b_ref[pl.ds(0, 1), :], 0.0) * mask
        act_b[pl.ds(start, L), :] = y.astype(act_b.dtype)

        y = conv3x3(act_b, 1)
        res = act_a[pl.ds(start, L), :].astype(jnp.float32)   # residual (pre-ReLU add)
        y = jnp.maximum(y + blk_b_ref[pl.ds(1, 1), :] + res, 0.0) * mask
        act_a[pl.ds(start, L), :] = y.astype(act_a.dtype)

        # ---- heads (last grid step of the group): no gathers, all weight-folded ----
        @pl.when(blk == num_blocks - 1)
        def _heads():
            a = act_a[pl.ds(start, L), :]                     # (L, NPF) bf16, one aligned slice
            hc = jnp.dot(a, head_wc_ref[...],
                         preferred_element_type=jnp.float32)  # (L, 3*NP), cols = c*NP + n
            hc = jnp.maximum(hc + head_bi_ref[...], 0.0).astype(jnp.bfloat16)

            # policy: two accumulated matmuls over contiguous lane slices of hc
            pol_t = (jnp.dot(pol_w0_ref[...], hc[:, 0:NP],
                             preferred_element_type=jnp.float32)
                     + jnp.dot(pol_w1_ref[...], hc[:, NP:2 * NP],
                               preferred_element_type=jnp.float32)
                     + pol_bl_ref[...])                       # (BB+1, NP)

            v1 = jnp.maximum(
                jnp.dot(val_w1_ref[...], hc[:, 2 * NP:3 * NP],
                        preferred_element_type=jnp.float32) + val_b1_ref[...], 0.0)
            val_t = jnp.dot(val_w2_ref[...], v1.astype(jnp.bfloat16),
                            preferred_element_type=jnp.float32) + val_b2_ref[...]

            pol_out_ref[...] = pol_t                          # (BB+1, NP)
            val_out_ref[...] = val_t                          # (3, NP)

    return kernel


# ---------------------------------------------------------------------------
# Parameter construction (PyTorch conventions) + conversion to kernel layout
# ---------------------------------------------------------------------------
def init_params(key, board_size=BOARD_SIZE):
    keys = iter(jax.random.split(key, 128))
    BB = board_size ** 2

    def conv_w(cout, cin, k):
        fan_in = cin * k * k
        return jax.random.normal(next(keys), (cout, cin, k, k), jnp.float32) * jnp.sqrt(2.0 / fan_in)

    def bn_p(c):
        return dict(
            gamma=1.0 + 0.1 * jax.random.normal(next(keys), (c,), jnp.float32),
            beta=0.1 * jax.random.normal(next(keys), (c,), jnp.float32),
            mean=0.1 * jax.random.normal(next(keys), (c,), jnp.float32),
            var=1.0 + 0.1 * jnp.abs(jax.random.normal(next(keys), (c,), jnp.float32)),
        )

    def linear(cout, cin):
        w = jax.random.normal(next(keys), (cout, cin), jnp.float32) * jnp.sqrt(1.0 / cin)
        b = 0.1 * jax.random.normal(next(keys), (cout,), jnp.float32)
        return w, b

    params = dict(
        stem=dict(w=conv_w(FILTERS, IN_PLANES, 3), bn=bn_p(FILTERS)),
        blocks=[dict(w1=conv_w(FILTERS, FILTERS, 3), bn1=bn_p(FILTERS),
                     w2=conv_w(FILTERS, FILTERS, 3), bn2=bn_p(FILTERS))
                for _ in range(BLOCKS)],
    )
    pw, pb = linear(BB + 1, 2 * BB)
    params['policy'] = dict(wc=conv_w(2, FILTERS, 1), bn=bn_p(2), wl=pw, bl=pb)
    vw1, vb1 = linear(FILTERS, BB)
    vw2, vb2 = linear(3, FILTERS)
    params['value'] = dict(wc=conv_w(1, FILTERS, 1), bn=bn_p(1),
                           w1=vw1, b1=vb1, w2=vw2, b2=vb2)
    return params


def _fold_bn(bn):
    scale = bn['gamma'] / jnp.sqrt(bn['var'] + BN_EPS)
    bias = bn['beta'] - bn['mean'] * scale
    return scale, bias


def to_kernel_params(p):
    """Per-tap conv weights with the eval-mode BN scale folded in; biases kept separate."""
    def conv_taps(w, scale):   # OIHW (Co,Ci,3,3) -> (9, Ci, Co), BN scale folded into Co
        co, ci = w.shape[0], w.shape[1]
        return jnp.transpose(w, (2, 3, 1, 0)).reshape(9, ci, co) * scale[None, None, :]

    kp = {}
    s, b = _fold_bn(p['stem']['bn'])
    kp['stem_w'] = conv_taps(p['stem']['w'], s)               # (9, Cin, F)
    kp['stem_b'] = b                                          # (F,)

    blk_w, blk_b = [], []
    for blk in p['blocks']:
        s1, b1 = _fold_bn(blk['bn1'])
        s2, b2 = _fold_bn(blk['bn2'])
        blk_w.append(jnp.stack([conv_taps(blk['w1'], s1), conv_taps(blk['w2'], s2)]))
        blk_b.append(jnp.stack([b1, b2]))
    kp['blk_w'] = jnp.stack(blk_w)                            # (BLOCKS, 2, 9, F, F)
    kp['blk_b'] = jnp.stack(blk_b)                            # (BLOCKS, 2, F)

    ps, pbb = _fold_bn(p['policy']['bn'])                     # (2,)
    vs, vbb = _fold_bn(p['value']['bn'])                      # (1,)
    wc = jnp.concatenate([p['policy']['wc'][:, :, 0, 0].T,
                          p['value']['wc'][:, :, 0, 0].T], axis=1)     # (F, 3)
    kp['head_wc'] = wc * jnp.concatenate([ps, vs])[None, :]   # BN scale folded, (F, 3)
    kp['head_b'] = jnp.concatenate([pbb, vbb])                # (3,)
    kp['pol_wl'] = p['policy']['wl']                          # (BB+1, 2*BB)
    kp['pol_bl'] = p['policy']['bl']                          # (BB+1,)
    kp['val_w1'] = p['value']['w1']                           # (F, BB)
    kp['val_b1'] = p['value']['b1']                           # (F,)
    kp['val_w2'] = p['value']['w2']                           # (3, F)
    kp['val_b2'] = p['value']['b2']                           # (3,)
    return kp


# ---------------------------------------------------------------------------
# Forward pass (wrapper = zero-FLOP layout glue; all compute in the kernel)
# ---------------------------------------------------------------------------
def dualnet_forward(x_nchw, kp):
    N, Cin, H, W = x_nchw.shape
    F = FILTERS
    nb = kp['blk_w'].shape[0]
    NP = min(NP_LANE, N)                       # lane-packed samples per group (<= 2)
    G = -(-N // NP)                            # batch groups -> "parallel" grid axis
    Ntot = G * NP
    Wp, L, start, Pb = _geometry(H, W)
    BB = H * W
    NPF = NP * F
    offsets = _tap_offsets(Wp)
    base = Wp + 1

    # --- input layout glue: NCHW -> per-group flat padded board (batch on lanes),
    #     input im2col (9 shifted zero-FLOP slices) done host-side.
    xpad = jnp.pad(x_nchw, ((0, Ntot - N), (0, 0), (0, 0), (0, 0)))
    xp = jnp.transpose(xpad, (0, 2, 3, 1))                            # (Ntot,H,W,Cin)
    xp = jnp.pad(xp, ((0, 0), (1, 1), (1, 1), (0, 0)))                # (Ntot,H+2,W+2,Cin)
    xp = xp.reshape(G, NP, H + 2, Wp, Cin)
    xp = jnp.transpose(xp, (0, 2, 3, 1, 4)).reshape(G, (H + 2) * Wp, NP * Cin)
    rows_needed = base + Wp + 1 + L
    xp = jnp.pad(xp, ((0, 0), (0, max(0, rows_needed - (H + 2) * Wp)), (0, 0)))
    x_col = jnp.concatenate([xp[:, base + off: base + off + L, :] for off in offsets],
                            axis=-1).astype(jnp.bfloat16)             # (G, L, 9*NP*Cin)

    # pad-column mask, pre-broadcast to the full lane width (no in-kernel broadcasts)
    cols = (jnp.arange(L) + 1) % Wp
    mask1 = ((cols >= 1) & (cols <= W)).astype(jnp.float32)
    mask = jnp.broadcast_to(mask1[:, None], (L, NPF))                  # (L, NPF)

    # --- batch-block-diagonal weight expansion (per tap), BN scale already folded.
    eye = jnp.eye(NP, dtype=jnp.float32)

    def expand_taps(wt):        # (9, Ci, Co) -> (9, NP*Ci, NP*Co) bf16
        nine, Ci, Co = wt.shape
        wb = jnp.einsum('tio,nm->tnimo', wt, eye)
        return wb.reshape(nine, NP * Ci, NP * Co).astype(jnp.bfloat16)

    wstem = expand_taps(kp['stem_w']).reshape(9 * NP * Cin, NPF)       # stem stays 1 matmul
    wblk = jax.vmap(jax.vmap(expand_taps))(kp['blk_w'])                # (nb,2,9,NPF,NPF)

    stem_b = jnp.tile(kp['stem_b'], NP)[None, :]                       # (1, NPF)
    blk_b = jnp.tile(kp['blk_b'], (1, 1, NP))                          # (nb, 2, NPF)

    # head 1x1 conv: column order c*NP + n so each channel is a contiguous lane slice
    head_wc = jnp.einsum('fc,nm->nfcm', kp['head_wc'], eye).reshape(NPF, 3 * NP)
    head_wc = head_wc.astype(jnp.bfloat16)
    head_bi = jnp.repeat(kp['head_b'], NP)[None, :]                    # (1, 3*NP)

    # fold the board-row selection into the head linear weights (zero cols at pad positions)
    valid_idx = (jnp.arange(H)[:, None] * Wp + jnp.arange(W)[None, :]).reshape(-1)

    def to_window(w):           # (out, BB) -> (out, L), zeros at pad positions
        return jnp.zeros((w.shape[0], L), w.dtype).at[:, valid_idx].set(w)

    pol_w0 = to_window(kp['pol_wl'][:, :BB]).astype(jnp.bfloat16)      # (BB+1, L)
    pol_w1 = to_window(kp['pol_wl'][:, BB:2 * BB]).astype(jnp.bfloat16)
    pol_bl = kp['pol_bl'][:, None]                                     # (BB+1, 1)
    val_w1 = to_window(kp['val_w1']).astype(jnp.bfloat16)              # (F, L)
    val_b1 = kp['val_b1'][:, None]                                     # (F, 1)
    val_w2 = kp['val_w2'].astype(jnp.bfloat16)                         # (3, F)
    val_b2 = kp['val_b2'][:, None]                                     # (3, 1)

    kernel = _make_fused_kernel(NP, H, W, nb)

    def const_spec(shape):
        return pl.BlockSpec(shape, lambda g, b, _s=shape: (0,) * len(_s))

    in_specs = [
        pl.BlockSpec((None, L, 9 * NP * Cin), lambda g, b: (g, 0, 0)),        # x_col (per group)
        const_spec((9 * NP * Cin, NPF)),                                      # wstem
        const_spec((1, NPF)),                                                 # stem bias
        pl.BlockSpec((None, 2, 9, NPF, NPF), lambda g, b: (b, 0, 0, 0, 0)),   # wblk (pipelined)
        pl.BlockSpec((None, 2, NPF), lambda g, b: (b, 0, 0)),                 # blk bias
        const_spec((L, NPF)),                                                 # mask
        const_spec((NPF, 3 * NP)),                                            # head_wc
        const_spec((1, 3 * NP)),                                              # head bias
        const_spec((BB + 1, L)),                                              # pol_w0
        const_spec((BB + 1, L)),                                              # pol_w1
        const_spec((BB + 1, 1)),                                              # pol_bl
        const_spec((F, L)),                                                   # val_w1
        const_spec((F, 1)),                                                   # val_b1
        const_spec((3, F)),                                                   # val_w2
        const_spec((3, 1)),                                                   # val_b2
    ]
    out_specs = (pl.BlockSpec((None, BB + 1, NP), lambda g, b: (g, 0, 0)),
                 pl.BlockSpec((None, 3, NP), lambda g, b: (g, 0, 0)))

    pol_t, val_t = pl.pallas_call(
        kernel,
        out_shape=(jax.ShapeDtypeStruct((G, BB + 1, NP), jnp.float32),
                   jax.ShapeDtypeStruct((G, 3, NP), jnp.float32)),
        grid=(G, nb),
        in_specs=in_specs,
        out_specs=out_specs,
        scratch_shapes=[pltpu.VMEM((Pb, NPF), jnp.bfloat16),
                        pltpu.VMEM((Pb, NPF), jnp.bfloat16)],
        compiler_params=pltpu.CompilerParams(
            dimension_semantics=("parallel", "arbitrary"),
            vmem_limit_bytes=16 * 1024 * 1024),
    )(x_col, wstem, stem_b, wblk, blk_b, mask,
      head_wc, head_bi, pol_w0, pol_w1, pol_bl,
      val_w1, val_b1, val_w2, val_b2)

    pol = jnp.transpose(pol_t, (0, 2, 1)).reshape(G * NP, BB + 1)[:N]
    val = jnp.transpose(val_t, (0, 2, 1)).reshape(G * NP, 3)[:N]
    return pol, val


# ---------------------------------------------------------------------------
# Pure-JAX reference (NCHW, mirrors the PyTorch forward exactly, f32)
# ---------------------------------------------------------------------------
def ref_forward(x, p):
    def conv(x, w, pad):
        return jax.lax.conv_general_dilated(
            x, w, (1, 1), [(pad, pad), (pad, pad)],
            dimension_numbers=('NCHW', 'OIHW', 'NCHW'),
            precision=jax.lax.Precision.HIGHEST)

    def bn(x, d):
        sh = (1, -1, 1, 1)
        return ((x - d['mean'].reshape(sh)) / jnp.sqrt(d['var'].reshape(sh) + BN_EPS)
                * d['gamma'].reshape(sh) + d['beta'].reshape(sh))

    relu = lambda z: jnp.maximum(z, 0.0)
    N = x.shape[0]

    h = relu(bn(conv(x, p['stem']['w'], 1), p['stem']['bn']))
    for blk in p['blocks']:
        t = relu(bn(conv(h, blk['w1'], 1), blk['bn1']))
        t = bn(conv(t, blk['w2'], 1), blk['bn2'])
        h = relu(t + h)

    hp = relu(bn(conv(h, p['policy']['wc'], 0), p['policy']['bn']))
    pol = hp.reshape(N, -1) @ p['policy']['wl'].T + p['policy']['bl']

    hv = relu(bn(conv(h, p['value']['wc'], 0), p['value']['bn']))
    v = relu(hv.reshape(N, -1) @ p['value']['w1'].T + p['value']['b1'])
    val = v @ p['value']['w2'].T + p['value']['b2']
    return pol, val


# ---------------------------------------------------------------------------
if __name__ == "__main__":
    key = jax.random.PRNGKey(0)
    kx, kparams = jax.random.split(key)

    batch = 2
    x = jax.random.normal(kx, (batch, IN_PLANES, BOARD_SIZE, BOARD_SIZE), jnp.float32)

    params = init_params(kparams, BOARD_SIZE)
    kp = to_kernel_params(params)

    pol, val = jax.jit(dualnet_forward)(x, kp)
    pol, val = jax.block_until_ready((pol, val))

    assert pol.shape == (batch, BOARD_SIZE ** 2 + 1), pol.shape
    assert val.shape == (batch, 3), val.shape

    ref_pol, ref_val = ref_forward(x, params)
    # Kernel uses bf16 weights/activations (f32 accumulation); allow a few percent.
    tol_p = 5e-2 * float(jnp.max(jnp.abs(ref_pol))) + 5e-3
    tol_v = 5e-2 * float(jnp.max(jnp.abs(ref_val))) + 5e-3
    err_p = float(jnp.max(jnp.abs(pol - ref_pol)))
    err_v = float(jnp.max(jnp.abs(val - ref_val)))
    assert err_p < tol_p and err_v < tol_v, (err_p, err_v, tol_p, tol_v)

    print("KERNEL_OK")
</pallas_src>

<mosaic_0001>
module attributes {stable_mosaic.version = 11 : i64} {
  func.func @kernel(%arg0: i32, %arg1: i32, %arg2: memref<1x99x108xbf16, #tpu.memory_space<vmem>>, %arg3: memref<108x128xbf16, #tpu.memory_space<vmem>>, %arg4: memref<1x128xf32, #tpu.memory_space<vmem>>, %arg5: memref<1x2x9x128x128xbf16, #tpu.memory_space<vmem>>, %arg6: memref<1x2x128xf32, #tpu.memory_space<vmem>>, %arg7: memref<99x128xf32, #tpu.memory_space<vmem>>, %arg8: memref<128x6xbf16, #tpu.memory_space<vmem>>, %arg9: memref<1x6xf32, #tpu.memory_space<vmem>>, %arg10: memref<82x99xbf16, #tpu.memory_space<vmem>>, %arg11: memref<82x99xbf16, #tpu.memory_space<vmem>>, %arg12: memref<82x1xf32, #tpu.memory_space<vmem>>, %arg13: memref<64x99xbf16, #tpu.memory_space<vmem>>, %arg14: memref<64x1xf32, #tpu.memory_space<vmem>>, %arg15: memref<3x64xbf16, #tpu.memory_space<vmem>>, %arg16: memref<3x1xf32, #tpu.memory_space<vmem>>, %arg17: memref<1x82x2xf32, #tpu.memory_space<vmem>>, %arg18: memref<1x3x2xf32, #tpu.memory_space<vmem>>, %arg19: memref<128x128xbf16, #tpu.memory_space<vmem>>, %arg20: memref<128x128xbf16, #tpu.memory_space<vmem>>) attributes {dimension_semantics = [#tpu.dimension_semantics<parallel>, #tpu.dimension_semantics<arbitrary>], iteration_bounds = array<i64: 1, 6>, scalar_prefetch = 0 : i64, scratch_operands = 2 : i64, tpu.core_type = #tpu.core_type<tc>, window_params = [{transform_indices = @transform_0, window_bounds = array<i64: 1, 99, 108>}, {pipeline_mode = #tpu.pipeline_mode<synchronous>, transform_indices = @transform_1, window_bounds = array<i64: 108, 128>}, {pipeline_mode = #tpu.pipeline_mode<synchronous>, transform_indices = @transform_2, window_bounds = array<i64: 1, 128>}, {transform_indices = @transform_3, window_bounds = array<i64: 1, 2, 9, 128, 128>}, {transform_indices = @transform_4, window_bounds = array<i64: 1, 2, 128>}, {pipeline_mode = #tpu.pipeline_mode<synchronous>, transform_indices = @transform_5, window_bounds = array<i64: 99, 128>}, {pipeline_mode = #tpu.pipeline_mode<synchronous>, transform_indices = @transform_6, window_bounds = array<i64: 128, 6>}, {pipeline_mode = #tpu.pipeline_mode<synchronous>, transform_indices = @transform_7, window_bounds = array<i64: 1, 6>}, {pipeline_mode = #tpu.pipeline_mode<synchronous>, transform_indices = @transform_8, window_bounds = array<i64: 82, 99>}, {pipeline_mode = #tpu.pipeline_mode<synchronous>, transform_indices = @transform_9, window_bounds = array<i64: 82, 99>}, {pipeline_mode = #tpu.pipeline_mode<synchronous>, transform_indices = @transform_10, window_bounds = array<i64: 82, 1>}, {pipeline_mode = #tpu.pipeline_mode<synchronous>, transform_indices = @transform_11, window_bounds = array<i64: 64, 99>}, {pipeline_mode = #tpu.pipeline_mode<synchronous>, transform_indices = @transform_12, window_bounds = array<i64: 64, 1>}, {pipeline_mode = #tpu.pipeline_mode<synchronous>, transform_indices = @transform_13, window_bounds = array<i64: 3, 64>}, {pipeline_mode = #tpu.pipeline_mode<synchronous>, transform_indices = @transform_14, window_bounds = array<i64: 3, 1>}, {transform_indices = @transform_15, window_bounds = array<i64: 1, 82, 2>}, {transform_indices = @transform_16, window_bounds = array<i64: 1, 3, 2>}]} {
    %c0 = arith.constant 0 : index
    %c0_0 = arith.constant 0 : index
    %0 = vector.load %arg7[%c0, %c0_0] : memref<99x128xf32, #tpu.memory_space<vmem>>, vector<99x128xf32>
    %c0_i32 = arith.constant 0 : i32
    %1 = arith.cmpi eq, %arg1, %c0_i32 : i32
    %2 = arith.extui %1 : i1 to i32
    %c0_i32_1 = arith.constant 0 : i32
    %3 = arith.cmpi ne, %2, %c0_i32_1 : i32
    scf.if %3 {
      %cst_146 = arith.constant 0.000000e+00 : bf16
      %116 = vector.broadcast %cst_146 : bf16 to vector<128x128xbf16>
      %c0_147 = arith.constant 0 : index
      %c0_148 = arith.constant 0 : index
      %117 = vector.load %arg19[%c0_147, %c0_148] : memref<128x128xbf16, #tpu.memory_space<vmem>>, vector<128x128xbf16>
      tpu.vector_store %arg19[%c0_147, %c0_148], %116 {strides = array<i32>} : memref<128x128xbf16, #tpu.memory_space<vmem>>, vector<128x128xbf16>,
      %cst_149 = arith.constant 0.000000e+00 : bf16
      %118 = vector.broadcast %cst_149 : bf16 to vector<128x128xbf16>
      %c0_150 = arith.constant 0 : index
      %c0_151 = arith.constant 0 : index
      %119 = vector.load %arg20[%c0_150, %c0_151] : memref<128x128xbf16, #tpu.memory_space<vmem>>, vector<128x128xbf16>
      tpu.vector_store %arg20[%c0_150, %c0_151], %118 {strides = array<i32>} : memref<128x128xbf16, #tpu.memory_space<vmem>>, vector<128x128xbf16>,
      %c0_152 = arith.constant 0 : index
      %c0_153 = arith.constant 0 : index
      %c0_154 = arith.constant 0 : index
      %120 = vector.load %arg2[%c0_152, %c0_153, %c0_154] : memref<1x99x108xbf16, #tpu.memory_space<vmem>>, vector<1x99x108xbf16>
      %121 = vector.shape_cast %120 : vector<1x99x108xbf16> to vector<99x108xbf16>
      %c0_155 = arith.constant 0 : index
      %c0_156 = arith.constant 0 : index
      %122 = vector.load %arg3[%c0_155, %c0_156] : memref<108x128xbf16, #tpu.memory_space<vmem>>, vector<108x128xbf16>
      %cst_157 = arith.constant dense<0.000000e+00> : vector<99x128xf32>
      %123 = tpu.matmul %121, %122, %cst_157 {dimension_numbers = #tpu.dot_dimension_numbers<[1], [0], [0], [1], [0, 0, 1, 1], [], []>} : vector<99x108xbf16>, vector<108x128xbf16>, vector<99x128xf32> -> vector<99x128xf32>
      %c0_158 = arith.constant 0 : index
      %c0_159 = arith.constant 0 : index
      %124 = vector.load %arg4[%c0_158, %c0_159] : memref<1x128xf32, #tpu.memory_space<vmem>>, vector<1x128xf32>
      %125 = vector.broadcast %124 : vector<1x128xf32> to vector<99x128xf32>
      %126 = arith.addf %123, %125 : vector<99x128xf32>
      %cst_160 = arith.constant 0.000000e+00 : f32
      %127 = vector.broadcast %cst_160 : f32 to vector<99x128xf32>
      %128 = arith.maximumf %126, %127 : vector<99x128xf32>
      %129 = arith.mulf %128, %0 : vector<99x128xf32>
      %130 = arith.truncf %129 : vector<99x128xf32> to vector<99x128xbf16>
      %c16_161 = arith.constant 16 : index
      %c0_162 = arith.constant 0 : index
      %131 = vector.load %arg19[%c16_161, %c0_162] : memref<128x128xbf16, #tpu.memory_space<vmem>>, vector<99x128xbf16>
      tpu.vector_store %arg19[%c16_161, %c0_162], %130 {strides = array<i32>} : memref<128x128xbf16, #tpu.memory_space<vmem>>, vector<99x128xbf16>,
    } else {
    }
    %c4 = arith.constant 4 : index
    %c0_2 = arith.constant 0 : index
    %4 = vector.load %arg19[%c4, %c0_2] : memref<128x128xbf16, #tpu.memory_space<vmem>>, vector<99x128xbf16>
    %c0_3 = arith.constant 0 : index
    %c0_4 = arith.constant 0 : index
    %c0_5 = arith.constant 0 : index
    %c0_6 = arith.constant 0 : index
    %c0_7 = arith.constant 0 : index
    %5 = vector.load %arg5[%c0_3, %c0_4, %c0_5, %c0_6, %c0_7] : memref<1x2x9x128x128xbf16, #tpu.memory_space<vmem>>, vector<1x1x1x128x128xbf16>
    %6 = vector.shape_cast %5 : vector<1x1x1x128x128xbf16> to vector<128x128xbf16>
    %cst = arith.constant dense<0.000000e+00> : vector<99x128xf32>
    %7 = tpu.matmul %4, %6, %cst {dimension_numbers = #tpu.dot_dimension_numbers<[1], [0], [0], [1], [0, 0, 1, 1], [], []>} : vector<99x128xbf16>, vector<128x128xbf16>, vector<99x128xf32> -> vector<99x128xf32>
    %c5 = arith.constant 5 : index
    %c0_8 = arith.constant 0 : index
    %8 = vector.load %arg19[%c5, %c0_8] : memref<128x128xbf16, #tpu.memory_space<vmem>>, vector<99x128xbf16>
    %c0_9 = arith.constant 0 : index
    %c0_10 = arith.constant 0 : index
    %c1 = arith.constant 1 : index
    %c0_11 = arith.constant 0 : index
    %c0_12 = arith.constant 0 : index
    %9 = vector.load %arg5[%c0_9, %c0_10, %c1, %c0_11, %c0_12] : memref<1x2x9x128x128xbf16, #tpu.memory_space<vmem>>, vector<1x1x1x128x128xbf16>
    %10 = vector.shape_cast %9 : vector<1x1x1x128x128xbf16> to vector<128x128xbf16>
    %cst_13 = arith.constant dense<0.000000e+00> : vector<99x128xf32>
    %11 = tpu.matmul %8, %10, %cst_13 {dimension_numbers = #tpu.dot_dimension_numbers<[1], [0], [0], [1], [0, 0, 1, 1], [], []>} : vector<99x128xbf16>, vector<128x128xbf16>, vector<99x128xf32> -> vector<99x128xf32>
    %12 = arith.addf %7, %11 : vector<99x128xf32>
    %c6 = arith.constant 6 : index
    %c0_14 = arith.constant 0 : index
    %13 = vector.load %arg19[%c6, %c0_14] : memref<128x128xbf16, #tpu.memory_space<vmem>>, vector<99x128xbf16>
    %c0_15 = arith.constant 0 : index
    %c0_16 = arith.constant 0 : index
    %c2 = arith.constant 2 : index
    %c0_17 = arith.constant 0 : index
    %c0_18 = arith.constant 0 : index
    %14 = vector.load %arg5[%c0_15, %c0_16, %c2, %c0_17, %c0_18] : memref<1x2x9x128x128xbf16, #tpu.memory_space<vmem>>, vector<1x1x1x128x128xbf16>
    %15 = vector.shape_cast %14 : vector<1x1x1x128x128xbf16> to vector<128x128xbf16>
    %cst_19 = arith.constant dense<0.000000e+00> : vector<99x128xf32>
    %16 = tpu.matmul %13, %15, %cst_19 {dimension_numbers = #tpu.dot_dimension_numbers<[1], [0], [0], [1], [0, 0, 1, 1], [], []>} : vector<99x128xbf16>, vector<128x128xbf16>, vector<99x128xf32> -> vector<99x128xf32>
    %17 = arith.addf %12, %16 : vector<99x128xf32>
    %c15 = arith.constant 15 : index
    %c0_20 = arith.constant 0 : index
    %18 = vector.load %arg19[%c15, %c0_20] : memref<128x128xbf16, #tpu.memory_space<vmem>>, vector<99x128xbf16>
    %c0_21 = arith.constant 0 : index
    %c0_22 = arith.constant 0 : index
    %c3 = arith.constant 3 : index
    %c0_23 = arith.constant 0 : index
    %c0_24 = arith.constant 0 : index
    %19 = vector.load %arg5[%c0_21, %c0_22, %c3, %c0_23, %c0_24] : memref<1x2x9x128x128xbf16, #tpu.memory_space<vmem>>, vector<1x1x1x128x128xbf16>
    %20 = vector.shape_cast %19 : vector<1x1x1x128x128xbf16> to vector<128x128xbf16>
    %cst_25 = arith.constant dense<0.000000e+00> : vector<99x128xf32>
    %21 = tpu.matmul %18, %20, %cst_25 {dimension_numbers = #tpu.dot_dimension_numbers<[1], [0], [0], [1], [0, 0, 1, 1], [], []>} : vector<99x128xbf16>, vector<128x128xbf16>, vector<99x128xf32> -> vector<99x128xf32>
    %22 = arith.addf %17, %21 : vector<99x128xf32>
    %c16 = arith.constant 16 : index
    %c0_26 = arith.constant 0 : index
    %23 = vector.load %arg19[%c16, %c0_26] : memref<128x128xbf16, #tpu.memory_space<vmem>>, vector<99x128xbf16>
    %c0_27 = arith.constant 0 : index
    %c0_28 = arith.constant 0 : index
    %c4_29 = arith.constant 4 : index
    %c0_30 = arith.constant 0 : index
    %c0_31 = arith.constant 0 : index
    %24 = vector.load %arg5[%c0_27, %c0_28, %c4_29, %c0_30, %c0_31] : memref<1x2x9x128x128xbf16, #tpu.memory_space<vmem>>, vector<1x1x1x128x128xbf16>
    %25 = vector.shape_cast %24 : vector<1x1x1x128x128xbf16> to vector<128x128xbf16>
    %cst_32 = arith.constant dense<0.000000e+00> : vector<99x128xf32>
    %26 = tpu.matmul %23, %25, %cst_32 {dimension_numbers = #tpu.dot_dimension_numbers<[1], [0], [0], [1], [0, 0, 1, 1], [], []>} : vector<99x128xbf16>, vector<128x128xbf16>, vector<99x128xf32> -> vector<99x128xf32>
    %27 = arith.addf %22, %26 : vector<99x128xf32>
    %c17 = arith.constant 17 : index
    %c0_33 = arith.constant 0 : index
    %28 = vector.load %arg19[%c17, %c0_33] : memref<128x128xbf16, #tpu.memory_space<vmem>>, vector<99x128xbf16>
    %c0_34 = arith.constant 0 : index
    %c0_35 = arith.constant 0 : index
    %c5_36 = arith.constant 5 : index
    %c0_37 = arith.constant 0 : index
    %c0_38 = arith.constant 0 : index
    %29 = vector.load %arg5[%c0_34, %c0_35, %c5_36, %c0_37, %c0_38] : memref<1x2x9x128x128xbf16, #tpu.memory_space<vmem>>, vector<1x1x1x128x128xbf16>
    %30 = vector.shape_cast %29 : vector<1x1x1x128x128xbf16> to vector<128x128xbf16>
    %cst_39 = arith.constant dense<0.000000e+00> : vector<99x128xf32>
    %31 = tpu.matmul %28, %30, %cst_39 {dimension_numbers = #tpu.dot_dimension_numbers<[1], [0], [0], [1], [0, 0, 1, 1], [], []>} : vector<99x128xbf16>, vector<128x128xbf16>, vector<99x128xf32> -> vector<99x128xf32>
    %32 = arith.addf %27, %31 : vector<99x128xf32>
    %c26 = arith.constant 26 : index
    %c0_40 = arith.constant 0 : index
    %33 = vector.load %arg19[%c26, %c0_40] : memref<128x128xbf16, #tpu.memory_space<vmem>>, vector<99x128xbf16>
    %c0_41 = arith.constant 0 : index
    %c0_42 = arith.constant 0 : index
    %c6_43 = arith.constant 6 : index
    %c0_44 = arith.constant 0 : index
    %c0_45 = arith.constant 0 : index
    %34 = vector.load %arg5[%c0_41, %c0_42, %c6_43, %c0_44, %c0_45] : memref<1x2x9x128x128xbf16, #tpu.memory_space<vmem>>, vector<1x1x1x128x128xbf16>
    %35 = vector.shape_cast %34 : vector<1x1x1x128x128xbf16> to vector<128x128xbf16>
    %cst_46 = arith.constant dense<0.000000e+00> : vector<99x128xf32>
    %36 = tpu.matmul %33, %35, %cst_46 {dimension_numbers = #tpu.dot_dimension_numbers<[1], [0], [0], [1], [0, 0, 1, 1], [], []>} : vector<99x128xbf16>, vector<128x128xbf16>, vector<99x128xf32> -> vector<99x128xf32>
    %37 = arith.addf %32, %36 : vector<99x128xf32>
    %c27 = arith.constant 27 : index
    %c0_47 = arith.constant 0 : index
    %38 = vector.load %arg19[%c27, %c0_47] : memref<128x128xbf16, #tpu.memory_space<vmem>>, vector<99x128xbf16>
    %c0_48 = arith.constant 0 : index
    %c0_49 = arith.constant 0 : index
    %c7 = arith.constant 7 : index
    %c0_50 = arith.constant 0 : index
    %c0_51 = arith.constant 0 : index
    %39 = vector.load %arg5[%c0_48, %c0_49, %c7, %c0_50, %c0_51] : memref<1x2x9x128x128xbf16, #tpu.memory_space<vmem>>, vector<1x1x1x128x128xbf16>
    %40 = vector.shape_cast %39 : vector<1x1x1x128x128xbf16> to vector<128x128xbf16>
    %cst_52 = arith.constant dense<0.000000e+00> : vector<99x128xf32>
    %41 = tpu.matmul %38, %40, %cst_52 {dimension_numbers = #tpu.dot_dimension_numbers<[1], [0], [0], [1], [0, 0, 1, 1], [], []>} : vector<99x128xbf16>, vector<128x128xbf16>, vector<99x128xf32> -> vector<99x128xf32>
    %42 = arith.addf %37, %41 : vector<99x128xf32>
    %c28 = arith.constant 28 : index
    %c0_53 = arith.constant 0 : index
    %43 = vector.load %arg19[%c28, %c0_53] : memref<128x128xbf16, #tpu.memory_space<vmem>>, vector<99x128xbf16>
    %c0_54 = arith.constant 0 : index
    %c0_55 = arith.constant 0 : index
    %c8 = arith.constant 8 : index
    %c0_56 = arith.constant 0 : index
    %c0_57 = arith.constant 0 : index
    %44 = vector.load %arg5[%c0_54, %c0_55, %c8, %c0_56, %c0_57] : memref<1x2x9x128x128xbf16, #tpu.memory_space<vmem>>, vector<1x1x1x128x128xbf16>
    %45 = vector.shape_cast %44 : vector<1x1x1x128x128xbf16> to vector<128x128xbf16>
    %cst_58 = arith.constant dense<0.000000e+00> : vector<99x128xf32>
    %46 = tpu.matmul %43, %45, %cst_58 {dimension_numbers = #tpu.dot_dimension_numbers<[1], [0], [0], [1], [0, 0, 1, 1], [], []>} : vector<99x128xbf16>, vector<128x128xbf16>, vector<99x128xf32> -> vector<99x128xf32>
    %47 = arith.addf %42, %46 : vector<99x128xf32>
    %c0_59 = arith.constant 0 : index
    %c0_60 = arith.constant 0 : index
    %c0_61 = arith.constant 0 : index
    %48 = vector.load %arg6[%c0_59, %c0_60, %c0_61] : memref<1x2x128xf32, #tpu.memory_space<vmem>>, vector<1x1x128xf32>
    %49 = vector.shape_cast %48 : vector<1x1x128xf32> to vector<1x128xf32>
    %50 = vector.broadcast %49 : vector<1x128xf32> to vector<99x128xf32>
    %51 = arith.addf %47, %50 : vector<99x128xf32>
    %cst_62 = arith.constant 0.000000e+00 : f32
    %52 = vector.broadcast %cst_62 : f32 to vector<99x128xf32>
    %53 = arith.maximumf %51, %52 : vector<99x128xf32>
    %54 = arith.mulf %53, %0 : vector<99x128xf32>
    %55 = arith.truncf %54 : vector<99x128xf32> to vector<99x128xbf16>
    %c16_63 = arith.constant 16 : index
    %c0_64 = arith.constant 0 : index
    %56 = vector.load %arg20[%c16_63, %c0_64] : memref<128x128xbf16, #tpu.memory_space<vmem>>, vector<99x128xbf16>
    tpu.vector_store %arg20[%c16_63, %c0_64], %55 {strides = array<i32>} : memref<128x128xbf16, #tpu.memory_space<vmem>>, vector<99x128xbf16>,
    %c4_65 = arith.constant 4 : index
    %c0_66 = arith.constant 0 : index
    %57 = vector.load %arg20[%c4_65, %c0_66] : memref<128x128xbf16, #tpu.memory_space<vmem>>, vector<99x128xbf16>
    %c0_67 = arith.constant 0 : index
    %c1_68 = arith.constant 1 : index
    %c0_69 = arith.constant 0 : index
    %c0_70 = arith.constant 0 : index
    %c0_71 = arith.constant 0 : index
    %58 = vector.load %arg5[%c0_67, %c1_68, %c0_69, %c0_70, %c0_71] : memref<1x2x9x128x128xbf16, #tpu.memory_space<vmem>>, vector<1x1x1x128x128xbf16>
    %59 = vector.shape_cast %58 : vector<1x1x1x128x128xbf16> to vector<128x128xbf16>
    %cst_72 = arith.constant dense<0.000000e+00> : vector<99x128xf32>
    %60 = tpu.matmul %57, %59, %cst_72 {dimension_numbers = #tpu.dot_dimension_numbers<[1], [0], [0], [1], [0, 0, 1, 1], [], []>} : vector<99x128xbf16>, vector<128x128xbf16>, vector<99x128xf32> -> vector<99x128xf32>
    %c5_73 = arith.constant 5 : index
    %c0_74 = arith.constant 0 : index
    %61 = vector.load %arg20[%c5_73, %c0_74] : memref<128x128xbf16, #tpu.memory_space<vmem>>, vector<99x128xbf16>
    %c0_75 = arith.constant 0 : index
    %c1_76 = arith.constant 1 : index
    %c1_77 = arith.constant 1 : index
    %c0_78 = arith.constant 0 : index
    %c0_79 = arith.constant 0 : index
    %62 = vector.load %arg5[%c0_75, %c1_76, %c1_77, %c0_78, %c0_79] : memref<1x2x9x128x128xbf16, #tpu.memory_space<vmem>>, vector<1x1x1x128x128xbf16>
    %63 = vector.shape_cast %62 : vector<1x1x1x128x128xbf16> to vector<128x128xbf16>
    %cst_80 = arith.constant dense<0.000000e+00> : vector<99x128xf32>
    %64 = tpu.matmul %61, %63, %cst_80 {dimension_numbers = #tpu.dot_dimension_numbers<[1], [0], [0], [1], [0, 0, 1, 1], [], []>} : vector<99x128xbf16>, vector<128x128xbf16>, vector<99x128xf32> -> vector<99x128xf32>
    %65 = arith.addf %60, %64 : vector<99x128xf32>
    %c6_81 = arith.constant 6 : index
    %c0_82 = arith.constant 0 : index
    %66 = vector.load %arg20[%c6_81, %c0_82] : memref<128x128xbf16, #tpu.memory_space<vmem>>, vector<99x128xbf16>
    %c0_83 = arith.constant 0 : index
    %c1_84 = arith.constant 1 : index
    %c2_85 = arith.constant 2 : index
    %c0_86 = arith.constant 0 : index
    %c0_87 = arith.constant 0 : index
    %67 = vector.load %arg5[%c0_83, %c1_84, %c2_85, %c0_86, %c0_87] : memref<1x2x9x128x128xbf16, #tpu.memory_space<vmem>>, vector<1x1x1x128x128xbf16>
    %68 = vector.shape_cast %67 : vector<1x1x1x128x128xbf16> to vector<128x128xbf16>
    %cst_88 = arith.constant dense<0.000000e+00> : vector<99x128xf32>
    %69 = tpu.matmul %66, %68, %cst_88 {dimension_numbers = #tpu.dot_dimension_numbers<[1], [0], [0], [1], [0, 0, 1, 1], [], []>} : vector<99x128xbf16>, vector<128x128xbf16>, vector<99x128xf32> -> vector<99x128xf32>
    %70 = arith.addf %65, %69 : vector<99x128xf32>
    %c15_89 = arith.constant 15 : index
    %c0_90 = arith.constant 0 : index
    %71 = vector.load %arg20[%c15_89, %c0_90] : memref<128x128xbf16, #tpu.memory_space<vmem>>, vector<99x128xbf16>
    %c0_91 = arith.constant 0 : index
    %c1_92 = arith.constant 1 : index
    %c3_93 = arith.constant 3 : index
    %c0_94 = arith.constant 0 : index
    %c0_95 = arith.constant 0 : index
    %72 = vector.load %arg5[%c0_91, %c1_92, %c3_93, %c0_94, %c0_95] : memref<1x2x9x128x128xbf16, #tpu.memory_space<vmem>>, vector<1x1x1x128x128xbf16>
    %73 = vector.shape_cast %72 : vector<1x1x1x128x128xbf16> to vector<128x128xbf16>
    %cst_96 = arith.constant dense<0.000000e+00> : vector<99x128xf32>
    %74 = tpu.matmul %71, %73, %cst_96 {dimension_numbers = #tpu.dot_dimension_numbers<[1], [0], [0], [1], [0, 0, 1, 1], [], []>} : vector<99x128xbf16>, vector<128x128xbf16>, vector<99x128xf32> -> vector<99x128xf32>
    %75 = arith.addf %70, %74 : vector<99x128xf32>
    %c16_97 = arith.constant 16 : index
    %c0_98 = arith.constant 0 : index
    %76 = vector.load %arg20[%c16_97, %c0_98] : memref<128x128xbf16, #tpu.memory_space<vmem>>, vector<99x128xbf16>
    %c0_99 = arith.constant 0 : index
    %c1_100 = arith.constant 1 : index
    %c4_101 = arith.constant 4 : index
    %c0_102 = arith.constant 0 : index
    %c0_103 = arith.constant 0 : index
    %77 = vector.load %arg5[%c0_99, %c1_100, %c4_101, %c0_102, %c0_103] : memref<1x2x9x128x128xbf16, #tpu.memory_space<vmem>>, vector<1x1x1x128x128xbf16>
    %78 = vector.shape_cast %77 : vector<1x1x1x128x128xbf16> to vector<128x128xbf16>
    %cst_104 = arith.constant dense<0.000000e+00> : vector<99x128xf32>
    %79 = tpu.matmul %76, %78, %cst_104 {dimension_numbers = #tpu.dot_dimension_numbers<[1], [0], [0], [1], [0, 0, 1, 1], [], []>} : vector<99x128xbf16>, vector<128x128xbf16>, vector<99x128xf32> -> vector<99x128xf32>
    %80 = arith.addf %75, %79 : vector<99x128xf32>
    %c17_105 = arith.constant 17 : index
    %c0_106 = arith.constant 0 : index
    %81 = vector.load %arg20[%c17_105, %c0_106] : memref<128x128xbf16, #tpu.memory_space<vmem>>, vector<99x128xbf16>
    %c0_107 = arith.constant 0 : index
    %c1_108 = arith.constant 1 : index
    %c5_109 = arith.constant 5 : index
    %c0_110 = arith.constant 0 : index
    %c0_111 = arith.constant 0 : index
    %82 = vector.load %arg5[%c0_107, %c1_108, %c5_109, %c0_110, %c0_111] : memref<1x2x9x128x128xbf16, #tpu.memory_space<vmem>>, vector<1x1x1x128x128xbf16>
    %83 = vector.shape_cast %82 : vector<1x1x1x128x128xbf16> to vector<128x128xbf16>
    %cst_112 = arith.constant dense<0.000000e+00> : vector<99x128xf32>
    %84 = tpu.matmul %81, %83, %cst_112 {dimension_numbers = #tpu.dot_dimension_numbers<[1], [0], [0], [1], [0, 0, 1, 1], [], []>} : vector<99x128xbf16>, vector<128x128xbf16>, vector<99x128xf32> -> vector<99x128xf32>
    %85 = arith.addf %80, %84 : vector<99x128xf32>
    %c26_113 = arith.constant 26 : index
    %c0_114 = arith.constant 0 : index
    %86 = vector.load %arg20[%c26_113, %c0_114] : memref<128x128xbf16, #tpu.memory_space<vmem>>, vector<99x128xbf16>
    %c0_115 = arith.constant 0 : index
    %c1_116 = arith.constant 1 : index
    %c6_117 = arith.constant 6 : index
    %c0_118 = arith.constant 0 : index
    %c0_119 = arith.constant 0 : index
    %87 = vector.load %arg5[%c0_115, %c1_116, %c6_117, %c0_118, %c0_119] : memref<1x2x9x128x128xbf16, #tpu.memory_space<vmem>>, vector<1x1x1x128x128xbf16>
    %88 = vector.shape_cast %87 : vector<1x1x1x128x128xbf16> to vector<128x128xbf16>
    %cst_120 = arith.constant dense<0.000000e+00> : vector<99x128xf32>
    %89 = tpu.matmul %86, %88, %cst_120 {dimension_numbers = #tpu.dot_dimension_numbers<[1], [0], [0], [1], [0, 0, 1, 1], [], []>} : vector<99x128xbf16>, vector<128x128xbf16>, vector<99x128xf32> -> vector<99x128xf32>
    %90 = arith.addf %85, %89 : vector<99x128xf32>
    %c27_121 = arith.constant 27 : index
    %c0_122 = arith.constant 0 : index
    %91 = vector.load %arg20[%c27_121, %c0_122] : memref<128x128xbf16, #tpu.memory_space<vmem>>, vector<99x128xbf16>
    %c0_123 = arith.constant 0 : index
    %c1_124 = arith.constant 1 : index
    %c7_125 = arith.constant 7 : index
    %c0_126 = arith.constant 0 : index
    %c0_127 = arith.constant 0 : index
    %92 = vector.load %arg5[%c0_123, %c1_124, %c7_125, %c0_126, %c0_127] : memref<1x2x9x128x128xbf16, #tpu.memory_space<vmem>>, vector<1x1x1x128x128xbf16>
    %93 = vector.shape_cast %92 : vector<1x1x1x128x128xbf16> to vector<128x128xbf16>
    %cst_128 = arith.constant dense<0.000000e+00> : vector<99x128xf32>
    %94 = tpu.matmul %91, %93, %cst_128 {dimension_numbers = #tpu.dot_dimension_numbers<[1], [0], [0], [1], [0, 0, 1, 1], [], []>} : vector<99x128xbf16>, vector<128x128xbf16>, vector<99x128xf32> -> vector<99x128xf32>
    %95 = arith.addf %90, %94 : vector<99x128xf32>
    %c28_129 = arith.constant 28 : index
    %c0_130 = arith.constant 0 : index
    %96 = vector.load %arg20[%c28_129, %c0_130] : memref<128x128xbf16, #tpu.memory_space<vmem>>, vector<99x128xbf16>
    %c0_131 = arith.constant 0 : index
    %c1_132 = arith.constant 1 : index
    %c8_133 = arith.constant 8 : index
    %c0_134 = arith.constant 0 : index
    %c0_135 = arith.constant 0 : index
    %97 = vector.load %arg5[%c0_131, %c1_132, %c8_133, %c0_134, %c0_135] : memref<1x2x9x128x128xbf16, #tpu.memory_space<vmem>>, vector<1x1x1x128x128xbf16>
    %98 = vector.shape_cast %97 : vector<1x1x1x128x128xbf16> to vector<128x128xbf16>
    %cst_136 = arith.constant dense<0.000000e+00> : vector<99x128xf32>
    %99 = tpu.matmul %96, %98, %cst_136 {dimension_numbers = #tpu.dot_dimension_numbers<[1], [0], [0], [1], [0, 0, 1, 1], [], []>} : vector<99x128xbf16>, vector<128x128xbf16>, vector<99x128xf32> -> vector<99x128xf32>
    %100 = arith.addf %95, %99 : vector<99x128xf32>
    %c16_137 = arith.constant 16 : index
    %c0_138 = arith.constant 0 : index
    %101 = vector.load %arg19[%c16_137, %c0_138] : memref<128x128xbf16, #tpu.memory_space<vmem>>, vector<99x128xbf16>
    %102 = arith.extf %101 : vector<99x128xbf16> to vector<99x128xf32>
    %c0_139 = arith.constant 0 : index
    %c1_140 = arith.constant 1 : index
    %c0_141 = arith.constant 0 : index
    %103 = vector.load %arg6[%c0_139, %c1_140, %c0_141] : memref<1x2x128xf32, #tpu.memory_space<vmem>>, vector<1x1x128xf32>
    %104 = vector.shape_cast %103 : vector<1x1x128xf32> to vector<1x128xf32>
    %105 = vector.broadcast %104 : vector<1x128xf32> to vector<99x128xf32>
    %106 = arith.addf %100, %105 : vector<99x128xf32>
    %107 = arith.addf %106, %102 : vector<99x128xf32>
    %cst_142 = arith.constant 0.000000e+00 : f32
    %108 = vector.broadcast %cst_142 : f32 to vector<99x128xf32>
    %109 = arith.maximumf %107, %108 : vector<99x128xf32>
    %110 = arith.mulf %109, %0 : vector<99x128xf32>
    %111 = arith.truncf %110 : vector<99x128xf32> to vector<99x128xbf16>
    %c16_143 = arith.constant 16 : index
    %c0_144 = arith.constant 0 : index
    %112 = vector.load %arg19[%c16_143, %c0_144] : memref<128x128xbf16, #tpu.memory_space<vmem>>, vector<99x128xbf16>
    tpu.vector_store %arg19[%c16_143, %c0_144], %111 {strides = array<i32>} : memref<128x128xbf16, #tpu.memory_space<vmem>>, vector<99x128xbf16>,
    %c5_i32 = arith.constant 5 : i32
    %113 = arith.cmpi eq, %arg1, %c5_i32 : i32
    %114 = arith.extui %113 : i1 to i32
    %c0_i32_145 = arith.constant 0 : i32
    %115 = arith.cmpi ne, %114, %c0_i32_145 : i32
    scf.if %115 {
      %c16_146 = arith.constant 16 : index
      %c0_147 = arith.constant 0 : index
      %116 = vector.load %arg19[%c16_146, %c0_147] : memref<128x128xbf16, #tpu.memory_space<vmem>>, vector<99x128xbf16>
      %c0_148 = arith.constant 0 : index
      %c0_149 = arith.constant 0 : index
      %117 = vector.load %arg8[%c0_148, %c0_149] : memref<128x6xbf16, #tpu.memory_space<vmem>>, vector<128x6xbf16>
      %cst_150 = arith.constant dense<0.000000e+00> : vector<99x6xf32>
      %118 = tpu.matmul %116, %117, %cst_150 {dimension_numbers = #tpu.dot_dimension_numbers<[1], [0], [0], [1], [0, 0, 1, 1], [], []>} : vector<99x128xbf16>, vector<128x6xbf16>, vector<99x6xf32> -> vector<99x6xf32>
      %c0_151 = arith.constant 0 : index
      %c0_152 = arith.constant 0 : index
      %119 = vector.load %arg9[%c0_151, %c0_152] : memref<1x6xf32, #tpu.memory_space<vmem>>, vector<1x6xf32>
      %120 = vector.broadcast %119 : vector<1x6xf32> to vector<99x6xf32>
      %121 = arith.addf %118, %120 : vector<99x6xf32>
      %cst_153 = arith.constant 0.000000e+00 : f32
      %122 = vector.broadcast %cst_153 : f32 to vector<99x6xf32>
      %123 = arith.maximumf %121, %122 : vector<99x6xf32>
      %124 = arith.truncf %123 : vector<99x6xf32> to vector<99x6xbf16>
      %c0_154 = arith.constant 0 : index
      %c0_155 = arith.constant 0 : index
      %125 = vector.load %arg10[%c0_154, %c0_155] : memref<82x99xbf16, #tpu.memory_space<vmem>>, vector<82x99xbf16>
      %126 = vector.extract_strided_slice %124 {offsets = [0, 0], sizes = [99, 2], strides = [1, 1]} : vector<99x6xbf16> to vector<99x2xbf16>
      %cst_156 = arith.constant dense<0.000000e+00> : vector<82x2xf32>
      %127 = tpu.matmul %125, %126, %cst_156 {dimension_numbers = #tpu.dot_dimension_numbers<[1], [0], [0], [1], [0, 0, 1, 1], [], []>} : vector<82x99xbf16>, vector<99x2xbf16>, vector<82x2xf32> -> vector<82x2xf32>
      %c0_157 = arith.constant 0 : index
      %c0_158 = arith.constant 0 : index
      %128 = vector.load %arg11[%c0_157, %c0_158] : memref<82x99xbf16, #tpu.memory_space<vmem>>, vector<82x99xbf16>
      %129 = vector.extract_strided_slice %124 {offsets = [0, 2], sizes = [99, 2], strides = [1, 1]} : vector<99x6xbf16> to vector<99x2xbf16>
      %cst_159 = arith.constant dense<0.000000e+00> : vector<82x2xf32>
      %130 = tpu.matmul %128, %129, %cst_159 {dimension_numbers = #tpu.dot_dimension_numbers<[1], [0], [0], [1], [0, 0, 1, 1], [], []>} : vector<82x99xbf16>, vector<99x2xbf16>, vector<82x2xf32> -> vector<82x2xf32>
      %131 = arith.addf %127, %130 : vector<82x2xf32>
      %c0_160 = arith.constant 0 : index
      %c0_161 = arith.constant 0 : index
      %132 = vector.load %arg12[%c0_160, %c0_161] : memref<82x1xf32, #tpu.memory_space<vmem>>, vector<82x1xf32>
      %133 = vector.broadcast %132 : vector<82x1xf32> to vector<82x2xf32>
      %134 = arith.addf %131, %133 : vector<82x2xf32>
      %c0_162 = arith.constant 0 : index
      %c0_163 = arith.constant 0 : index
      %135 = vector.load %arg13[%c0_162, %c0_163] : memref<64x99xbf16, #tpu.memory_space<vmem>>, vector<64x99xbf16>
      %136 = vector.extract_strided_slice %124 {offsets = [0, 4], sizes = [99, 2], strides = [1, 1]} : vector<99x6xbf16> to vector<99x2xbf16>
      %cst_164 = arith.constant dense<0.000000e+00> : vector<64x2xf32>
      %137 = tpu.matmul %135, %136, %cst_164 {dimension_numbers = #tpu.dot_dimension_numbers<[1], [0], [0], [1], [0, 0, 1, 1], [], []>} : vector<64x99xbf16>, vector<99x2xbf16>, vector<64x2xf32> -> vector<64x2xf32>
      %c0_165 = arith.constant 0 : index
      %c0_166 = arith.constant 0 : index
      %138 = vector.load %arg14[%c0_165, %c0_166] : memref<64x1xf32, #tpu.memory_space<vmem>>, vector<64x1xf32>
      %139 = vector.broadcast %138 : vector<64x1xf32> to vector<64x2xf32>
      %140 = arith.addf %137, %139 : vector<64x2xf32>
      %cst_167 = arith.constant 0.000000e+00 : f32
      %141 = vector.broadcast %cst_167 : f32 to vector<64x2xf32>
      %142 = arith.maximumf %140, %141 : vector<64x2xf32>
      %c0_168 = arith.constant 0 : index
      %c0_169 = arith.constant 0 : index
      %143 = vector.load %arg15[%c0_168, %c0_169] : memref<3x64xbf16, #tpu.memory_space<vmem>>, vector<3x64xbf16>
      %144 = arith.truncf %142 : vector<64x2xf32> to vector<64x2xbf16>
      %cst_170 = arith.constant dense<0.000000e+00> : vector<3x2xf32>
      %145 = tpu.matmul %143, %144, %cst_170 {dimension_numbers = #tpu.dot_dimension_numbers<[1], [0], [0], [1], [0, 0, 1, 1], [], []>} : vector<3x64xbf16>, vector<64x2xbf16>, vector<3x2xf32> -> vector<3x2xf32>
      %c0_171 = arith.constant 0 : index
      %c0_172 = arith.constant 0 : index
      %146 = vector.load %arg16[%c0_171, %c0_172] : memref<3x1xf32, #tpu.memory_space<vmem>>, vector<3x1xf32>
      %147 = vector.broadcast %146 : vector<3x1xf32> to vector<3x2xf32>
      %148 = arith.addf %145, %147 : vector<3x2xf32>
      %c0_173 = arith.constant 0 : index
      %c0_174 = arith.constant 0 : index
      %c0_175 = arith.constant 0 : index
      %149 = vector.load %arg17[%c0_173, %c0_174, %c0_175] : memref<1x82x2xf32, #tpu.memory_space<vmem>>, vector<1x82x2xf32>
      %150 = vector.shape_cast %149 : vector<1x82x2xf32> to vector<82x2xf32>
      %151 = vector.shape_cast %134 : vector<82x2xf32> to vector<1x82x2xf32>
      tpu.vector_store %arg17[%c0_173, %c0_174, %c0_175], %151 {strides = array<i32>} : memref<1x82x2xf32, #tpu.memory_space<vmem>>, vector<1x82x2xf32>,
      %c0_176 = arith.constant 0 : index
      %c0_177 = arith.constant 0 : index
      %c0_178 = arith.constant 0 : index
      %152 = vector.load %arg18[%c0_176, %c0_177, %c0_178] : memref<1x3x2xf32, #tpu.memory_space<vmem>>, vector<1x3x2xf32>
      %153 = vector.shape_cast %152 : vector<1x3x2xf32> to vector<3x2xf32>
      %154 = vector.shape_cast %148 : vector<3x2xf32> to vector<1x3x2xf32>
      tpu.vector_store %arg18[%c0_176, %c0_177, %c0_178], %154 {strides = array<i32>} : memref<1x3x2xf32, #tpu.memory_space<vmem>>, vector<1x3x2xf32>,
    } else {
    }
    return
  }
  func.func @transform_0(%arg0: i32, %arg1: i32) -> (i32, i32, i32) {
    %c0_i32 = arith.constant 0 : i32
    %c0_i32_0 = arith.constant 0 : i32
    %c0_i32_1 = arith.constant 0 : i32
    return %arg0, %c0_i32, %c0_i32_0 : i32, i32, i32
  }
  func.func @transform_1(%arg0: i32, %arg1: i32) -> (i32, i32) {
    %c0_i32 = arith.constant 0 : i32
    %c0_i32_0 = arith.constant 0 : i32
    %c0_i32_1 = arith.constant 0 : i32
    return %c0_i32, %c0_i32_0 : i32, i32
  }
  func.func @transform_2(%arg0: i32, %arg1: i32) -> (i32, i32) {
    %c0_i32 = arith.constant 0 : i32
    %c0_i32_0 = arith.constant 0 : i32
    %c0_i32_1 = arith.constant 0 : i32
    return %c0_i32, %c0_i32_0 : i32, i32
  }
  func.func @transform_3(%arg0: i32, %arg1: i32) -> (i32, i32, i32, i32, i32) {
    %c0_i32 = arith.constant 0 : i32
    %c0_i32_0 = arith.constant 0 : i32
    %c0_i32_1 = arith.constant 0 : i32
    %c0_i32_2 = arith.constant 0 : i32
    %c0_i32_3 = arith.constant 0 : i32
    return %arg1, %c0_i32, %c0_i32_0, %c0_i32_1, %c0_i32_2 : i32, i32, i32, i32, i32
  }
  func.func @transform_4(%arg0: i32, %arg1: i32) -> (i32, i32, i32) {
    %c0_i32 = arith.constant 0 : i32
    %c0_i32_0 = arith.constant 0 : i32
    %c0_i32_1 = arith.constant 0 : i32
    return %arg1, %c0_i32, %c0_i32_0 : i32, i32, i32
  }
  func.func @transform_5(%arg0: i32, %arg1: i32) -> (i32, i32) {
    %c0_i32 = arith.constant 0 : i32
    %c0_i32_0 = arith.constant 0 : i32
    %c0_i32_1 = arith.constant 0 : i32
    return %c0_i32, %c0_i32_0 : i32, i32
  }
  func.func @transform_6(%arg0: i32, %arg1: i32) -> (i32, i32) {
    %c0_i32 = arith.constant 0 : i32
    %c0_i32_0 = arith.constant 0 : i32
    %c0_i32_1 = arith.constant 0 : i32
    return %c0_i32, %c0_i32_0 : i32, i32
  }
  func.func @transform_7(%arg0: i32, %arg1: i32) -> (i32, i32) {
    %c0_i32 = arith.constant 0 : i32
    %c0_i32_0 = arith.constant 0 : i32
    %c0_i32_1 = arith.constant 0 : i32
    return %c0_i32, %c0_i32_0 : i32, i32
  }
  func.func @transform_8(%arg0: i32, %arg1: i32) -> (i32, i32) {
    %c0_i32 = arith.constant 0 : i32
    %c0_i32_0 = arith.constant 0 : i32
    %c0_i32_1 = arith.constant 0 : i32
    return %c0_i32, %c0_i32_0 : i32, i32
  }
  func.func @transform_9(%arg0: i32, %arg1: i32) -> (i32, i32) {
    %c0_i32 = arith.constant 0 : i32
    %c0_i32_0 = arith.constant 0 : i32
    %c0_i32_1 = arith.constant 0 : i32
    return %c0_i32, %c0_i32_0 : i32, i32
  }
  func.func @transform_10(%arg0: i32, %arg1: i32) -> (i32, i32) {
    %c0_i32 = arith.constant 0 : i32
    %c0_i32_0 = arith.constant 0 : i32
    %c0_i32_1 = arith.constant 0 : i32
    return %c0_i32, %c0_i32_0 : i32, i32
  }
  func.func @transform_11(%arg0: i32, %arg1: i32) -> (i32, i32) {
    %c0_i32 = arith.constant 0 : i32
    %c0_i32_0 = arith.constant 0 : i32
    %c0_i32_1 = arith.constant 0 : i32
    return %c0_i32, %c0_i32_0 : i32, i32
  }
  func.func @transform_12(%arg0: i32, %arg1: i32) -> (i32, i32) {
    %c0_i32 = arith.constant 0 : i32
    %c0_i32_0 = arith.constant 0 : i32
    %c0_i32_1 = arith.constant 0 : i32
    return %c0_i32, %c0_i32_0 : i32, i32
  }
  func.func @transform_13(%arg0: i32, %arg1: i32) -> (i32, i32) {
    %c0_i32 = arith.constant 0 : i32
    %c0_i32_0 = arith.constant 0 : i32
    %c0_i32_1 = arith.constant 0 : i32
    return %c0_i32, %c0_i32_0 : i32, i32
  }
  func.func @transform_14(%arg0: i32, %arg1: i32) -> (i32, i32) {
    %c0_i32 = arith.constant 0 : i32
    %c0_i32_0 = arith.constant 0 : i32
    %c0_i32_1 = arith.constant 0 : i32
    return %c0_i32, %c0_i32_0 : i32, i32
  }
  func.func @transform_15(%arg0: i32, %arg1: i32) -> (i32, i32, i32) {
    %c0_i32 = arith.constant 0 : i32
    %c0_i32_0 = arith.constant 0 : i32
    %c0_i32_1 = arith.constant 0 : i32
    return %arg0, %c0_i32, %c0_i32_0 : i32, i32, i32
  }
  func.func @transform_16(%arg0: i32, %arg1: i32) -> (i32, i32, i32) {
    %c0_i32 = arith.constant 0 : i32
    %c0_i32_0 = arith.constant 0 : i32
    %c0_i32_1 = arith.constant 0 : i32
    return %arg0, %c0_i32, %c0_i32_0 : i32, i32, i32
  }
}

</mosaic_0001>

<bundles_post_ra>
// kernel: tile.19
= control target key start
LH: loop header
LB: loop body
LE: loop exit
PB: predicated region body
PF: predicated region fallthrough
CT: control target
= control target key end

     0   :  { %vm62_vm0 = vcmask 1047556   ;;  %vm64_vm1 = vcmask 523264   ;;  %vm87_vm2 = vcmask 1048064   ;;  %s241_s0 = inlined_call_operand.vmem [shape: f32[6,2,2,64], index: 0, kind: input, shape index: {}]   ;;  %s242_s1 = inlined_call_operand.vmem [shape: f32[6,2,128], index: 1, kind: output, shape index: {}]  }
   0x1   :  { %v157_v0 = vld [vmem:[%s241_s0 + $0xe] sm:$0x3]  ;;  %v158_v1 = vld [vmem:[%s241_s0 + $0xc] sm:$0x3]  ;;  %v159_v2 = vld [vmem:[%s241_s0 + $0xa] sm:$0x3] }
   0x2   :  { %28 = vst [vmem:[#allocation1 + $0x38] sm:$0x3] %v157_v0  ;;  %33 = vst [vmem:[#allocation1 + $0x30] sm:$0x3] %v158_v1  ;;  %v160_v3 = vld [vmem:[%s241_s0 + $0x8] sm:$0x3] }
   0x3   :  { %38 = vst [vmem:[#allocation1 + $0x28] sm:$0x3] %v159_v2  ;;  %v161_v4 = vld [vmem:[%s241_s0 + $0x6] sm:$0x3]  ;;  %v162_v5 = vld [vmem:[%s241_s0 + $0x4] sm:$0x3] }
   0x4   :  { %43 = vst [vmem:[#allocation1 + $0x20] sm:$0x3] %v160_v3  ;;  %48 = vst [vmem:[#allocation1 + $0x18] sm:$0x3] %v161_v4  ;;  %v163_v6 = vld [vmem:[%s241_s0 + $0x2] sm:$0x3] }
   0x5   :  { %53 = vst [vmem:[#allocation1 + $0x10] sm:$0x3] %v162_v5  ;;  %v58_v7 = vld [vmem:[%s241_s0] sm:$0x3]  ;;  %57 = vst [vmem:[#allocation1 + $0x8] sm:$0x3] %v163_v6 }
   0x6   :  { %59 = vst [vmem:[#allocation1] sm:$0x3] %v58_v7  ;;  %v153_v8 = vld [vmem:[%s241_s0 + $0x16] sm:$0x3]  ;;  %v154_v9 = vld [vmem:[%s241_s0 + $0x14] sm:$0x3] }
   0x7   :  { %v155_v10 = vld [vmem:[%s241_s0 + $0x12] sm:$0x3]  ;;  %8 = vst [vmem:[#allocation1 + $0x58] sm:$0x3] %v153_v8  ;;  %13 = vst [vmem:[#allocation1 + $0x50] sm:$0x3] %v154_v9 }
   0x8   :  { %18 = vst [vmem:[#allocation1 + $0x48] sm:$0x3] %v155_v10  ;;  %v156_v11 = vld [vmem:[%s241_s0 + $0x10] sm:$0x3]  ;;  %s170_s0 = smov 64  }
   0x9   :  { %23 = vst [vmem:[#allocation1 + $0x40] sm:$0x3] %v156_v11 }
   0xb   :  { %v82_v12 = vld [vmem:[#allocation1 + $0x1] ss:$8 sm:$0xf0]   ;;  %v61_v13 = vld [vmem:[#allocation1] ss:$8 sm:$0xf0]  }
   0xd   :  { %v60_v14 = vld [vmem:[#allocation1] ss:$8 sm:$0xf]   ;;  %v80_v15 = vld [vmem:[#allocation1 + $0x1] ss:$8 sm:$0xf]  }
   0xe   :  { %v84_v16 = vsel %vm62_vm0, %v82_v12, %v80_v15  ;;  %v63_v17 = vsel %vm62_vm0, %v61_v13, %v60_v14 }
   0xf   :  { %85 = vrot.lane.b32.xlu0 %v84_v16, %s170_s0  ;;  %65 = vst.msk [vmem:[#allocation0] sm:$0x3] %vm64_vm1, %v63_v17   ;;  %67 = vst.msk [vmem:[#allocation0 + $0x6] sm:$0xc] %vm64_vm1, %v63_v17  }
  0x10   :  { %69 = vst.msk [vmem:[#allocation0 + $0xc] sm:$0x30] %vm64_vm1, %v63_v17   ;;  %71 = vst.msk [vmem:[#allocation0 + $0x12] sm:$0xc0] %vm64_vm1, %v63_v17  }
  0x11   :  { %v73_v18 = vld [vmem:[#allocation1 + $0x40] ss:$8 sm:$0xf]   ;;  %v96_v19 = vld [vmem:[#allocation1 + $0x41] ss:$8 sm:$0xf]  }
  0x12   :  { %76 = vst.msk [vmem:[#allocation0 + $0x20] sm:$0x3] %vm64_vm1, %v73_v18   ;;  %78 = vst.msk [vmem:[#allocation0 + $0x26] sm:$0xc] %vm64_vm1, %v73_v18  }
  0x13   :  { %97 = vrot.lane.b32.xlu0 %v96_v19, %s170_s0 }
  0x81   :  { %v86_v20 = vpop.permute.xlu0 %85  }
  0x82   :  { %88 = vst.msk [vmem:[#allocation0] sm:$0x3] %vm87_vm2, %v86_v20   ;;  %90 = vst.msk [vmem:[#allocation0 + $0x6] sm:$0xc] %vm87_vm2, %v86_v20  }
  0x83   :  { %92 = vst.msk [vmem:[#allocation0 + $0xc] sm:$0x30] %vm87_vm2, %v86_v20   ;;  %94 = vst.msk [vmem:[#allocation0 + $0x12] sm:$0xc0] %vm87_vm2, %v86_v20  }
  0x85   :  { %v98_v21 = vpop.permute.xlu0 %97  }
  0x86   :  { %101 = vst.msk [vmem:[#allocation0 + $0x20] sm:$0x3] %vm87_vm2, %v98_v21   ;;  %103 = vst.msk [vmem:[#allocation0 + $0x26] sm:$0xc] %vm87_vm2, %v98_v21  }
  0x89   :  { %v107_v22 = vld [vmem:[#allocation0] sm:$0x3]  ;;  %v111_v23 = vld [vmem:[#allocation0 + $0x8] sm:$0x3] }
  0x8a   :  { %v116_v24 = vld [vmem:[#allocation0 + $0x10] sm:$0x3]  ;;  %109 = vst [vmem:[%s242_s1] sm:$0x3] %v107_v22  ;;  %164 = vst [vmem:[%s242_s1 + $0x2] sm:$0x3] %v111_v23 }
  0x8b   :  { %165 = vst [vmem:[%s242_s1 + $0x4] sm:$0x3] %v116_v24  ;;  %v122_v25 = vld [vmem:[#allocation0 + $0x18] sm:$0x3] }
  0x8c   :  { %166 = vst [vmem:[%s242_s1 + $0x6] sm:$0x3] %v122_v25 }
  0x8d   :  { %v128_v26 = vld [vmem:[#allocation0 + $0x20] sm:$0x3]  ;;  %v134_v27 = vld [vmem:[#allocation0 + $0x28] sm:$0x3] }
  0x8e   :  { %167 = vst [vmem:[%s242_s1 + $0x8] sm:$0x3] %v128_v26  ;;  %168 = vst [vmem:[%s242_s1 + $0xa] sm:$0x3] %v134_v27 }

// kernel: tile.13
= control target key start
LH: loop header
LB: loop body
LE: loop exit
PB: predicated region body
PF: predicated region fallthrough
CT: control target
= control target key end

     0   :  { %s22_s0 = inlined_call_operand.vmem [shape: f32[64], index: 0, kind: input, shape index: {}]   ;;  %s23_s1 = inlined_call_operand.vmem [shape: f32[2,64], index: 1, kind: output, shape index: {}]  }
   0x1   :  { %v4_v0 = vld [vmem:[%s22_s0] ss:$0 sm:$0xff] }
   0x2   :  { %5 = vst [vmem:[%s23_s1] sm:$0x3] %v4_v0 }

// kernel: tile.14
= control target key start
LH: loop header
LB: loop body
LE: loop exit
PB: predicated region body
PF: predicated region fallthrough
CT: control target
= control target key end

     0   :  { %vm7_vm0 = vcmask 523264   ;;  %vm13_vm1 = vcmask 1048064   ;;  %s39_s0 = inlined_call_operand.vmem [shape: f32[2,64], index: 0, kind: input, shape index: {}]   ;;  %s40_s1 = inlined_call_operand.vmem [shape: f32[1,128], index: 1, kind: output, shape index: {}]  }
   0x1   :  { %v4_v0 = vld [vmem:[%s39_s0] sm:$0x3]  ;;  %s22_s0 = smov 64  }
   0x2   :  { %5 = vst [vmem:[#allocation1] sm:$0x3] %v4_v0 }
   0x9   :  { %v10_v1 = vld [vmem:[#allocation1 + $0x1] sm:$0x1]   ;;  %v6_v2 = vld [vmem:[#allocation1] sm:$0x1]  }
   0xa   :  { %11 = vrot.lane.b32.xlu0 %v10_v1, %s22_s0  ;;  %8 = vst.msk [vmem:[#allocation0] sm:$0x1] %vm7_vm0, %v6_v2  }
  0x7c   :  { %v12_v3 = vpop.permute.xlu0 %11  }
  0x7d   :  { %14 = vst.msk [vmem:[#allocation0] sm:$0x1] %vm13_vm1, %v12_v3  }
  0x84   :  { %v18_v4 = vld [vmem:[#allocation0] sm:$0x1] }
  0x85   :  { %20 = vst [vmem:[%s40_s1] sm:$0x1] %v18_v4 }

// kernel: dualnet_forward.1
= control target key start
LH: loop header
LB: loop body
LE: loop exit
PB: predicated region body
PF: predicated region fallthrough
CT: control target
= control target key end

     0   :  { %s7762_s21 = smov 0   ;;  %s7764_s22 = smov 0   ;;  %s9610_s0 = inlined_call_operand.vmem [shape: bf16[1,99,108], index: 0, kind: input, shape index: {}]   ;;  %s9611_s1 = inlined_call_operand.vmem [shape: bf16[108,128], index: 1, kind: input, shape index: {}]   ;;  %s9612_s2 = inlined_call_operand.vmem [shape: f32[1,128], index: 2, kind: input, shape index: {}]   ;;  %s9613_s3 = inlined_call_operand.vmem [shape: bf16[6,2,9,128,128], index: 3, kind: input, shape index: {}]   ;;  %s9614_s4 = inlined_call_operand.vmem [shape: f32[6,2,128], index: 4, kind: input, shape index: {}]   ;;  %s9615_s5 = inlined_call_operand.vmem [shape: f32[99,128], index: 5, kind: input, shape index: {}]   ;;  %s9616_s6 = inlined_call_operand.vmem [shape: bf16[128,6], index: 6, kind: input, shape index: {}]   ;;  %s9617_s7 = inlined_call_operand.vmem [shape: f32[1,6], index: 7, kind: input, shape index: {}]   ;;  %s9618_s8 = inlined_call_operand.vmem [shape: bf16[82,99], index: 8, kind: input, shape index: {}]   ;;  %s9619_s9 = inlined_call_operand.vmem [shape: bf16[82,99], index: 9, kind: input, shape index: {}]   ;;  %s9620_s10 = inlined_call_operand.vmem [shape: f32[82,1], index: 10, kind: input, shape index: {}]   ;;  %s9621_s11 = inlined_call_operand.vmem [shape: bf16[64,99], index: 11, kind: input, shape index: {}]   ;;  %s9622_s12 = inlined_call_operand.vmem [shape: f32[64,1], index: 12, kind: input, shape index: {}]   ;;  %s9623_s13 = inlined_call_operand.vmem [shape: bf16[3,64], index: 13, kind: input, shape index: {}]   ;;  %s9624_s14 = inlined_call_operand.vmem [shape: f32[3,1], index: 14, kind: input, shape index: {}]   ;;  %s9625_s15 = inlined_call_operand.vmem [shape: f32[1,82,2], index: 15, kind: output, shape index: {0}]   ;;  %s9626_s16 = inlined_call_operand.vmem [shape: f32[1,3,2], index: 16, kind: output, shape index: {1}]  }
   0x1   :  { %9629 = sst [smem:[#allocation6_spill]] %s9610_s0  ;;  %s7766_s23 = smov 0  }
   0x2 LB: > { %9630 = sst [smem:[#allocation4_spill]] %s7660_s22  ;;  %s36_s24 = sadd.s32 1, %s7660_s22  ;;  %s7664_s23 = sphi %s7766_s23, %s27_s23   ;;  %s7660_s22 = sphi %s7764_s22, %s9636_s22   ;;  %s7656_s21 = sphi %s7762_s21, %s9635_s21  }
   0x3   : > { %p5598_p0 = scmp.ge.s32.totalorder %s7664_s23, 1  ;;  %p37_p1 = scmp.ge.s32.totalorder %s36_s24, 6 }
   0x4   : > { %p496_p2 = scmp.lt.s32.totalorder %s7664_s23, 7 }
   0x5   : > { %s9638_s24 = smov (%p37_p1, %s36_s24), 0 }
   0x6   : > { %9631 = sst [smem:[#allocation5_spill]] %s9638_s24  ;;  %p497_p3 = pnand %p5598_p0, %p496_p2 }
   0x7   : > { %p564_p4 = scmp.lt.s32.totalorder (!%p497_p3), %s7656_s21, 5  ;;  %v7786_v0 = vld [vmem:[%s9615_s5] sm:$0xff] (!%p497_p3)  ;;  %v7791_v1 = vld [vmem:[%s9615_s5 + $0x8] sm:$0xff] (!%p497_p3)  ;;  %v7796_v2 = vld [vmem:[%s9615_s5 + $0x10] sm:$0xff] (!%p497_p3)  ;;  %p5601_p5 = scmp.ne.s32.totalorder (!%p497_p3), %s7656_s21, 0 }
   0x8   : > { %500 = sbr.rel (%p497_p3) target bundleno = 2202 (0x89a), region = 80  ;;  %v7801_v3 = vld [vmem:[%s9615_s5 + $0x18] sm:$0xff] (!%p497_p3)  ;;  %v7806_v4 = vld [vmem:[%s9615_s5 + $0x20] sm:$0xff] (!%p497_p3)  ;;  %v7811_v5 = vld [vmem:[%s9615_s5 + $0x28] sm:$0xff] (!%p497_p3) }
   0x9   : > { %v7817_v6 = vld [vmem:[%s9615_s5 + $0x30] sm:$0xff] (!%p497_p3)  ;;  %v7822_v7 = vld [vmem:[%s9615_s5 + $0x38] sm:$0xff] (!%p497_p3)  ;;  %v7827_v8 = vld [vmem:[%s9615_s5 + $0x40] sm:$0xff] (!%p497_p3) }
   0xa   : > { %v7832_v9 = vld [vmem:[%s9615_s5 + $0x48] sm:$0xff] (!%p497_p3)  ;;  %v7837_v10 = vld [vmem:[%s9615_s5 + $0x50] sm:$0xff] (!%p497_p3)  ;;  %v7842_v11 = vld [vmem:[%s9615_s5 + $0x58] sm:$0xff] (!%p497_p3) }
   0xb   : > { %v7847_v12 = vld [vmem:[%s9615_s5 + $0x60] sm:$0x7] (!%p497_p3) }
   0xf   : > { %s565_s26 = scalar_select %p564_p4, %s7656_s21, 5 }
  0x10   : > { %599 = sbr.rel (%p5601_p5) target bundleno = 292 (0x124), region = 84  ;;  %v7452_v13 = vld [vmem:[%s9611_s1] sm:$0xff] (!%p5601_p5)   ;;  %v7666_v14 = vmov (!%p5601_p5), 0.0   ;;  %v7453_v15 = vld [vmem:[%s9611_s1 + $0x8] sm:$0xff] (!%p5601_p5)   ;;  %vm7667_vm0 = vmmov (!%p5601_p5), 0   ;;  %v7454_v16 = vld [vmem:[%s9611_s1 + $0x10] sm:$0xff] (!%p5601_p5)  }
  0x11   : > { %s7416_s29 = smul.u32 1152, %s565_s26  ;;  %s5600_s30 = sshll.u32 %s565_s26, 1  ;;  %6430 = vmatprep.subr.bf16.mxu0 (!%p5601_p5), %v7666_v14  ;;  %7394 = vmatprep.subr.bf16.mxu1 (!%p5601_p5), %v7666_v14  ;;  %v7455_v17 = vld [vmem:[%s9611_s1 + $0x18] sm:$0xff] (!%p5601_p5)   ;;  %v7456_v18 = vld [vmem:[%s9611_s1 + $0x20] sm:$0xff] (!%p5601_p5)   ;;  %v7457_v19 = vld [vmem:[%s9611_s1 + $0x28] sm:$0xff] (!%p5601_p5)   ;;  %vm746_vm1 = vcmask (!%p5601_p5), 1045504  }
  0x12   : > { %s7852_s24 = scalar_lea.vmem %s9614_s4, %s5600_s30  ;;  %6431 = vmatpush3.bf16.msra.mxu0 (!%p5601_p5), %v7452_v13  ;;  %7401 = vmatpush3.bf16.msra.mxu1 (!%p5601_p5), %v7452_v13  ;;  %v7458_v20 = vld [vmem:[%s9611_s1 + $0x30] sm:$0x3f] (!%p5601_p5)   ;;  %s9632_s30 = sld [smem:[#allocation6_spill]] (!%p5601_p5)  ;;  %vm724_vm2 = vcmask (!%p5601_p5), 883712   ;;  %v7668_v29 = vmov (!%p5601_p5), 0   ;;  %vm877_vm3 = vcmask (!%p5601_p5), 1041408  }
  0x13   : > { %s7857_s22 = scalar_lea.vmem %s9613_s3, %s7416_s29  ;;  %6432 = vmatprep.subr.bf16.mxu0 (!%p5601_p5), %v7666_v14  ;;  %7395 = vmatprep.subr.bf16.mxu1 (!%p5601_p5), %v7666_v14  ;;  %v748_v21 = vsel (!%p5601_p5), %vm746_vm1, %v7458_v20, 0  ;;  %600 = vst [vmem:[#allocation2] sm:$0xff] (!%p5601_p5), %v7668_v29  ;;  %608 = vst [vmem:[#allocation3] sm:$0xff] (!%p5601_p5), %v7668_v29  ;;  %v7919_v30 = vld [vmem:[%s9612_s2] ss:$0 sm:$0xff] (!%p5601_p5) }
  0x14   : > { %6444 = vmatprep.mubr.msk.bf16.mxu0 (!%p5601_p5), %vm7667_vm0, %v7666_v14  ;;  %6460 = vmatprep.mubr.msk.bf16.mxu1 (!%p5601_p5), %vm7667_vm0, %v7666_v14  ;;  %609 = vst [vmem:[#allocation3 + $0x8] sm:$0xff] (!%p5601_p5), %v7668_v29  ;;  %610 = vst [vmem:[#allocation3 + $0x10] sm:$0xff] (!%p5601_p5), %v7668_v29  ;;  %vm878_vm4 = vsmask.f32 (!%p5601_p5), 1280 }
  0x15   : > { %614 = vst [vmem:[#allocation3 + $0x30] sm:$0xff] (!%p5601_p5), %v7668_v29  ;;  %615 = vst [vmem:[#allocation3 + $0x38] sm:$0xff] (!%p5601_p5), %v7668_v29 }
  0x16   : > { %6433 = vmatpush3.bf16.msra.mxu0 (!%p5601_p5), %v7453_v15  ;;  %7402 = vmatpush3.bf16.msra.mxu1 (!%p5601_p5), %v7453_v15  ;;  %607 = vst [vmem:[#allocation2 + $0x38] sm:$0xff] (!%p5601_p5), %v7668_v29  ;;  %vm879_vm5 = vmand (!%p5601_p5), %vm877_vm3, %vm878_vm4 }
  0x17   : > { %6434 = vmatprep.subr.bf16.mxu0 %v7666_v14  ;;  %7396 = vmatprep.subr.bf16.mxu1 %v7666_v14 }
  0x18   : > { %v7459_v22 = vld [vmem:[%s9632_s30] sm:$0xff]   ;;  %v7461_v24 = vld [vmem:[%s9632_s30 + $0x8] sm:$0xff]   ;;  %v7463_v26 = vld [vmem:[%s9632_s30 + $0x10] sm:$0xff]  }
  0x19   : > { %v7460_v23 = vld [vmem:[%s9632_s30 + $0x20] sm:$0xff]   ;;  %v7462_v25 = vld [vmem:[%s9632_s30 + $0x28] sm:$0xff]   ;;  %v7464_v27 = vld [vmem:[%s9632_s30 + $0x30] ss:$0 sps:$4 sm:$0x33]  }
  0x1a   : > { %6435 = vmatpush3.bf16.msra.mxu0 %v7454_v16  ;;  %7403 = vmatpush3.bf16.msra.mxu1 %v7454_v16  ;;  %v7465_v28 = vld [vmem:[%s9632_s30 + $0x18] sm:$0xff]  }
  0x1b   : > { %6436 = vmatprep.subr.bf16.mxu0 %v7666_v14  ;;  %7397 = vmatprep.subr.bf16.mxu1 %v7666_v14 }
  0x1e   : > { %6437 = vmatpush3.bf16.msra.mxu0 %v7455_v17  ;;  %7404 = vmatpush3.bf16.msra.mxu1 %v7455_v17 }
  0x1f   : > { %6438 = vmatprep.subr.bf16.mxu0 %v7666_v14  ;;  %7398 = vmatprep.subr.bf16.mxu1 %v7666_v14 }
  0x22   : > { %6439 = vmatpush3.bf16.msra.mxu0 %v7456_v18  ;;  %7405 = vmatpush3.bf16.msra.mxu1 %v7456_v18 }
  0x23   : > { %6440 = vmatprep.subr.bf16.mxu0 %v7666_v14  ;;  %7399 = vmatprep.subr.bf16.mxu1 %v7666_v14 }
  0x26   : > { %6441 = vmatpush3.bf16.msra.mxu0 %v7457_v19  ;;  %7406 = vmatpush3.bf16.msra.mxu1 %v7457_v19 }
  0x27   : > { %6442 = vmatprep.subr.bf16.mxu0 %v7666_v14  ;;  %7400 = vmatprep.subr.bf16.mxu1 %v7666_v14 }
  0x2a   : > { %6443 = vmatpush3.bf16.msra.mxu0 %v748_v21  ;;  %7407 = vmatpush3.bf16.msra.mxu1 %v748_v21 }
  0x2d   : > { %6445 = vmatmul.mubr.msk.bf16.vlgmr.msra.gmra.mrb[0].mxu0 %vm724_vm2, %v7459_v22  ;;  %6461 = vmatmul.mubr.msk.bf16.vlgmr.msra.gmra.mrb[0].mxu1 %vm724_vm2, %v7460_v23 }
  0x2e   : > { %6448 = vmatprep.mubr.msk.bf16.mxu0 %vm7667_vm0, %v7666_v14  ;;  %6464 = vmatprep.mubr.msk.bf16.mxu1 %vm7667_vm0, %v7666_v14 }
  0x35   : > { %6449 = vmatmul.mubr.msk.bf16.gmra.mrb[4].mxu0 %vm724_vm2, %v7461_v24  ;;  %6465 = vmatmul.mubr.msk.bf16.gmra.mrb[4].mxu1 %vm724_vm2, %v7462_v25 }
  0x36   : > { %6452 = vmatprep.mubr.msk.bf16.mxu0 %vm7667_vm0, %v7666_v14  ;;  %6468 = vmatprep.mubr.msk.bf16.mxu1 %vm7667_vm0, %v7666_v14 }
  0x3d   : > { %6453 = vmatmul.mubr.msk.bf16.gmra.mrb[8].mxu0 %vm724_vm2, %v7463_v26  ;;  %6469 = vmatmul.mubr.msk.bf16.gmra.mrb[8].mxu1 %vm724_vm2, %v7464_v27 }
  0x3e   : > { %6456 = vmatprep.mubr.msk.bf16.mxu0 %vm7667_vm0, %v7666_v14 }
  0x45   : > { %6457 = vmatmul.mubr.msk.bf16.gmra.mrb[12].mxu0 %vm724_vm2, %v7465_v28 }
 0x100   : > { %v784_v31 = vpop.f32.mrb[0].mxu0  ;;  %v816_v32 = vpop.f32.mrb[0].mxu1 }
 0x101   : > { %v785_v33 = vadd.f32 %v7919_v30, %v784_v31  ;;  %v6446_v34 = vpop.f32.mrb[1].mxu0  ;;  %v817_v35 = vadd.f32 %v7919_v30, %v816_v32  ;;  %v6462_v36 = vpop.f32.mrb[1].mxu1 }
 0x102   : > { %v787_v37 = vpop.f32.mrb[2].mxu0  ;;  %v819_v38 = vpop.f32.mrb[2].mxu1 }
 0x103   : > { %v838_v39 = vmax.f32 %v785_v33, 0.0  ;;  %v788_v40 = vadd.f32 %v7919_v30, %v787_v37  ;;  %v6447_v41 = vpop.f32.mrb[3].mxu0  ;;  %v846_v42 = vmax.f32 %v817_v35, 0.0  ;;  %v820_v43 = vadd.f32 %v7919_v30, %v819_v38  ;;  %v6463_v44 = vpop.f32.mrb[3].mxu1 }
 0x105   : > { %v839_v45 = vmax.f32 %v788_v40, 0.0  ;;  %v859_v46 = vmul.f32 %v846_v42, %v7827_v8  ;;  %v847_v47 = vmax.f32 %v820_v43, 0.0  ;;  %v851_v48 = vmul.f32 %v838_v39, %v7786_v0  ;;  %v880_v40 = vld [vmem:[#allocation2 + $0x38] sm:$0x3] }
 0x107   : > { %v852_v49 = vmul.f32 %v839_v45, %v7791_v1  ;;  %v860_v50 = vmul.f32 %v847_v47, %v7832_v9 }
 0x108   : > { %v792_v51 = vpop.f32.mrb[4].mxu0  ;;  %v824_v52 = vpop.f32.mrb[4].mxu1 }
 0x109   : > { %v864_v53 = vpack.c.bf16 %v852_v49, %v851_v48  ;;  %v793_v54 = vadd.f32 %v7919_v30, %v792_v51  ;;  %v868_v55 = vpack.c.bf16 %v860_v50, %v859_v46  ;;  %v6450_v56 = vpop.f32.mrb[5].mxu0  ;;  %v825_v57 = vadd.f32 %v7919_v30, %v824_v52  ;;  %v6466_v58 = vpop.f32.mrb[5].mxu1 }
 0x10a   : > { %v795_v59 = vpop.f32.mrb[6].mxu0  ;;  %v827_v60 = vpop.f32.mrb[6].mxu1 }
 0x10b   : > { %871 = vst [vmem:[#allocation2 + $0x8] sm:$0xff] %v864_v53  ;;  %v840_v61 = vmax.f32 %v793_v54, 0.0  ;;  %875 = vst [vmem:[#allocation2 + $0x28] sm:$0xff] %v868_v55  ;;  %v796_v62 = vadd.f32 %v7919_v30, %v795_v59  ;;  %v6451_v63 = vpop.f32.mrb[7].mxu0  ;;  %v848_v13 = vmax.f32 %v825_v57, 0.0  ;;  %v828_v14 = vadd.f32 %v7919_v30, %v827_v60  ;;  %v6467_v15 = vpop.f32.mrb[7].mxu1 }
 0x10d   : > { %v841_v16 = vmax.f32 %v796_v62, 0.0  ;;  %v861_v17 = vmul.f32 %v848_v13, %v7837_v10  ;;  %v849_v18 = vmax.f32 %v828_v14, 0.0  ;;  %v853_v19 = vmul.f32 %v840_v61, %v7796_v2 }
 0x10f   : > { %v854_v20 = vmul.f32 %v841_v16, %v7801_v3  ;;  %v862_v21 = vmul.f32 %v849_v18, %v7842_v11 }
 0x110   : > { %v800_v22 = vpop.f32.mrb[8].mxu0  ;;  %v832_v23 = vpop.f32.mrb[8].mxu1 }
 0x111   : > { %v865_v24 = vpack.c.bf16 %v854_v20, %v853_v19  ;;  %v801_v25 = vadd.f32 %v7919_v30, %v800_v22  ;;  %v869_v26 = vpack.c.bf16 %v862_v21, %v861_v17  ;;  %v6454_v27 = vpop.f32.mrb[9].mxu0  ;;  %v833_v28 = vadd.f32 %v7919_v30, %v832_v23  ;;  %v6470_v29 = vpop.f32.mrb[9].mxu1 }
 0x112   : > { %v803_v31 = vpop.f32.mrb[10].mxu0  ;;  %v835_v32 = vpop.f32.mrb[10].mxu1 }
 0x113   : > { %872 = vst [vmem:[#allocation2 + $0x10] sm:$0xff] %v865_v24  ;;  %v842_v33 = vmax.f32 %v801_v25, 0.0  ;;  %876 = vst [vmem:[#allocation2 + $0x30] sm:$0xff] %v869_v26  ;;  %v804_v34 = vadd.f32 %v7919_v30, %v803_v31  ;;  %v6455_v35 = vpop.f32.mrb[11].mxu0  ;;  %v850_v36 = vmax.f32 %v833_v28, 0.0  ;;  %v6471_v37 = vpop.f32.mrb[11].mxu1 }
 0x115   : > { %v843_v38 = vmax.f32 %v804_v34, 0.0  ;;  %v863_v39 = vmul.f32 %v850_v36, %v7847_v12  ;;  %v855_v41 = vmul.f32 %v842_v33, %v7806_v4 }
 0x117   : > { %v856_v42 = vmul.f32 %v843_v38, %v7811_v5  ;;  %v870_v43 = vpack.c.bf16 %v863_v39, %v863_v39 }
 0x118   : > { %v808_v44 = vpop.f32.mrb[12].mxu0 }
 0x119   : > { %v866_v45 = vpack.c.bf16 %v856_v42, %v855_v41  ;;  %v881_v46 = vsel %vm879_vm5, %v870_v43, %v880_v40  ;;  %v809_v47 = vadd.f32 %v7919_v30, %v808_v44  ;;  %v6458_v48 = vpop.f32.mrb[13].mxu0 }
 0x11a   : > { %882 = vst [vmem:[#allocation2 + $0x38] sm:$0x3] %v881_v46  ;;  %v811_v49 = vpop.f32.mrb[14].mxu0 }
 0x11b   : > { %873 = vst [vmem:[#allocation2 + $0x18] sm:$0xff] %v866_v45  ;;  %v844_v50 = vmax.f32 %v809_v47, 0.0  ;;  %v812_v51 = vadd.f32 %v7919_v30, %v811_v49  ;;  %v6459_v52 = vpop.f32.mrb[15].mxu0 }
 0x11d   : > { %v845_v53 = vmax.f32 %v812_v51, 0.0  ;;  %v857_v54 = vmul.f32 %v844_v50, %v7817_v6 }
 0x11f   : > { %v858_v55 = vmul.f32 %v845_v53, %v7822_v7 }
 0x121   : > { %v867_v56 = vpack.c.bf16 %v858_v55, %v857_v54 }
 0x123   : > { %874 = vst [vmem:[#allocation2 + $0x20] sm:$0xff] %v867_v56 }
 0x124 PF: > { %v7466_v57 = vld [vmem:[%s7857_s22 + $0x40] sm:$0xff]   ;;  %v7669_v58 = vmov 0.0   ;;  %v7468_v59 = vld [vmem:[%s7857_s22 + $0x48] sm:$0xff]   ;;  %vm7670_vm6 = vmmov 0   ;;  %v7470_v61 = vld [vmem:[%s7857_s22 + $0x50] sm:$0xff]   ;;  %vm1136_vm8 = vcmask 1045504  }
 0x125   : > { %6472 = vmatprep.subr.bf16.mxu0 %v7669_v58  ;;  %6516 = vmatprep.subr.bf16.mxu1 %v7669_v58  ;;  %v7467_v30 = vld [vmem:[%s7857_s22] sm:$0xff]   ;;  %v7469_v60 = vld [vmem:[%s7857_s22 + $0x8] sm:$0xff]   ;;  %v7471_v62 = vld [vmem:[%s7857_s22 + $0x10] sm:$0xff]   ;;  %vm923_vm7 = vsmask.f32 5376  ;;  %vm1314_vm10 = vcmask 1044480  }
 0x126   : > { %6473 = vmatpush3.bf16.msra.mxu0 %v7466_v57  ;;  %6488 = vmatprep.mubr.msk.bf16.mxu0 %vm7670_vm6, %v7669_v58  ;;  %v7472_v63 = vld [vmem:[%s7857_s22 + $0x58] sm:$0xff]   ;;  %v7474_v14 = vld [vmem:[%s7857_s22 + $0x60] sm:$0xff]   ;;  %v7971_v17 = vld [vmem:[#allocation2 + $0x8] sm:$0xff]  ;;  %vm1910_vm9 = vsmask.f32 7424  ;;  %vm2118_vm13 = vcmask 1042432  }
 0x127   : > { %6517 = vmatpush3.bf16.msra.mxu1 %v7467_v30  ;;  %6474 = vmatprep.subr.bf16.mxu0 %v7669_v58  ;;  %v7473_v13 = vld [vmem:[%s7857_s22 + $0x18] sm:$0xff]   ;;  %v7475_v15 = vld [vmem:[%s7857_s22 + $0x20] sm:$0xff]   ;;  %v7476_v18 = vld [vmem:[%s7857_s22 + $0x68] sm:$0xff]   ;;  %v7975_v21 = vshrl.u32 %v7971_v17, 16  ;;  %v7978_v22 = vshll.u32 %v7971_v17, 16  ;;  %v1138_v39 = vrot.slane %v7971_v17, 2 }
 0x128   : > { %6518 = vmatprep.subr.bf16.mxu1 %v7669_v58  ;;  %6532 = vmatprep.mubr.msk.bf16.mxu1 %vm7670_vm6, %v7669_v58  ;;  %v883_v16 = vld [vmem:[#allocation2] sm:$0xfc]  ;;  %v7477_v23 = vld [vmem:[%s7857_s22 + $0x28] sm:$0xff]   ;;  %v7478_v24 = vld [vmem:[%s7857_s22 + $0x70] sm:$0xff]   ;;  %vm1509_vm11 = vsmask.f32 256 }
 0x129   : > { %v925_v19 = vshrl.u32 %v883_v16, 16  ;;  %v928_v20 = vshll.u32 %v883_v16, 16  ;;  %v935_v27 = vrot.slane %v7975_v21, 2  ;;  %v938_v28 = vrot.slane %v7978_v22, 3  ;;  %v7479_v29 = vld [vmem:[%s7857_s22 + $0x30] sm:$0xff]   ;;  %v7480_v32 = vld [vmem:[%s7857_s22 + $0x78] sm:$0xff]  }
 0x12a   : > { %6475 = vmatpush3.bf16.msra.mxu0 %v7468_v59  ;;  %v7988_v31 = vld [vmem:[#allocation2 + $0x10] sm:$0xff]  ;;  %v7481_v33 = vld [vmem:[%s7857_s22 + $0x38] sm:$0xff]   ;;  %v1137_v38 = vrot.slane %v883_v16, 2  ;;  %v7482_v41 = vld [vmem:[%s7857_s22 + $0x80] sm:$0xff]   ;;  %vm2305_vm12 = vsmask.f32 2304 }
 0x12b   : > { %6519 = vmatpush3.bf16.msra.mxu1 %v7469_v60  ;;  %6476 = vmatprep.subr.bf16.mxu0 %v7669_v58  ;;  %v927_v25 = vrot.slane %v925_v19, 2  ;;  %v930_v26 = vrot.slane %v928_v20, 3  ;;  %v939_v35 = vor.u32 %v938_v28, %v935_v27  ;;  %v7994_v36 = vshrl.u32 %v7988_v31, 16  ;;  %v8008_v45 = vld [vmem:[#allocation2 + $0x18] sm:$0xff]  ;;  %v7486_v46 = vld [vmem:[%s7857_s22 + $0xc0] sm:$0xff]   ;;  %v7483_v47 = vld [vmem:[%s7857_s22 + $0x88] sm:$0xff]  }
 0x12c   : > { %6520 = vmatprep.subr.bf16.mxu1 %v7669_v58  ;;  %v7997_v37 = vshll.u32 %v7988_v31, 16  ;;  %v1139_v44 = vsel %vm1136_vm8, %v1137_v38, %v1138_v39  ;;  %v8014_v49 = vshrl.u32 %v8008_v45, 16  ;;  %v8017_v50 = vshll.u32 %v8008_v45, 16  ;;  %v7488_v52 = vld [vmem:[%s7857_s22 + $0xc8] sm:$0xff]   ;;  %v8030_v56 = vld [vmem:[#allocation2 + $0x20] sm:$0xff]  ;;  %v7484_v30 = vld [vmem:[%s7857_s22 + $0x90] sm:$0xff]  }
 0x12d   : > { %v931_v34 = vor.u32 %v930_v26, %v927_v25  ;;  %v944_v42 = vrot.slane %v7994_v36, 2  ;;  %v1140_v51 = vrot.slane %v7988_v31, 2  ;;  %v7489_v59 = vld [vmem:[%s7857_s22 + $0xd0] sm:$0xff]   ;;  %v8037_v60 = vshrl.u32 %v8030_v56, 16  ;;  %v8055_v19 = vld [vmem:[#allocation2 + $0x28] sm:$0xff]  ;;  %v7493_v26 = vld [vmem:[%s7857_s22 + $0xe0] sm:$0xff]  }
 0x12e   : > { %6477 = vmatpush3.bf16.msra.mxu0 %v7470_v61  ;;  %v947_v43 = vrot.slane %v7997_v37, 3  ;;  %v953_v54 = vrot.slane %v8014_v49, 2  ;;  %v956_v55 = vrot.slane %v8017_v50, 3  ;;  %v8040_v61 = vshll.u32 %v8030_v56, 16  ;;  %p6042_p6 = scmp.ne.s32.totalorder %s7656_s21, 5 }
 0x12f   : > { %6521 = vmatpush3.bf16.msra.mxu1 %v7471_v62  ;;  %6478 = vmatprep.subr.bf16.mxu0 %v7669_v58  ;;  %v940_v40 = vsel %vm923_vm7, %v931_v34, %v939_v35  ;;  %v1141_v57 = vsel %vm1136_vm8, %v1138_v39, %v1140_v51  ;;  %v1911_v20 = vrot.slane %v7978_v22, 1  ;;  %v1913_v25 = vrot.slane %v7997_v37, 1  ;;  %s7673_s26 = smov (!%p6042_p6), 126   ;;  %s7674_s29 = smov (!%p6042_p6), 124  }
 0x130   : > { %6522 = vmatprep.subr.bf16.mxu1 %v7669_v58  ;;  %v948_v48 = vor.u32 %v947_v43, %v944_v42  ;;  %v957_v62 = vor.u32 %v956_v55, %v953_v54  ;;  %v965_v16 = vrot.slane %v8040_v61, 3  ;;  %v1916_v28 = vrot.slane %v8017_v50, 1  ;;  %v7494_v42 = vld [vmem:[%s7857_s22 + $0xe8] sm:$0xff]  }
 0x131   : > { %v1912_v27 = vor.u32 %v1911_v20, %v7975_v21  ;;  %v1144_v39 = vrot.slane %v8030_v56, 2  ;;  %vm2520_vm14 = vcmask 1041408   ;;  %vm2747_vm15 = vsmask.f32 1280 }
 0x132   : > { %6479 = vmatpush3.bf16.msra.mxu0 %v7472_v63  ;;  %v949_v53 = vsel %vm923_vm7, %v939_v35, %v948_v48  ;;  %v1142_v63 = vrot.slane %v8008_v45, 2  ;;  %v8074_v35 = vshll.u32 %v8055_v19, 16  ;;  %v1918_v38 = vor.u32 %v1916_v28, %v8014_v49  ;;  %vm8830_vm0 = vmand %vm2520_vm14, %vm2747_vm15 }
 0x133   : > { %6523 = vmatpush3.bf16.msra.mxu1 %v7473_v13  ;;  %6480 = vmatprep.subr.bf16.mxu0 %v7669_v58  ;;  %v7485_v13 = vld [vmem:[%s7857_s22 + $0x98] sm:$0xff]   ;;  %vm7672_vm1 = vmmov (!%p6042_p6), 0   ;;  %vm4912_vm2 = vcmask (!%p6042_p6), 809984   ;;  %vm4931_vm3 = vcmask (!%p6042_p6), 1040384   ;;  %vm5463_vm4 = vcmask (!%p6042_p6), 15360  }
 0x134   : > { %6524 = vmatprep.subr.bf16.mxu1 %v7669_v58  ;;  %vm5474_vm5 = vcmask (!%p6042_p6), 9216  }
 0x136   : > { %6481 = vmatpush3.bf16.msra.mxu0 %v7474_v14  ;;  %v7491_v14 = vld [vmem:[%s7857_s22 + $0xd8] sm:$0xff]  }
 0x137   : > { %6525 = vmatpush3.bf16.msra.mxu1 %v7475_v15  ;;  %6482 = vmatprep.subr.bf16.mxu0 %v7669_v58  ;;  %v962_v15 = vrot.slane %v8037_v60, 2 }
 0x138   : > { %6526 = vmatprep.subr.bf16.mxu1 %v7669_v58 }
 0x139   : > { %v966_v34 = vor.u32 %v965_v16, %v962_v15 }
 0x13a   : > { %6483 = vmatpush3.bf16.msra.mxu0 %v7476_v18  ;;  %v958_v18 = vsel %vm923_vm7, %v948_v48, %v957_v62  ;;  %v7492_v48 = vld [vmem:[%s7857_s22 + $0xb0] sm:$0xff]  }
 0x13b   : > { %6527 = vmatpush3.bf16.msra.mxu1 %v7477_v23  ;;  %6484 = vmatprep.subr.bf16.mxu0 %v7669_v58  ;;  %v1143_v23 = vsel %vm1136_vm8, %v1140_v51, %v1142_v63  ;;  %v1145_v51 = vsel %vm1136_vm8, %v1142_v63, %v1144_v39 }
 0x13c   : > { %6528 = vmatprep.subr.bf16.mxu1 %v7669_v58 }
 0x13e   : > { %6485 = vmatpush3.bf16.msra.mxu0 %v7478_v24  ;;  %v7487_v24 = vld [vmem:[%s7857_s22 + $0xa0] sm:$0xff]  }
 0x13f   : > { %6529 = vmatpush3.bf16.msra.mxu1 %v7479_v29  ;;  %6486 = vmatprep.subr.bf16.mxu0 %v7669_v58  ;;  %v8066_v29 = vshrl.u32 %v8055_v19, 16 }
 0x140   : > { %6530 = vmatprep.subr.bf16.mxu1 %v7669_v58 }
 0x141   : > { %v971_v43 = vrot.slane %v8066_v29, 2 }
 0x142   : > { %6487 = vmatpush3.bf16.msra.mxu0 %v7480_v32  ;;  %v1915_v32 = vor.u32 %v1913_v25, %v7994_v36 }
 0x143   : > { %6531 = vmatpush3.bf16.msra.mxu1 %v7481_v33  ;;  %6560 = vmatprep.subr.bf16.mxu0 %v7669_v58  ;;  %v1919_v33 = vrot.slane %v8040_v61, 1 }
 0x144   : > { %6604 = vmatprep.subr.bf16.mxu1 %v7669_v58 }
 0x145   : > { %6489 = vmatmul.mubr.bf16.vlgmr.msra.gmra.mrb[0].mxu0 %v940_v40  ;;  %v7490_v40 = vld [vmem:[%s7857_s22 + $0xa8] sm:$0xff]   ;;  %v8112_v63 = vsel %vm1910_vm9, %v1918_v38, %v1919_v33  ;;  %v1293_v38 = vld [vmem:[#allocation2] sm:$0xf8] }
 0x146   : > { %6533 = vmatmul.mubr.bf16.vlgmr.msra.gmra.mrb[0].mxu1 %v1139_v44  ;;  %6561 = vmatpush3.bf16.msra.mxu0 %v7482_v41  ;;  %v8082_v41 = vor.u32 %v1919_v33, %v8037_v60  ;;  %v967_v44 = vsel %vm923_vm7, %v957_v62, %v966_v34  ;;  %v7495_v62 = vld [vmem:[%s7857_s22 + $0xb8] sm:$0xff]   ;;  %v1316_v33 = vrot.slane %v7971_v17, 3 }
 0x147   : > { %6492 = vmatprep.mubr.msk.bf16.mxu0 %vm7670_vm6, %v7669_v58  ;;  %6536 = vmatprep.mubr.msk.bf16.mxu1 %vm7670_vm6, %v7669_v58 }
 0x148   : > { %6562 = vmatprep.subr.bf16.mxu0 %v7669_v58  ;;  %6605 = vmatpush3.bf16.msra.mxu1 %v7486_v46  ;;  %v974_v46 = vrot.slane %v8074_v35, 3 }
 0x149   : > { %6606 = vmatprep.subr.bf16.mxu1 %v7669_v58 }
 0x14a   : > { %6563 = vmatpush3.bf16.msra.mxu0 %v7483_v47  ;;  %v8090_v47 = vld [vmem:[#allocation2 + $0x30] sm:$0xf]  ;;  %v975_v55 = vor.u32 %v974_v46, %v971_v43  ;;  %v2319_v43 = vrot.slane %v8017_v50, 6  ;;  %v1525_v46 = vrot.slane %v7994_v36, 7 }
 0x14b   : > { %6564 = vmatprep.subr.bf16.mxu0 %v7669_v58  ;;  %v981_v54 = vshll.u32 %v8090_v47, 16 }
 0x14c   : > { %6607 = vmatpush3.bf16.msra.mxu1 %v7488_v52  ;;  %v7496_v52 = vld [vmem:[%s7857_s22 + $0xf0] sm:$0xff]  }
 0x14d   : > { %6493 = vmatmul.mubr.bf16.gmra.mrb[4].mxu0 %v949_v53  ;;  %6608 = vmatprep.subr.bf16.mxu1 %v7669_v58  ;;  %v978_v53 = vshrl.u32 %v8090_v47, 16  ;;  %v983_v16 = vrot.slane %v981_v54, 3  ;;  %v2322_v54 = vrot.slane %v8037_v60, 5 }
 0x14e   : > { %6537 = vmatmul.mubr.bf16.gmra.mrb[4].mxu1 %v1141_v57  ;;  %6496 = vmatprep.mubr.msk.bf16.mxu0 %vm7670_vm6, %v7669_v58  ;;  %v8102_v57 = vsel %vm1910_vm9, %v1912_v27, %v1913_v25  ;;  %v2315_v27 = vrot.slane %v7997_v37, 6 }
 0x14f   : > { %6540 = vmatprep.mubr.msk.bf16.mxu1 %vm7670_vm6, %v7669_v58  ;;  %6565 = vmatpush3.bf16.msra.mxu0 %v7484_v30  ;;  %v8105_v30 = vsel %vm1910_vm9, %v1915_v32, %v1916_v28  ;;  %v980_v15 = vrot.slane %v978_v53, 2  ;;  %v1484_v28 = vld [vmem:[#allocation2] sm:$0x80] }
 0x150   : > { %6566 = vmatprep.subr.bf16.mxu0 %v7669_v58  ;;  %6609 = vmatpush3.bf16.msra.mxu1 %v7489_v59  ;;  %v1146_v59 = vrot.slane %v8055_v19, 2 }
 0x151   : > { %6610 = vmatprep.subr.bf16.mxu1 %v7669_v58  ;;  %v984_v20 = vor.u32 %v983_v16, %v980_v15  ;;  %v7500_v16 = vld [vmem:[%s7857_s22 + $0x110] sm:$0xff]  }
 0x153   : > { %6567 = vmatpush3.bf16.msra.mxu0 %v7485_v13  ;;  %v7497_v13 = vld [vmem:[%s7857_s22 + $0xf8] sm:$0xff]  }
 0x154   : > { %6568 = vmatprep.subr.bf16.mxu0 %v7669_v58  ;;  %6611 = vmatpush3.bf16.msra.mxu1 %v7491_v14  ;;  %v976_v14 = vsel %vm923_vm7, %v966_v34, %v975_v55  ;;  %v1517_v34 = vrot.slane %v7975_v21, 7 }
 0x155   : > { %6497 = vmatmul.mubr.bf16.gmra.mrb[8].mxu0 %v958_v18  ;;  %6612 = vmatprep.subr.bf16.mxu1 %v7669_v58  ;;  %v1147_v18 = vsel %vm1136_vm8, %v1144_v39, %v1146_v59  ;;  %v1511_v39 = vshrl.u32 %v1484_v28, 16 }
 0x156   : > { %6541 = vmatmul.mubr.bf16.gmra.mrb[8].mxu1 %v1143_v23  ;;  %6500 = vmatprep.mubr.msk.bf16.mxu0 %vm7670_vm6, %v7669_v58  ;;  %v1148_v23 = vrot.slane %v8090_v47, 2  ;;  %v1520_v21 = vor.u32 %v1517_v34, %v7978_v22 }
 0x157   : > { %6544 = vmatprep.mubr.msk.bf16.mxu1 %vm7670_vm6, %v7669_v58  ;;  %6569 = vmatpush3.bf16.msra.mxu0 %v7487_v24  ;;  %v985_v24 = vsel %vm923_vm7, %v975_v55, %v984_v20  ;;  %v1513_v17 = vrot.slane %v1511_v39, 7  ;;  %v2323_v55 = vrot.slane %v8040_v61, 6 }
 0x158   : > { %6570 = vmatprep.subr.bf16.mxu0 %v7669_v58  ;;  %6613 = vmatpush3.bf16.msra.mxu1 %v7493_v26  ;;  %v1149_v25 = vsel %vm1136_vm8, %v1146_v59, %v1148_v23  ;;  %v2314_v26 = vrot.slane %v7994_v36, 5  ;;  %v7498_v36 = vld [vmem:[%s7857_s22 + $0x100] sm:$0xff]   ;;  %v7499_v59 = vld [vmem:[%s7857_s22 + $0x108] sm:$0xff]  }
 0x159   : > { %6614 = vmatprep.subr.bf16.mxu1 %v7669_v58  ;;  %v1521_v53 = vsel %vm1509_vm11, %v1513_v17, %v1520_v21  ;;  %v8159_v22 = vor.u32 %v2323_v55, %v2322_v54  ;;  %v7510_v17 = vld [vmem:[%s7857_s22 + $0x168] sm:$0xff]   ;;  %v7508_v21 = vld [vmem:[%s7857_s22 + $0x130] sm:$0xff]  }
 0x15a   : > { %v8132_v32 = vor.u32 %v2315_v27, %v2314_v26  ;;  %v1294_v54 = vld [vmem:[#allocation2 + $0x30] sm:$0x1f] }
 0x15b   : > { %6571 = vmatpush3.bf16.msra.mxu0 %v7490_v40  ;;  %v1318_v40 = vrot.slane %v7988_v31, 3  ;;  %v1320_v31 = vrot.slane %v8008_v45, 3  ;;  %v7513_v45 = vld [vmem:[%s7857_s22 + $0x178] sm:$0xff]  }
 0x15c   : > { %6572 = vmatprep.subr.bf16.mxu0 %v7669_v58  ;;  %6615 = vmatpush3.bf16.msra.mxu1 %v7494_v42  ;;  %v2318_v42 = vrot.slane %v8014_v49, 5 }
 0x15d   : > { %6501 = vmatmul.mubr.bf16.gmra.mrb[12].mxu0 %v967_v44  ;;  %6616 = vmatprep.subr.bf16.mxu1 %v7669_v58  ;;  %v1315_v44 = vrot.slane %v1293_v38, 3  ;;  %v7509_v38 = vld [vmem:[%s7857_s22 + $0x160] sm:$0xff]  }
 0x15e   : > { %6545 = vmatmul.mubr.bf16.gmra.mrb[12].mxu1 %v1145_v51  ;;  %6504 = vmatprep.mubr.msk.bf16.mxu0 %vm7670_vm6, %v7669_v58  ;;  %v2320_v47 = vor.u32 %v2319_v43, %v2318_v42 }
 0x15f   : > { %6548 = vmatprep.mubr.msk.bf16.mxu1 %vm7670_vm6, %v7669_v58  ;;  %6573 = vmatpush3.bf16.msra.mxu0 %v7492_v48  ;;  %v1317_v51 = vsel %vm1314_vm10, %v1315_v44, %v1316_v33  ;;  %v7506_v44 = vld [vmem:[%s7857_s22 + $0x128] sm:$0xff]  }
 0x160   : > { %6574 = vmatprep.subr.bf16.mxu0 %v7669_v58  ;;  %6617 = vmatpush3.bf16.msra.mxu1 %v7496_v52  ;;  %v8150_v48 = vsel %vm2305_vm12, %v8132_v32, %v2320_v47  ;;  %v7502_v52 = vld [vmem:[%s7857_s22 + $0x140] sm:$0xff]   ;;  %v8169_v15 = vsel %vm2305_vm12, %v2320_v47, %v8159_v22  ;;  %v1324_v47 = vrot.slane %v8055_v19, 3 }
 0x161   : > { %6618 = vmatprep.subr.bf16.mxu1 %v7669_v58 }
 0x163   : > { %6575 = vmatpush3.bf16.msra.mxu0 %v7495_v62  ;;  %v1533_v62 = vrot.slane %v8014_v49, 7  ;;  %v1319_v49 = vsel %vm1314_vm10, %v1316_v33, %v1318_v40  ;;  %v7503_v33 = vld [vmem:[%s7857_s22 + $0x120] sm:$0xff]  }
 0x164   : > { %6619 = vmatpush3.bf16.msra.mxu1 %v7497_v13  ;;  %6648 = vmatprep.subr.bf16.mxu0 %v7669_v58  ;;  %v7504_v13 = vld [vmem:[%s7857_s22 + $0x148] sm:$0xff]  }
 0x165   : > { %6505 = vmatmul.mubr.bf16.gmra.mrb[16].mxu0 %v976_v14  ;;  %6692 = vmatprep.subr.bf16.mxu1 %v7669_v58  ;;  %v1528_v14 = vor.u32 %v1525_v46, %v7997_v37  ;;  %v1541_v37 = vrot.slane %v8037_v60, 7  ;;  %v1536_v28 = vor.u32 %v1533_v62, %v8017_v50 }
 0x166   : > { %6549 = vmatmul.mubr.bf16.gmra.mrb[16].mxu1 %v1147_v18  ;;  %6508 = vmatprep.mubr.msk.bf16.mxu0 %vm7670_vm6, %v7669_v58  ;;  %v7505_v18 = vld [vmem:[%s7857_s22 + $0x150] sm:$0xff]  }
 0x167   : > { %6552 = vmatprep.mubr.msk.bf16.mxu1 %vm7670_vm6, %v7669_v58  ;;  %v1537_v39 = vsel %vm1509_vm11, %v1525_v46, %v1536_v28  ;;  %v1544_v46 = vor.u32 %v1541_v37, %v8040_v61  ;;  %v7518_v28 = vld [vmem:[%s7857_s22 + $0x1c0] sm:$0xff]  }
 0x169   : > { %v1545_v61 = vsel %vm1509_vm11, %v1533_v62, %v1544_v46  ;;  %v8294_v46 = vld [vmem:[#allocation2 + $0x18] sm:$0xff] }
 0x16d   : > { %6509 = vmatmul.mubr.bf16.gmra.mrb[20].mxu0 %v985_v24  ;;  %v7501_v24 = vld [vmem:[%s7857_s22 + $0x118] sm:$0xff]  }
 0x16e   : > { %6553 = vmatmul.mubr.bf16.gmra.mrb[20].mxu1 %v1149_v25  ;;  %6512 = vmatprep.mubr.msk.bf16.mxu0 %vm7670_vm6, %v7669_v58  ;;  %v7507_v25 = vld [vmem:[%s7857_s22 + $0x158] sm:$0xff]  }
 0x16f   : > { %6556 = vmatprep.mubr.msk.bf16.mxu1 %vm7670_vm6, %v7669_v58 }
 0x175   : > { %6513 = vmatmul.mubr.bf16.gmra.mrb[24].mxu0 %v984_v20  ;;  %v1529_v20 = vsel %vm1509_vm11, %v1517_v34, %v1528_v14  ;;  %v1321_v34 = vsel %vm1314_vm10, %v1318_v40, %v1320_v31  ;;  %v1322_v40 = vrot.slane %v8030_v56, 3  ;;  %v1549_v56 = vrot.slane %v8066_v29, 7 }
 0x176   : > { %6557 = vmatmul.mubr.bf16.gmra.mrb[24].mxu1 %v1148_v23  ;;  %6576 = vmatprep.mubr.msk.bf16.mxu0 %vm7670_vm6, %v7669_v58  ;;  %v8180_v23 = vld [vmem:[#allocation2 + $0x30] sm:$0xff] }
 0x177   : > { %6620 = vmatprep.mubr.msk.bf16.mxu1 %vm7670_vm6, %v7669_v58  ;;  %v8188_v26 = vshrl.u32 %v8180_v23, 16  ;;  %v8191_v27 = vshll.u32 %v8180_v23, 16  ;;  %v1325_v55 = vsel %vm1314_vm10, %v1322_v40, %v1324_v47 }
 0x179   : > { %v2330_v42 = vrot.slane %v8188_v26, 5  ;;  %v2331_v50 = vrot.slane %v8191_v27, 6 }
 0x17b   : > { %v8208_v43 = vor.u32 %v2331_v50, %v2330_v42  ;;  %v8278_v42 = vld [vmem:[#allocation2 + $0x10] sm:$0xff]  ;;  %v7517_v50 = vld [vmem:[%s7857_s22 + $0x198] sm:$0xff]  }
 0x17d   : > { %6577 = vmatmul.mubr.bf16.vlgmr.msra.gmra.mrb[28].mxu0 %v1317_v51  ;;  %v1557_v51 = vrot.slane %v8188_v26, 7 }
 0x17e   : > { %6649 = vmatpush3.bf16.msra.mxu0 %v7498_v36  ;;  %6621 = vmatmul.mubr.bf16.vlgmr.msra.gmra.mrb[28].mxu1 %v1521_v53  ;;  %v1323_v36 = vsel %vm1314_vm10, %v1320_v31, %v1322_v40  ;;  %v7511_v53 = vld [vmem:[%s7857_s22 + $0x138] sm:$0xff]   ;;  %v1552_v31 = vor.u32 %v1549_v56, %v8074_v35 }
 0x17f   : > { %6580 = vmatprep.mubr.msk.bf16.mxu0 %vm7670_vm6, %v7669_v58  ;;  %6650 = vmatprep.subr.bf16.mxu0 %v7669_v58  ;;  %v1560_v60 = vor.u32 %v8191_v27, %v1557_v51  ;;  %v7523_v40 = vld [vmem:[%s7857_s22 + $0x1d8] sm:$0xff]  }
 0x180   : > { %6624 = vmatprep.mubr.msk.bf16.mxu1 %vm7670_vm6, %v7669_v58  ;;  %6693 = vmatpush3.bf16.msra.mxu1 %v7502_v52  ;;  %v7512_v52 = vld [vmem:[%s7857_s22 + $0x170] sm:$0xff]   ;;  %v1553_v62 = vsel %vm1509_vm11, %v1541_v37, %v1552_v31 }
 0x181   : > { %6694 = vmatprep.subr.bf16.mxu1 %v7669_v58 }
 0x182   : > { %6651 = vmatpush3.bf16.msra.mxu0 %v7499_v59  ;;  %v1491_v59 = vld [vmem:[#allocation2 + $0x38] sm:$0x1] }
 0x183   : > { %6652 = vmatprep.subr.bf16.mxu0 %v7669_v58  ;;  %v1563_v14 = vshrl.u32 %v1491_v59, 16 }
 0x184   : > { %6695 = vmatpush3.bf16.msra.mxu1 %v7504_v13  ;;  %v1326_v13 = vrot.slane %v1294_v54, 3 }
 0x185   : > { %6581 = vmatmul.mubr.bf16.gmra.mrb[32].mxu0 %v1319_v49  ;;  %6696 = vmatprep.subr.bf16.mxu1 %v7669_v58  ;;  %v1561_v49 = vsel %vm1509_vm11, %v1549_v56, %v1560_v60  ;;  %v7526_v56 = vld [vmem:[%s7857_s22 + $0x1e8] sm:$0xff]  }
 0x186   : > { %6625 = vmatmul.mubr.bf16.gmra.mrb[32].mxu1 %v1529_v20  ;;  %6584 = vmatprep.mubr.msk.bf16.mxu0 %vm7670_vm6, %v7669_v58  ;;  %v1566_v20 = vshll.u32 %v1491_v59, 16 }
 0x187   : > { %6653 = vmatpush3.bf16.msra.mxu0 %v7500_v16  ;;  %6628 = vmatprep.mubr.msk.bf16.mxu1 %vm7670_vm6, %v7669_v58  ;;  %v1327_v16 = vsel %vm1314_vm10, %v1324_v47, %v1326_v13  ;;  %v1922_v47 = vrot.slane %v8074_v35, 1 }
 0x188   : > { %6654 = vmatprep.subr.bf16.mxu0 %v7669_v58  ;;  %6697 = vmatpush3.bf16.msra.mxu1 %v7505_v18  ;;  %v1565_v18 = vrot.slane %v1563_v14, 7 }
 0x189   : > { %6698 = vmatprep.subr.bf16.mxu1 %v7669_v58 }
 0x18a   : > { %v1568_v37 = vor.u32 %v1566_v20, %v1565_v18  ;;  %v2120_v18 = vrot.slane %v8278_v42, 5 }
 0x18b   : > { %6655 = vmatpush3.bf16.msra.mxu0 %v7501_v24 }
 0x18c   : > { %6656 = vmatprep.subr.bf16.mxu0 %v7669_v58  ;;  %6699 = vmatpush3.bf16.msra.mxu1 %v7507_v25  ;;  %v1569_v24 = vsel %vm1509_vm11, %v1557_v51, %v1568_v37  ;;  %v7514_v25 = vld [vmem:[%s7857_s22 + $0x180] sm:$0xff]   ;;  %v1925_v51 = vrot.slane %v8191_v27, 1 }
 0x18d   : > { %6585 = vmatmul.mubr.bf16.gmra.mrb[36].mxu0 %v1321_v34  ;;  %6700 = vmatprep.subr.bf16.mxu1 %v7669_v58  ;;  %v7515_v34 = vld [vmem:[%s7857_s22 + $0x188] sm:$0xff]  }
 0x18e   : > { %6629 = vmatmul.mubr.bf16.gmra.mrb[36].mxu1 %v1537_v39  ;;  %6588 = vmatprep.mubr.msk.bf16.mxu0 %vm7670_vm6, %v7669_v58  ;;  %v7516_v39 = vld [vmem:[%s7857_s22 + $0x190] sm:$0xff]   ;;  %v1927_v27 = vor.u32 %v1925_v51, %v8188_v26 }
 0x18f   : > { %6632 = vmatprep.mubr.msk.bf16.mxu1 %vm7670_vm6, %v7669_v58  ;;  %6657 = vmatpush3.bf16.msra.mxu0 %v7503_v33  ;;  %v7610_v33 = vld [vmem:[#allocation2 + $0x8] sm:$0xff] }
 0x190   : > { %6658 = vmatprep.subr.bf16.mxu0 %v7669_v58  ;;  %6701 = vmatpush3.bf16.msra.mxu1 %v7509_v38  ;;  %v7520_v38 = vld [vmem:[%s7857_s22 + $0x1c8] sm:$0xff]  }
 0x191   : > { %6702 = vmatprep.subr.bf16.mxu1 %v7669_v58 }
 0x193   : > { %6659 = vmatpush3.bf16.msra.mxu0 %v7506_v44  ;;  %v7519_v44 = vld [vmem:[%s7857_s22 + $0x1a0] sm:$0xff]  }
 0x194   : > { %6660 = vmatprep.subr.bf16.mxu0 %v7669_v58  ;;  %6703 = vmatpush3.bf16.msra.mxu1 %v7510_v17  ;;  %v7522_v17 = vld [vmem:[%s7857_s22 + $0x1a8] sm:$0xff]  }
 0x195   : > { %6589 = vmatmul.mubr.bf16.gmra.mrb[40].mxu0 %v1323_v36  ;;  %6704 = vmatprep.subr.bf16.mxu1 %v7669_v58  ;;  %v7528_v36 = vld [vmem:[%s7857_s22 + $0x1f0] sm:$0xff]  }
 0x196   : > { %6633 = vmatmul.mubr.bf16.gmra.mrb[40].mxu1 %v1545_v61  ;;  %6592 = vmatprep.mubr.msk.bf16.mxu0 %vm7670_vm6, %v7669_v58  ;;  %v8313_v61 = vld [vmem:[#allocation2 + $0x20] sm:$0xff] }
 0x197   : > { %6636 = vmatprep.mubr.msk.bf16.mxu1 %vm7670_vm6, %v7669_v58  ;;  %6661 = vmatpush3.bf16.msra.mxu0 %v7508_v21  ;;  %v7524_v21 = vld [vmem:[%s7857_s22 + $0x1b0] sm:$0xff]  }
 0x198   : > { %6662 = vmatprep.subr.bf16.mxu0 %v7669_v58  ;;  %6705 = vmatpush3.bf16.msra.mxu1 %v7512_v52  ;;  %v7527_v52 = vld [vmem:[%s7857_s22 + $0x1b8] sm:$0xff]  }
 0x199   : > { %6706 = vmatprep.subr.bf16.mxu1 %v7669_v58 }
 0x19b   : > { %6663 = vmatpush3.bf16.msra.mxu0 %v7511_v53  ;;  %v1726_v53 = vld [vmem:[#allocation2 + $0x38] sm:$0x3] }
 0x19c   : > { %6707 = vmatpush3.bf16.msra.mxu1 %v7513_v45  ;;  %6736 = vmatprep.subr.bf16.mxu0 %v7669_v58  ;;  %v7529_v45 = vld [vmem:[%s7857_s22 + $0x1f8] sm:$0xff]   ;;  %v1929_v54 = vshll.u32 %v1726_v53, 16 }
 0x19d   : > { %6593 = vmatmul.mubr.bf16.gmra.mrb[44].mxu0 %v1325_v55  ;;  %6780 = vmatprep.subr.bf16.mxu1 %v7669_v58 }
 0x19e   : > { %6637 = vmatmul.mubr.bf16.gmra.mrb[44].mxu1 %v1553_v62  ;;  %6596 = vmatprep.mubr.msk.bf16.mxu0 %vm7670_vm6, %v7669_v58  ;;  %v1931_v55 = vrot.slane %v1929_v54, 1  ;;  %v2092_v62 = vld [vmem:[#allocation2 + $0x8] sm:$0xe0] }
 0x19f   : > { %6640 = vmatprep.mubr.msk.bf16.mxu1 %vm7670_vm6, %v7669_v58  ;;  %v2310_v14 = vshll.u32 %v2092_v62, 16 }
 0x1a0   : > { %v1932_v59 = vsel %vm1910_vm9, %v1927_v27, %v1931_v55 }
 0x1a1   : > { %v2312_v26 = vrot.slane %v2310_v14, 6 }
 0x1a5   : > { %6597 = vmatmul.mubr.bf16.gmra.mrb[48].mxu0 %v1327_v16 }
 0x1a6   : > { %6641 = vmatmul.mubr.bf16.gmra.mrb[48].mxu1 %v1561_v49  ;;  %6600 = vmatprep.mubr.msk.bf16.mxu0 %vm7670_vm6, %v7669_v58  ;;  %v2119_v49 = vrot.slane %v2092_v62, 5 }
 0x1a7   : > { %6644 = vmatprep.mubr.msk.bf16.mxu1 %vm7670_vm6, %v7669_v58 }
 0x1a8   : > { %v2121_v37 = vsel %vm2118_vm13, %v2119_v49, %v2120_v18 }
 0x1ad   : > { %6601 = vmatmul.mubr.bf16.gmra.mrb[52].mxu0 %v1326_v13  ;;  %v2307_v13 = vshrl.u32 %v2092_v62, 16 }
 0x1ae   : > { %6645 = vmatmul.mubr.bf16.gmra.mrb[52].mxu1 %v1569_v24  ;;  %6664 = vmatprep.mubr.msk.bf16.mxu0 %vm7670_vm6, %v7669_v58  ;;  %v7530_v24 = vld [vmem:[%s7857_s22 + $0x200] sm:$0xff]  }
 0x1af   : > { %6708 = vmatprep.mubr.msk.bf16.mxu1 %vm7670_vm6, %v7669_v58  ;;  %v2309_v16 = vrot.slane %v2307_v13, 5 }
 0x1b1   : > { %v2313_v20 = vor.u32 %v2312_v26, %v2309_v16  ;;  %v2499_v26 = vld [vmem:[#allocation2 + $0x8] sm:$0xc0] }
 0x1b5   : > { %6665 = vmatmul.mubr.bf16.vlgmr.msra.gmra.mrb[56].mxu0 %v7610_v33  ;;  %v7531_v33 = vld [vmem:[%s7857_s22 + $0x208] sm:$0xff]  }
 0x1b6   : > { %6737 = vmatpush3.bf16.msra.mxu0 %v7514_v25  ;;  %6709 = vmatmul.mubr.bf16.vlgmr.msra.gmra.mrb[56].mxu1 %v8102_v57  ;;  %v7521_v57 = vld [vmem:[%s7857_s22 + $0x1d0] sm:$0xff]   ;;  %v2317_v25 = vsel %vm2305_vm12, %v2313_v20, %v8132_v32  ;;  %v2522_v20 = vrot.slane %v8278_v42, 6 }
 0x1b7   : > { %6668 = vmatprep.mubr.msk.bf16.mxu0 %vm7670_vm6, %v7669_v58  ;;  %6738 = vmatprep.subr.bf16.mxu0 %v7669_v58  ;;  %v7532_v32 = vld [vmem:[%s7857_s22 + $0x210] sm:$0xff]  }
 0x1b8   : > { %6712 = vmatprep.mubr.msk.bf16.mxu1 %vm7670_vm6, %v7669_v58  ;;  %6781 = vmatpush3.bf16.msra.mxu1 %v7518_v28  ;;  %v2122_v28 = vrot.slane %v8294_v46, 5 }
 0x1b9   : > { %6782 = vmatprep.subr.bf16.mxu1 %v7669_v58 }
 0x1ba   : > { %6739 = vmatpush3.bf16.msra.mxu0 %v7515_v34  ;;  %v2123_v34 = vsel %vm2118_vm13, %v2120_v18, %v2122_v28  ;;  %v2521_v18 = vrot.slane %v2499_v26, 6 }
 0x1bb   : > { %6740 = vmatprep.subr.bf16.mxu0 %v7669_v58 }
 0x1bc   : > { %6783 = vmatpush3.bf16.msra.mxu1 %v7520_v38  ;;  %v2124_v38 = vrot.slane %v8313_v61, 5 }
 0x1bd   : > { %6669 = vmatmul.mubr.bf16.gmra.mrb[60].mxu0 %v8278_v42  ;;  %6784 = vmatprep.subr.bf16.mxu1 %v7669_v58  ;;  %v2524_v42 = vrot.slane %v8294_v46, 6 }
 0x1be   : > { %6713 = vmatmul.mubr.bf16.gmra.mrb[60].mxu1 %v8105_v30  ;;  %6672 = vmatprep.mubr.msk.bf16.mxu0 %vm7670_vm6, %v7669_v58  ;;  %v7525_v30 = vld [vmem:[%s7857_s22 + $0x1e0] sm:$0xff]  }
 0x1bf   : > { %6741 = vmatpush3.bf16.msra.mxu0 %v7516_v39  ;;  %6716 = vmatprep.mubr.msk.bf16.mxu1 %vm7670_vm6, %v7669_v58  ;;  %v7533_v39 = vld [vmem:[%s7857_s22 + $0x218] sm:$0xff]  }
 0x1c0   : > { %6742 = vmatprep.subr.bf16.mxu0 %v7669_v58  ;;  %6785 = vmatpush3.bf16.msra.mxu1 %v7521_v57  ;;  %v2125_v57 = vsel %vm2118_vm13, %v2122_v28, %v2124_v38 }
 0x1c1   : > { %6786 = vmatprep.subr.bf16.mxu1 %v7669_v58 }
 0x1c3   : > { %6743 = vmatpush3.bf16.msra.mxu0 %v7517_v50  ;;  %v2326_v50 = vrot.slane %v8066_v29, 5 }
 0x1c4   : > { %6744 = vmatprep.subr.bf16.mxu0 %v7669_v58  ;;  %6787 = vmatpush3.bf16.msra.mxu1 %v7523_v40  ;;  %v7534_v40 = vld [vmem:[%s7857_s22 + $0x220] sm:$0xff]  }
 0x1c5   : > { %6673 = vmatmul.mubr.bf16.gmra.mrb[64].mxu0 %v8294_v46  ;;  %6788 = vmatprep.subr.bf16.mxu1 %v7669_v58  ;;  %v2526_v46 = vrot.slane %v8313_v61, 6 }
 0x1c6   : > { %6717 = vmatmul.mubr.bf16.gmra.mrb[64].mxu1 %v8112_v63  ;;  %6676 = vmatprep.mubr.msk.bf16.mxu0 %vm7670_vm6, %v7669_v58  ;;  %v1923_v63 = vsel %vm1910_vm9, %v8082_v41, %v1922_v47  ;;  %v1924_v41 = vor.u32 %v1922_v47, %v8066_v29 }
 0x1c7   : > { %6720 = vmatprep.mubr.msk.bf16.mxu1 %vm7670_vm6, %v7669_v58  ;;  %6745 = vmatpush3.bf16.msra.mxu0 %v7519_v44  ;;  %v8377_v44 = vld [vmem:[#allocation2 + $0x28] sm:$0xff] }
 0x1c8   : > { %6746 = vmatprep.subr.bf16.mxu0 %v7669_v58  ;;  %6789 = vmatpush3.bf16.msra.mxu1 %v7525_v30  ;;  %v1926_v31 = vsel %vm1910_vm9, %v1924_v41, %v1925_v51  ;;  %v2126_v30 = vrot.slane %v8377_v44, 5  ;;  %v7537_v41 = vld [vmem:[%s7857_s22 + $0x238] sm:$0xff]  }
 0x1c9   : > { %6790 = vmatprep.subr.bf16.mxu1 %v7669_v58 }
 0x1ca   : > { %v2127_v47 = vsel %vm2118_vm13, %v2124_v38, %v2126_v30 }
 0x1cb   : > { %6747 = vmatpush3.bf16.msra.mxu0 %v7522_v17  ;;  %v7536_v17 = vld [vmem:[%s7857_s22 + $0x230] sm:$0xff]  }
 0x1cc   : > { %6748 = vmatprep.subr.bf16.mxu0 %v7669_v58  ;;  %6791 = vmatpush3.bf16.msra.mxu1 %v7526_v56  ;;  %v2093_v56 = vld [vmem:[#allocation2 + $0x38] sm:$0x7f] }
 0x1cd   : > { %6677 = vmatmul.mubr.bf16.gmra.mrb[68].mxu0 %v8313_v61  ;;  %6792 = vmatprep.subr.bf16.mxu1 %v7669_v58  ;;  %v2528_v61 = vrot.slane %v8377_v44, 6  ;;  %v2530_v44 = vrot.slane %v8180_v23, 6 }
 0x1ce   : > { %6721 = vmatmul.mubr.bf16.gmra.mrb[68].mxu1 %v1923_v63  ;;  %6680 = vmatprep.mubr.msk.bf16.mxu0 %vm7670_vm6, %v7669_v58  ;;  %v2128_v63 = vrot.slane %v8180_v23, 5 }
 0x1cf   : > { %6724 = vmatprep.mubr.msk.bf16.mxu1 %vm7670_vm6, %v7669_v58  ;;  %6749 = vmatpush3.bf16.msra.mxu0 %v7524_v21  ;;  %v2335_v21 = vshrl.u32 %v2093_v56, 16  ;;  %v2529_v26 = vsel %vm2520_vm14, %v2526_v46, %v2528_v61 }
 0x1d0   : > { %6750 = vmatprep.subr.bf16.mxu0 %v7669_v58  ;;  %6793 = vmatpush3.bf16.msra.mxu1 %v7528_v36  ;;  %v2338_v36 = vshll.u32 %v2093_v56, 16 }
 0x1d1   : > { %6794 = vmatprep.subr.bf16.mxu1 %v7669_v58 }
 0x1d3   : > { %6751 = vmatpush3.bf16.msra.mxu0 %v7527_v52  ;;  %v2337_v52 = vrot.slane %v2335_v21, 5 }
 0x1d4   : > { %6795 = vmatpush3.bf16.msra.mxu1 %v7529_v45  ;;  %6824 = vmatprep.subr.bf16.mxu0 %v7669_v58  ;;  %v2130_v45 = vrot.slane %v2093_v56, 5 }
 0x1d5   : > { %6681 = vmatmul.mubr.bf16.gmra.mrb[72].mxu0 %v8055_v19  ;;  %6868 = vmatprep.subr.bf16.mxu1 %v7669_v58  ;;  %v1933_v19 = vshrl.u32 %v1726_v53, 16 }
 0x1d6   : > { %6725 = vmatmul.mubr.bf16.gmra.mrb[72].mxu1 %v1926_v31  ;;  %6684 = vmatprep.mubr.msk.bf16.mxu0 %vm7670_vm6, %v7669_v58  ;;  %v2131_v54 = vsel %vm2118_vm13, %v2128_v63, %v2130_v45 }
 0x1d7   : > { %6728 = vmatprep.mubr.msk.bf16.mxu1 %vm7670_vm6, %v7669_v58  ;;  %v1935_v60 = vor.u32 %v1933_v19, %v1931_v55 }
 0x1dd   : > { %6685 = vmatmul.mubr.bf16.gmra.mrb[76].mxu0 %v8180_v23 }
 0x1de   : > { %6729 = vmatmul.mubr.bf16.gmra.mrb[76].mxu1 %v1932_v59  ;;  %6688 = vmatprep.mubr.msk.bf16.mxu0 %vm7670_vm6, %v7669_v58 }
 0x1df   : > { %6732 = vmatprep.mubr.msk.bf16.mxu1 %vm7670_vm6, %v7669_v58 }
 0x1e5   : > { %6689 = vmatmul.mubr.bf16.gmra.mrb[80].mxu0 %v1726_v53  ;;  %v2340_v53 = vrot.slane %v2338_v36, 6 }
 0x1e6   : > { %6733 = vmatmul.mubr.bf16.gmra.mrb[80].mxu1 %v1935_v60  ;;  %6752 = vmatprep.mubr.msk.bf16.mxu0 %vm7670_vm6, %v7669_v58 }
 0x1e7   : > { %6796 = vmatprep.mubr.msk.bf16.mxu1 %vm7670_vm6, %v7669_v58  ;;  %v2341_v31 = vor.u32 %v2340_v53, %v2337_v52 }
 0x1e9   : > { %v2342_v27 = vsel %vm2305_vm12, %v8208_v43, %v2341_v31 }
 0x1ed   : > { %6753 = vmatmul.mubr.bf16.vlgmr.msra.gmra.mrb[84].mxu0 %v2121_v37 }
 0x1ee   : > { %6825 = vmatpush3.bf16.msra.mxu0 %v7530_v24  ;;  %6797 = vmatmul.mubr.bf16.vlgmr.msra.gmra.mrb[84].mxu1 %v2317_v25 }
 0x1ef   : > { %6756 = vmatprep.mubr.msk.bf16.mxu0 %vm7670_vm6, %v7669_v58  ;;  %6826 = vmatprep.subr.bf16.mxu0 %v7669_v58 }
 0x1f0   : > { %6800 = vmatprep.mubr.msk.bf16.mxu1 %vm7670_vm6, %v7669_v58 }
 0x1f2   : > { %6827 = vmatpush3.bf16.msra.mxu0 %v7531_v33 }
 0x1f3   : > { %6828 = vmatprep.subr.bf16.mxu0 %v7669_v58 }
 0x1f5   : > { %6757 = vmatmul.mubr.bf16.gmra.mrb[88].mxu0 %v2123_v34 }
 0x1f6   : > { %6801 = vmatmul.mubr.bf16.gmra.mrb[88].mxu1 %v8150_v48  ;;  %6760 = vmatprep.mubr.msk.bf16.mxu0 %vm7670_vm6, %v7669_v58  ;;  %v2327_v48 = vrot.slane %v8074_v35, 6  ;;  %v7535_v35 = vld [vmem:[%s7857_s22 + $0x228] sm:$0xff]  }
 0x1f7   : > { %6829 = vmatpush3.bf16.msra.mxu0 %v7532_v32  ;;  %6804 = vmatprep.mubr.msk.bf16.mxu1 %vm7670_vm6, %v7669_v58  ;;  %v2523_v32 = vsel %vm2520_vm14, %v2521_v18, %v2522_v20 }
 0x1f8   : > { %6830 = vmatprep.subr.bf16.mxu0 %v7669_v58  ;;  %v2328_v29 = vor.u32 %v2327_v48, %v2326_v50 }
 0x1fa   : > { %v2333_v51 = vsel %vm2305_vm12, %v2328_v29, %v8208_v43 }
 0x1fb   : > { %6831 = vmatpush3.bf16.msra.mxu0 %v7533_v39 }
 0x1fc   : > { %6832 = vmatprep.subr.bf16.mxu0 %v7669_v58 }
 0x1fd   : > { %6761 = vmatmul.mubr.bf16.gmra.mrb[92].mxu0 %v2125_v57 }
 0x1fe   : > { %6805 = vmatmul.mubr.bf16.gmra.mrb[92].mxu1 %v8169_v15  ;;  %6764 = vmatprep.mubr.msk.bf16.mxu0 %vm7670_vm6, %v7669_v58  ;;  %v2329_v15 = vsel %vm2305_vm12, %v8159_v22, %v2328_v29  ;;  %v2129_v22 = vsel %vm2118_vm13, %v2126_v30, %v2128_v63 }
 0x1ff   : > { %6808 = vmatprep.mubr.msk.bf16.mxu1 %vm7670_vm6, %v7669_v58  ;;  %6833 = vmatpush3.bf16.msra.mxu0 %v7534_v40 }
 0x200   : > { %6834 = vmatprep.subr.bf16.mxu0 %v7669_v58 }
 0x203   : > { %6835 = vmatpush3.bf16.msra.mxu0 %v7535_v35 }
 0x204   : > { %6836 = vmatprep.subr.bf16.mxu0 %v7669_v58 }
 0x205   : > { %6765 = vmatmul.mubr.bf16.gmra.mrb[96].mxu0 %v2127_v47 }
 0x206   : > { %6809 = vmatmul.mubr.bf16.gmra.mrb[96].mxu1 %v2329_v15  ;;  %6768 = vmatprep.mubr.msk.bf16.mxu0 %vm7670_vm6, %v7669_v58  ;;  %v2525_v15 = vsel %vm2520_vm14, %v2522_v20, %v2524_v42 }
 0x207   : > { %6812 = vmatprep.mubr.msk.bf16.mxu1 %vm7670_vm6, %v7669_v58  ;;  %6837 = vmatpush3.bf16.msra.mxu0 %v7536_v17 }
 0x208   : > { %6838 = vmatprep.subr.bf16.mxu0 %v7669_v58 }
 0x20b   : > { %6839 = vmatpush3.bf16.msra.mxu0 %v7537_v41 }
 0x20c   : > { %6912 = vmatprep.subr.bf16.mxu0 %v7669_v58 }
 0x20d   : > { %6769 = vmatmul.mubr.bf16.gmra.mrb[100].mxu0 %v2129_v22 }
 0x20e   : > { %6813 = vmatmul.mubr.bf16.gmra.mrb[100].mxu1 %v2333_v51  ;;  %6772 = vmatprep.mubr.msk.bf16.mxu0 %vm7670_vm6, %v7669_v58 }
 0x20f   : > { %6816 = vmatprep.mubr.msk.bf16.mxu1 %vm7670_vm6, %v7669_v58 }
 0x215   : > { %6773 = vmatmul.mubr.bf16.gmra.mrb[104].mxu0 %v2131_v54 }
 0x216   : > { %6817 = vmatmul.mubr.bf16.gmra.mrb[104].mxu1 %v2342_v27  ;;  %6776 = vmatprep.mubr.msk.bf16.mxu0 %vm7670_vm6, %v7669_v58 }
 0x217   : > { %6820 = vmatprep.mubr.msk.bf16.mxu1 %vm7670_vm6, %v7669_v58 }
 0x218   : > { %v1075_v55 = vpop.f32.mrb[0].mxu0 }
 0x219   : > { %v1239_v59 = vpop.f32.mrb[0].mxu1  ;;  %v6490_v62 = vpop.f32.mrb[1].mxu0 }
 0x21a   : > { %v8411_v19 = vadd.f32 %v1239_v59, %v1075_v55  ;;  %v6534_v13 = vpop.f32.mrb[1].mxu1  ;;  %v1078_v14 = vpop.f32.mrb[2].mxu0 }
 0x21b   : > { %v1242_v60 = vpop.f32.mrb[2].mxu1  ;;  %v6491_v16 = vpop.f32.mrb[3].mxu0 }
 0x21c   : > { %v8413_v49 = vadd.f32 %v1242_v60, %v1078_v14  ;;  %v6535_v43 = vpop.f32.mrb[3].mxu1 }
 0x21d   : > { %6777 = vmatmul.mubr.bf16.gmra.mrb[108].mxu0 %v2130_v45  ;;  %v2527_v45 = vsel %vm2520_vm14, %v2524_v42, %v2526_v46 }
 0x21e   : > { %6821 = vmatmul.mubr.bf16.gmra.mrb[108].mxu1 %v2341_v31  ;;  %6840 = vmatprep.mubr.msk.bf16.mxu0 %vm7670_vm6, %v7669_v58 }
 0x21f   : > { %6884 = vmatprep.mubr.msk.bf16.mxu1 %vm7670_vm6, %v7669_v58 }
 0x220   : > { %v1083_v37 = vpop.f32.mrb[4].mxu0 }
 0x221   : > { %v1247_v24 = vpop.f32.mrb[4].mxu1  ;;  %v6494_v25 = vpop.f32.mrb[5].mxu0 }
 0x222   : > { %v8420_v28 = vadd.f32 %v1247_v24, %v1083_v37  ;;  %v6538_v33 = vpop.f32.mrb[5].mxu1  ;;  %v1086_v34 = vpop.f32.mrb[6].mxu0 }
 0x223   : > { %v1250_v38 = vpop.f32.mrb[6].mxu1  ;;  %v6495_v39 = vpop.f32.mrb[7].mxu0 }
 0x224   : > { %v8423_v57 = vadd.f32 %v1250_v38, %v1086_v34  ;;  %v6539_v50 = vpop.f32.mrb[7].mxu1  ;;  %v2531_v39 = vsel %vm2520_vm14, %v2528_v61, %v2530_v44 }
 0x225   : > { %6841 = vmatmul.mubr.bf16.vlgmr.msra.gmra.mrb[112].mxu0 %v2523_v32 }
 0x226   : > { %6844 = vmatprep.mubr.msk.bf16.mxu0 %vm7670_vm6, %v7669_v58 }
 0x228   : > { %v1091_v48 = vpop.f32.mrb[8].mxu0 }
 0x229   : > { %v1255_v40 = vpop.f32.mrb[8].mxu1  ;;  %v6498_v30 = vpop.f32.mrb[9].mxu0 }
 0x22a   : > { %v8428_v29 = vadd.f32 %v1255_v40, %v1091_v48  ;;  %v6542_v35 = vpop.f32.mrb[9].mxu1  ;;  %v1094_v47 = vpop.f32.mrb[10].mxu0  ;;  %v2500_v48 = vld [vmem:[#allocation2 + $0x38] sm:$0xff] }
 0x22b   : > { %v1258_v17 = vpop.f32.mrb[10].mxu1  ;;  %v6499_v56 = vpop.f32.mrb[11].mxu0  ;;  %v2532_v23 = vrot.slane %v2500_v48, 6 }
 0x22c   : > { %v8431_v63 = vadd.f32 %v1258_v17, %v1094_v47  ;;  %v6543_v21 = vpop.f32.mrb[11].mxu1 }
 0x22d   : > { %6845 = vmatmul.mubr.bf16.gmra.mrb[116].mxu0 %v2525_v15  ;;  %v2533_v21 = vsel %vm2520_vm14, %v2530_v44, %v2532_v23 }
 0x22e   : > { %6848 = vmatprep.mubr.msk.bf16.mxu0 %vm7670_vm6, %v7669_v58 }
 0x230   : > { %v1099_v36 = vpop.f32.mrb[12].mxu0 }
 0x231   : > { %v1263_v41 = vpop.f32.mrb[12].mxu1  ;;  %v6502_v22 = vpop.f32.mrb[13].mxu0 }
 0x232   : > { %v8436_v51 = vadd.f32 %v1263_v41, %v1099_v36  ;;  %v6546_v52 = vpop.f32.mrb[13].mxu1  ;;  %v1102_v53 = vpop.f32.mrb[14].mxu0 }
 0x233   : > { %v1266_v31 = vpop.f32.mrb[14].mxu1  ;;  %v6503_v54 = vpop.f32.mrb[15].mxu0 }
 0x234   : > { %v8439_v27 = vadd.f32 %v1266_v31, %v1102_v53  ;;  %v6547_v55 = vpop.f32.mrb[15].mxu1 }
 0x235   : > { %6849 = vmatmul.mubr.bf16.gmra.mrb[120].mxu0 %v2527_v45 }
 0x236   : > { %6852 = vmatprep.mubr.msk.bf16.mxu0 %vm7670_vm6, %v7669_v58 }
 0x238   : > { %v1107_v59 = vpop.f32.mrb[16].mxu0 }
 0x239   : > { %v1271_v62 = vpop.f32.mrb[16].mxu1  ;;  %v6506_v13 = vpop.f32.mrb[17].mxu0 }
 0x23a   : > { %v8444_v14 = vadd.f32 %v1271_v62, %v1107_v59  ;;  %v6550_v60 = vpop.f32.mrb[17].mxu1  ;;  %v1110_v16 = vpop.f32.mrb[18].mxu0 }
 0x23b   : > { %v1274_v43 = vpop.f32.mrb[18].mxu1  ;;  %v6507_v18 = vpop.f32.mrb[19].mxu0 }
 0x23c   : > { %v8447_v20 = vadd.f32 %v1274_v43, %v1110_v16  ;;  %v6551_v37 = vpop.f32.mrb[19].mxu1 }
 0x23d   : > { %6853 = vmatmul.mubr.bf16.gmra.mrb[124].mxu0 %v2529_v26 }
 0x23e   : > { %6856 = vmatprep.mubr.msk.bf16.mxu0 %vm7670_vm6, %v7669_v58 }
 0x240   : > { %v1115_v24 = vpop.f32.mrb[20].mxu0 }
 0x241   : > { %v1279_v25 = vpop.f32.mrb[20].mxu1  ;;  %v6510_v33 = vpop.f32.mrb[21].mxu0 }
 0x242   : > { %v8452_v34 = vadd.f32 %v1279_v25, %v1115_v24  ;;  %v6554_v32 = vpop.f32.mrb[21].mxu1  ;;  %v1118_v38 = vpop.f32.mrb[22].mxu0 }
 0x243   : > { %v1282_v50 = vpop.f32.mrb[22].mxu1  ;;  %v6511_v42 = vpop.f32.mrb[23].mxu0 }
 0x244   : > { %v8455_v40 = vadd.f32 %v1282_v50, %v1118_v38  ;;  %v6555_v30 = vpop.f32.mrb[23].mxu1 }
 0x245   : > { %6857 = vmatmul.mubr.bf16.gmra.mrb[128].mxu0 %v2531_v39  ;;  %v7538_v39 = vld [vmem:[%s7857_s22 + $0x280] sm:$0xff]  }
 0x246   : > { %6860 = vmatprep.mubr.msk.bf16.mxu0 %vm7670_vm6, %v7669_v58  ;;  %6869 = vmatpush3.bf16.msra.mxu1 %v7538_v39 }
 0x247   : > { %6870 = vmatprep.subr.bf16.mxu1 %v7669_v58 }
 0x248   : > { %v1123_v35 = vpop.f32.mrb[24].mxu0 }
 0x249   : > { %v6514_v47 = vpop.f32.mrb[25].mxu0  ;;  %v1287_v15 = vpop.f32.mrb[24].mxu1 }
 0x24a   : > { %v8459_v17 = vadd.f32 %v1287_v15, %v1123_v35  ;;  %v1126_v56 = vpop.f32.mrb[26].mxu0  ;;  %v6558_v46 = vpop.f32.mrb[25].mxu1 }
 0x24b   : > { %v6515_v36 = vpop.f32.mrb[27].mxu0  ;;  %v1290_v41 = vpop.f32.mrb[26].mxu1  ;;  %v7539_v46 = vld [vmem:[%s7857_s22 + $0x288] sm:$0xff]  }
 0x24c   : > { %v6559_v22 = vpop.f32.mrb[27].mxu1  ;;  %6871 = vmatpush3.bf16.msra.mxu1 %v7539_v46 }
 0x24d   : > { %6861 = vmatmul.mubr.bf16.gmra.mrb[132].mxu0 %v2533_v21  ;;  %6872 = vmatprep.subr.bf16.mxu1 %v7669_v58 }
 0x24e   : > { %6864 = vmatprep.mubr.msk.bf16.mxu0 %vm7670_vm6, %v7669_v58 }
 0x250   : > { %v1417_v52 = vpop.f32.mrb[28].mxu0 }
 0x251   : > { %v1471_v53 = vadd.f32 %v1417_v52, %v8411_v19  ;;  %v6578_v45 = vpop.f32.mrb[29].mxu0  ;;  %v1659_v31 = vpop.f32.mrb[28].mxu1 }
 0x252   : > { %v1420_v54 = vpop.f32.mrb[30].mxu0  ;;  %v6622_v55 = vpop.f32.mrb[29].mxu1 }
 0x253   : > { %v1472_v61 = vadd.f32 %v1420_v54, %v8413_v49  ;;  %v8466_v59 = vadd.f32 %v1659_v31, %v1471_v53  ;;  %v6579_v62 = vpop.f32.mrb[31].mxu0  ;;  %v1662_v13 = vpop.f32.mrb[30].mxu1 }
 0x254   : > { %v6623_v60 = vpop.f32.mrb[31].mxu1 }
 0x255   : > { %v8468_v16 = vadd.f32 %v1662_v13, %v1472_v61  ;;  %6865 = vmatmul.mubr.bf16.gmra.mrb[136].mxu0 %v2532_v23  ;;  %v7540_v61 = vld [vmem:[%s7857_s22 + $0x290] sm:$0xff]   ;;  %v7543_v13 = vld [vmem:[%s7857_s22 + $0x248] sm:$0xff]  }
 0x256   : > { %6928 = vmatprep.mubr.msk.bf16.mxu0 %vm7670_vm6, %v7669_v58  ;;  %6873 = vmatpush3.bf16.msra.mxu1 %v7540_v61 }
 0x257   : > { %6874 = vmatprep.subr.bf16.mxu1 %v7669_v58 }
 0x258   : > { %v1425_v26 = vpop.f32.mrb[32].mxu0 }
 0x259   : > { %v1473_v19 = vadd.f32 %v1425_v26, %v8420_v28  ;;  %v6582_v43 = vpop.f32.mrb[33].mxu0  ;;  %v1667_v18 = vpop.f32.mrb[32].mxu1 }
 0x25a   : > { %v1428_v37 = vpop.f32.mrb[34].mxu0  ;;  %v6626_v44 = vpop.f32.mrb[33].mxu1 }
 0x25b   : > { %v1474_v49 = vadd.f32 %v1428_v37, %v8423_v57  ;;  %v8474_v24 = vadd.f32 %v1667_v18, %v1473_v19  ;;  %v6583_v25 = vpop.f32.mrb[35].mxu0  ;;  %v1670_v33 = vpop.f32.mrb[34].mxu1 }
 0x25c   : > { %v6627_v32 = vpop.f32.mrb[35].mxu1 }
 0x25d   : > { %v8476_v38 = vadd.f32 %v1670_v33, %v1474_v49  ;;  %v7542_v32 = vld [vmem:[%s7857_s22 + $0x298] sm:$0xff]  }
 0x25e   : > { %6875 = vmatpush3.bf16.msra.mxu1 %v7542_v32 }
 0x25f   : > { %6876 = vmatprep.subr.bf16.mxu1 %v7669_v58 }
 0x260   : > { %v1433_v50 = vpop.f32.mrb[36].mxu0 }
 0x261   : > { %v1475_v28 = vadd.f32 %v1433_v50, %v8428_v29  ;;  %v6586_v42 = vpop.f32.mrb[37].mxu0  ;;  %v1675_v48 = vpop.f32.mrb[36].mxu1  ;;  %v7541_v29 = vld [vmem:[%s7857_s22 + $0x240] sm:$0xff]   ;;  %v7546_v50 = vld [vmem:[%s7857_s22 + $0x258] sm:$0xff]  }
 0x262   : > { %v1436_v30 = vpop.f32.mrb[38].mxu0  ;;  %v6630_v57 = vpop.f32.mrb[37].mxu1  ;;  %6913 = vmatpush3.bf16.msra.mxu0 %v7541_v29  ;;  %v7544_v29 = vld [vmem:[%s7857_s22 + $0x2a0] sm:$0xff]  }
 0x263   : > { %v1476_v23 = vadd.f32 %v1436_v30, %v8431_v63  ;;  %v8482_v35 = vadd.f32 %v1675_v48, %v1475_v28  ;;  %v6587_v47 = vpop.f32.mrb[39].mxu0  ;;  %v1678_v15 = vpop.f32.mrb[38].mxu1  ;;  %6914 = vmatprep.subr.bf16.mxu0 %v7669_v58  ;;  %6877 = vmatpush3.bf16.msra.mxu1 %v7544_v29 }
 0x264   : > { %v6631_v56 = vpop.f32.mrb[39].mxu1  ;;  %6878 = vmatprep.subr.bf16.mxu1 %v7669_v58 }
 0x265   : > { %v8484_v21 = vadd.f32 %v1678_v15, %v1476_v23 }
 0x266   : > { %6915 = vmatpush3.bf16.msra.mxu0 %v7543_v13 }
 0x267   : > { %6916 = vmatprep.subr.bf16.mxu0 %v7669_v58 }
 0x268   : > { %v1441_v36 = vpop.f32.mrb[40].mxu0 }
 0x269   : > { %v1477_v41 = vadd.f32 %v1441_v36, %v8436_v51  ;;  %v6590_v22 = vpop.f32.mrb[41].mxu0  ;;  %v1683_v52 = vpop.f32.mrb[40].mxu1 }
 0x26a   : > { %v1444_v63 = vpop.f32.mrb[42].mxu0  ;;  %v6634_v53 = vpop.f32.mrb[41].mxu1 }
 0x26b   : > { %v1478_v45 = vadd.f32 %v1444_v63, %v8439_v27  ;;  %v8491_v31 = vadd.f32 %v1683_v52, %v1477_v41  ;;  %v6591_v54 = vpop.f32.mrb[43].mxu0  ;;  %v1686_v55 = vpop.f32.mrb[42].mxu1  ;;  %v7545_v27 = vld [vmem:[%s7857_s22 + $0x250] sm:$0xff]   ;;  %v7549_v41 = vld [vmem:[%s7857_s22 + $0x268] sm:$0xff]  }
 0x26c   : > { %v6635_v62 = vpop.f32.mrb[43].mxu1  ;;  %6917 = vmatpush3.bf16.msra.mxu0 %v7545_v27  ;;  %v7551_v52 = vld [vmem:[%s7857_s22 + $0x270] sm:$0xff]  }
 0x26d   : > { %v8496_v60 = vadd.f32 %v1686_v55, %v1478_v45  ;;  %6918 = vmatprep.subr.bf16.mxu0 %v7669_v58  ;;  %v7550_v27 = vld [vmem:[%s7857_s22 + $0x2b0] sm:$0xff]  }
 0x270   : > { %v1449_v51 = vpop.f32.mrb[44].mxu0  ;;  %6919 = vmatpush3.bf16.msra.mxu0 %v7546_v50 }
 0x271   : > { %v1479_v26 = vadd.f32 %v1449_v51, %v8444_v14  ;;  %v6594_v19 = vpop.f32.mrb[45].mxu0  ;;  %v1691_v43 = vpop.f32.mrb[44].mxu1  ;;  %6920 = vmatprep.subr.bf16.mxu0 %v7669_v58 }
 0x272   : > { %v1452_v18 = vpop.f32.mrb[46].mxu0  ;;  %v6638_v37 = vpop.f32.mrb[45].mxu1  ;;  %v7553_v19 = vld [vmem:[%s7857_s22 + $0x2b8] sm:$0xff]  }
 0x273   : > { %v1480_v44 = vadd.f32 %v1452_v18, %v8447_v20  ;;  %v8503_v49 = vadd.f32 %v1691_v43, %v1479_v26  ;;  %v6595_v25 = vpop.f32.mrb[47].mxu0  ;;  %v1694_v33 = vpop.f32.mrb[46].mxu1  ;;  %v7548_v20 = vld [vmem:[%s7857_s22 + $0x260] sm:$0xff]   ;;  %v7552_v26 = vld [vmem:[%s7857_s22 + $0x278] sm:$0xff]  }
 0x274   : > { %v6639_v39 = vpop.f32.mrb[47].mxu1  ;;  %6921 = vmatpush3.bf16.msra.mxu0 %v7548_v20 }
 0x275   : > { %v8508_v28 = vadd.f32 %v1694_v33, %v1480_v44  ;;  %6922 = vmatprep.subr.bf16.mxu0 %v7669_v58 }
 0x278   : > { %v1457_v14 = vpop.f32.mrb[48].mxu0  ;;  %6923 = vmatpush3.bf16.msra.mxu0 %v7549_v41 }
 0x279   : > { %v1481_v42 = vadd.f32 %v1457_v14, %v8452_v34  ;;  %v6598_v48 = vpop.f32.mrb[49].mxu0  ;;  %v1699_v30 = vpop.f32.mrb[48].mxu1  ;;  %6924 = vmatprep.subr.bf16.mxu0 %v7669_v58 }
 0x27a   : > { %v1460_v57 = vpop.f32.mrb[50].mxu0  ;;  %v6642_v23 = vpop.f32.mrb[49].mxu1 }
 0x27b   : > { %v1482_v47 = vadd.f32 %v1460_v57, %v8455_v40  ;;  %v8515_v15 = vadd.f32 %v1699_v30, %v1481_v42  ;;  %v6599_v56 = vpop.f32.mrb[51].mxu0  ;;  %v1702_v46 = vpop.f32.mrb[50].mxu1  ;;  %v7547_v40 = vld [vmem:[%s7857_s22 + $0x2a8] sm:$0xff]  }
 0x27c   : > { %v6643_v36 = vpop.f32.mrb[51].mxu1  ;;  %6879 = vmatpush3.bf16.msra.mxu1 %v7547_v40  ;;  %6925 = vmatpush3.bf16.msra.mxu0 %v7551_v52 }
 0x27d   : > { %v8520_v22 = vadd.f32 %v1702_v46, %v1482_v47  ;;  %6880 = vmatprep.subr.bf16.mxu1 %v7669_v58  ;;  %6926 = vmatprep.subr.bf16.mxu0 %v7669_v58 }
 0x280   : > { %v1465_v34 = vpop.f32.mrb[52].mxu0  ;;  %6881 = vmatpush3.bf16.msra.mxu1 %v7550_v27  ;;  %6927 = vmatpush3.bf16.msra.mxu0 %v7552_v26 }
 0x281   : > { %v1483_v63 = vadd.f32 %v1465_v34, %v8459_v17  ;;  %v6602_v53 = vpop.f32.mrb[53].mxu0  ;;  %v1707_v45 = vpop.f32.mrb[52].mxu1  ;;  %6882 = vmatprep.subr.bf16.mxu1 %v7669_v58  ;;  %7000 = vmatprep.subr.bf16.mxu0 %v7669_v58 }
 0x282   : > { %v1468_v54 = vpop.f32.mrb[54].mxu0  ;;  %v6646_v55 = vpop.f32.mrb[53].mxu1 }
 0x283   : > { %v8527_v61 = vadd.f32 %v1707_v45, %v1483_v63  ;;  %v6603_v62 = vpop.f32.mrb[55].mxu0  ;;  %v1710_v13 = vpop.f32.mrb[54].mxu1 }
 0x284   : > { %v6647_v51 = vpop.f32.mrb[55].mxu1  ;;  %6883 = vmatpush3.bf16.msra.mxu1 %v7553_v19 }
 0x285   : > { %6956 = vmatprep.subr.bf16.mxu1 %v7669_v58 }
 0x288   : > { %v1826_v17 = vpop.f32.mrb[56].mxu0 }
 0x289   : > { %v1880_v43 = vadd.f32 %v1826_v17, %v8466_v59  ;;  %v6666_v18 = vpop.f32.mrb[57].mxu0  ;;  %v2025_v37 = vpop.f32.mrb[56].mxu1 }
 0x28a   : > { %v1829_v44 = vpop.f32.mrb[58].mxu0  ;;  %v6710_v25 = vpop.f32.mrb[57].mxu1 }
 0x28b   : > { %v1881_v33 = vadd.f32 %v1829_v44, %v8468_v16  ;;  %v8538_v32 = vadd.f32 %v2025_v37, %v1880_v43  ;;  %v6667_v39 = vpop.f32.mrb[59].mxu0  ;;  %v2028_v50 = vpop.f32.mrb[58].mxu1 }
 0x28c   : > { %v6711_v14 = vpop.f32.mrb[59].mxu1 }
 0x28d   : > { %v8541_v20 = vadd.f32 %v2028_v50, %v1881_v33 }
 0x290   : > { %v1834_v42 = vpop.f32.mrb[60].mxu0 }
 0x291   : > { %v1882_v48 = vadd.f32 %v1834_v42, %v8474_v24  ;;  %v6670_v59 = vpop.f32.mrb[61].mxu0  ;;  %v2033_v30 = vpop.f32.mrb[60].mxu1 }
 0x292   : > { %v1837_v57 = vpop.f32.mrb[62].mxu0  ;;  %v6714_v23 = vpop.f32.mrb[61].mxu1 }
 0x293   : > { %v1883_v47 = vadd.f32 %v1837_v57, %v8476_v38  ;;  %v8545_v56 = vadd.f32 %v2033_v30, %v1882_v48  ;;  %v6671_v16 = vpop.f32.mrb[63].mxu0  ;;  %v2036_v46 = vpop.f32.mrb[62].mxu1 }
 0x294   : > { %v6715_v36 = vpop.f32.mrb[63].mxu1 }
 0x295   : > { %v8547_v29 = vadd.f32 %v2036_v46, %v1883_v47 }
 0x298   : > { %v1842_v41 = vpop.f32.mrb[64].mxu0 }
 0x299   : > { %v1884_v34 = vadd.f32 %v1842_v41, %v8482_v35  ;;  %v6674_v40 = vpop.f32.mrb[65].mxu0  ;;  %v2041_v52 = vpop.f32.mrb[64].mxu1 }
 0x29a   : > { %v1845_v63 = vpop.f32.mrb[66].mxu0  ;;  %v6718_v24 = vpop.f32.mrb[65].mxu1 }
 0x29b   : > { %v1885_v53 = vadd.f32 %v1845_v63, %v8484_v21  ;;  %v8551_v45 = vadd.f32 %v2041_v52, %v1884_v34  ;;  %v6675_v54 = vpop.f32.mrb[67].mxu0  ;;  %v2044_v38 = vpop.f32.mrb[66].mxu1 }
 0x29c   : > { %v6719_v55 = vpop.f32.mrb[67].mxu1 }
 0x29d   : > { %v8553_v62 = vadd.f32 %v2044_v38, %v1885_v53 }
 0x2a0   : > { %v1850_v13 = vpop.f32.mrb[68].mxu0 }
 0x2a1   : > { %v1886_v51 = vadd.f32 %v1850_v13, %v8491_v31  ;;  %v6678_v27 = vpop.f32.mrb[69].mxu0  ;;  %v2049_v26 = vpop.f32.mrb[68].mxu1 }
 0x2a2   : > { %v1853_v17 = vpop.f32.mrb[70].mxu0  ;;  %v6722_v35 = vpop.f32.mrb[69].mxu1 }
 0x2a3   : > { %v1887_v19 = vadd.f32 %v1853_v17, %v8496_v60  ;;  %v8557_v43 = vadd.f32 %v2049_v26, %v1886_v51  ;;  %v6679_v18 = vpop.f32.mrb[71].mxu0  ;;  %v2052_v21 = vpop.f32.mrb[70].mxu1 }
 0x2a4   : > { %v6723_v37 = vpop.f32.mrb[71].mxu1 }
 0x2a5   : > { %v8559_v44 = vadd.f32 %v2052_v21, %v1887_v19 }
 0x2a8   : > { %v1858_v25 = vpop.f32.mrb[72].mxu0 }
 0x2a9   : > { %v1888_v33 = vadd.f32 %v1858_v25, %v8503_v49  ;;  %v6682_v39 = vpop.f32.mrb[73].mxu0  ;;  %v2057_v50 = vpop.f32.mrb[72].mxu1 }
 0x2aa   : > { %v1861_v14 = vpop.f32.mrb[74].mxu0  ;;  %v6726_v31 = vpop.f32.mrb[73].mxu1 }
 0x2ab   : > { %v1889_v42 = vadd.f32 %v1861_v14, %v8508_v28  ;;  %v8563_v48 = vadd.f32 %v2057_v50, %v1888_v33  ;;  %v6683_v59 = vpop.f32.mrb[75].mxu0  ;;  %v2060_v60 = vpop.f32.mrb[74].mxu1 }
 0x2ac   : > { %v6727_v30 = vpop.f32.mrb[75].mxu1 }
 0x2ad   : > { %v8565_v57 = vadd.f32 %v2060_v60, %v1889_v42 }
 0x2b0   : > { %v1866_v23 = vpop.f32.mrb[76].mxu0 }
 0x2b1   : > { %v1890_v47 = vadd.f32 %v1866_v23, %v8515_v15  ;;  %v6686_v16 = vpop.f32.mrb[77].mxu0  ;;  %v2065_v46 = vpop.f32.mrb[76].mxu1 }
 0x2b2   : > { %v1869_v36 = vpop.f32.mrb[78].mxu0  ;;  %v6730_v49 = vpop.f32.mrb[77].mxu1 }
 0x2b3   : > { %v1891_v41 = vadd.f32 %v1869_v36, %v8520_v22  ;;  %v8569_v34 = vadd.f32 %v2065_v46, %v1890_v47  ;;  %v6687_v40 = vpop.f32.mrb[79].mxu0  ;;  %v2068_v28 = vpop.f32.mrb[78].mxu1 }
 0x2b4   : > { %v6731_v52 = vpop.f32.mrb[79].mxu1 }
 0x2b5   : > { %v8571_v63 = vadd.f32 %v2068_v28, %v1891_v41 }
 0x2b8   : > { %v1874_v24 = vpop.f32.mrb[80].mxu0 }
 0x2b9   : > { %v1892_v53 = vadd.f32 %v1874_v24, %v8527_v61  ;;  %v6690_v54 = vpop.f32.mrb[81].mxu0  ;;  %v2073_v38 = vpop.f32.mrb[80].mxu1 }
 0x2ba   : > { %v1877_v55 = vpop.f32.mrb[82].mxu0  ;;  %v6734_v15 = vpop.f32.mrb[81].mxu1 }
 0x2bb   : > { %v8574_v13 = vadd.f32 %v2073_v38, %v1892_v53  ;;  %v6691_v51 = vpop.f32.mrb[83].mxu0  ;;  %v2076_v27 = vpop.f32.mrb[82].mxu1 }
 0x2bc   : > { %v6735_v26 = vpop.f32.mrb[83].mxu1 }
 0x2c0   : > { %v2221_v22 = vpop.f32.mrb[84].mxu0 }
 0x2c1   : > { %v2275_v17 = vadd.f32 %v2221_v22, %v8538_v32  ;;  %v6754_v35 = vpop.f32.mrb[85].mxu0  ;;  %v2432_v19 = vpop.f32.mrb[84].mxu1 }
 0x2c2   : > { %v2224_v18 = vpop.f32.mrb[86].mxu0  ;;  %v6798_v21 = vpop.f32.mrb[85].mxu1 }
 0x2c3   : > { %v2276_v37 = vadd.f32 %v2224_v18, %v8541_v20  ;;  %v8578_v25 = vadd.f32 %v2432_v19, %v2275_v17  ;;  %v6755_v61 = vpop.f32.mrb[87].mxu0  ;;  %v2435_v33 = vpop.f32.mrb[86].mxu1 }
 0x2c4   : > { %v6799_v39 = vpop.f32.mrb[87].mxu1 }
 0x2c5   : > { %v8580_v50 = vadd.f32 %v2435_v33, %v2276_v37 }
 0x2c8   : > { %v2229_v14 = vpop.f32.mrb[88].mxu0 }
 0x2c9   : > { %v2277_v31 = vadd.f32 %v2229_v14, %v8545_v56  ;;  %v6758_v42 = vpop.f32.mrb[89].mxu0  ;;  %v2440_v59 = vpop.f32.mrb[88].mxu1 }
 0x2ca   : > { %v2232_v60 = vpop.f32.mrb[90].mxu0  ;;  %v6802_v32 = vpop.f32.mrb[89].mxu1 }
 0x2cb   : > { %v2278_v30 = vadd.f32 %v2232_v60, %v8547_v29  ;;  %v8584_v23 = vadd.f32 %v2440_v59, %v2277_v31  ;;  %v6759_v47 = vpop.f32.mrb[91].mxu0  ;;  %v2443_v20 = vpop.f32.mrb[90].mxu1 }
 0x2cc   : > { %v6803_v16 = vpop.f32.mrb[91].mxu1 }
 0x2cd   : > { %v8586_v46 = vadd.f32 %v2443_v20, %v2278_v30 }
 0x2d0   : > { %v2237_v36 = vpop.f32.mrb[92].mxu0 }
 0x2d1   : > { %v2279_v49 = vadd.f32 %v2237_v36, %v8551_v45  ;;  %v6762_v41 = vpop.f32.mrb[93].mxu0  ;;  %v2448_v40 = vpop.f32.mrb[92].mxu1 }
 0x2d2   : > { %v2240_v28 = vpop.f32.mrb[94].mxu0  ;;  %v6806_v56 = vpop.f32.mrb[93].mxu1 }
 0x2d3   : > { %v2280_v52 = vadd.f32 %v2240_v28, %v8553_v62  ;;  %v8590_v24 = vadd.f32 %v2448_v40, %v2279_v49  ;;  %v6763_v53 = vpop.f32.mrb[95].mxu0  ;;  %v2451_v29 = vpop.f32.mrb[94].mxu1 }
 0x2d4   : > { %v6807_v54 = vpop.f32.mrb[95].mxu1 }
 0x2d5   : > { %v8592_v38 = vadd.f32 %v2451_v29, %v2280_v52 }
 0x2d8   : > { %v2245_v55 = vpop.f32.mrb[96].mxu0 }
 0x2d9   : > { %v2281_v15 = vadd.f32 %v2245_v55, %v8557_v43  ;;  %v6766_v51 = vpop.f32.mrb[97].mxu0  ;;  %v2456_v27 = vpop.f32.mrb[96].mxu1 }
 0x2da   : > { %v2248_v26 = vpop.f32.mrb[98].mxu0  ;;  %v6810_v45 = vpop.f32.mrb[97].mxu1 }
 0x2db   : > { %v2282_v22 = vadd.f32 %v2248_v26, %v8559_v44  ;;  %v8596_v17 = vadd.f32 %v2456_v27, %v2281_v15  ;;  %v6767_v35 = vpop.f32.mrb[99].mxu0  ;;  %v2459_v62 = vpop.f32.mrb[98].mxu1  ;;  %v8616_v26 = vld [vmem:[%s7852_s24] ss:$0 sm:$0xff] }
 0x2dc   : > { %v6811_v19 = vpop.f32.mrb[99].mxu1 }
 0x2dd   : > { %v8598_v18 = vadd.f32 %v2459_v62, %v2282_v22 }
 0x2e0   : > { %v2253_v21 = vpop.f32.mrb[100].mxu0 }
 0x2e1   : > { %v2283_v37 = vadd.f32 %v2253_v21, %v8563_v48  ;;  %v6770_v61 = vpop.f32.mrb[101].mxu0  ;;  %v2464_v33 = vpop.f32.mrb[100].mxu1 }
 0x2e2   : > { %v2256_v39 = vpop.f32.mrb[102].mxu0  ;;  %v6814_v43 = vpop.f32.mrb[101].mxu1  ;;  %v2752_v61 = vld [vmem:[#allocation3] sm:$0xfc] }
 0x2e3   : > { %v2284_v14 = vadd.f32 %v2256_v39, %v8565_v57  ;;  %v8602_v31 = vadd.f32 %v2464_v33, %v2283_v37  ;;  %v6771_v42 = vpop.f32.mrb[103].mxu0  ;;  %v2467_v44 = vpop.f32.mrb[102].mxu1  ;;  %v2794_v43 = vshrl.u32 %v2752_v61, 16 }
 0x2e4   : > { %v6815_v59 = vpop.f32.mrb[103].mxu1 }
 0x2e5   : > { %v8604_v60 = vadd.f32 %v2467_v44, %v2284_v14  ;;  %v2797_v14 = vshll.u32 %v2752_v61, 16 }
 0x2e8   : > { %v2261_v32 = vpop.f32.mrb[104].mxu0 }
 0x2e9   : > { %v2285_v30 = vadd.f32 %v2261_v32, %v8569_v34  ;;  %v6774_v47 = vpop.f32.mrb[105].mxu0  ;;  %v2472_v20 = vpop.f32.mrb[104].mxu1 }
 0x2ea   : > { %v2264_v16 = vpop.f32.mrb[106].mxu0  ;;  %v6818_v48 = vpop.f32.mrb[105].mxu1 }
 0x2eb   : > { %v2286_v36 = vadd.f32 %v2264_v16, %v8571_v63  ;;  %v8608_v49 = vadd.f32 %v2472_v20, %v2285_v30  ;;  %v6775_v57 = vpop.f32.mrb[107].mxu0  ;;  %v2475_v41 = vpop.f32.mrb[106].mxu1  ;;  %v3005_v16 = vrot.slane %v2752_v61, 2  ;;  %v2796_v48 = vrot.slane %v2794_v43, 2 }
 0x2ec   : > { %v6819_v40 = vpop.f32.mrb[107].mxu1 }
 0x2ed   : > { %v8610_v28 = vadd.f32 %v2475_v41, %v2286_v36  ;;  %v2799_v36 = vrot.slane %v2797_v14, 3 }
 0x2f0   : > { %v2269_v56 = vpop.f32.mrb[108].mxu0 }
 0x2f1   : > { %v2287_v52 = vadd.f32 %v2269_v56, %v8574_v13  ;;  %v6778_v53 = vpop.f32.mrb[109].mxu0  ;;  %v2480_v29 = vpop.f32.mrb[108].mxu1  ;;  %v7557_v56 = vld [vmem:[%s7857_s22 + $0x300] sm:$0xff]  }
 0x2f2   : > { %v2272_v34 = vpop.f32.mrb[110].mxu0  ;;  %v6822_v54 = vpop.f32.mrb[109].mxu1 }
 0x2f3   : > { %v8613_v55 = vadd.f32 %v2480_v29, %v2287_v52  ;;  %v6779_v15 = vpop.f32.mrb[111].mxu0  ;;  %v2483_v51 = vpop.f32.mrb[110].mxu1  ;;  %v2800_v54 = vor.u32 %v2799_v36, %v2796_v48 }
 0x2f4   : > { %v6823_v63 = vpop.f32.mrb[111].mxu1 }
 0x2f8   : > { %v2623_v27 = vpop.f32.mrb[112].mxu0 }
 0x2f9   : > { %v2677_v45 = vadd.f32 %v2623_v27, %v8578_v25  ;;  %v6842_v22 = vpop.f32.mrb[113].mxu0 }
 0x2fa   : > { %v2626_v35 = vpop.f32.mrb[114].mxu0 }
 0x2fb   : > { %v2695_v62 = vadd.f32 %v8616_v26, %v2677_v45  ;;  %v2678_v13 = vadd.f32 %v2626_v35, %v8580_v50  ;;  %v6843_v19 = vpop.f32.mrb[115].mxu0  ;;  %v7559_v35 = vld [vmem:[%s7857_s22 + $0x308] sm:$0xff]  }
 0x2fc   : > { %v7554_v19 = vld [vmem:[%s7857_s22 + $0x2c0] sm:$0xff]  }
 0x2fd   : > { %v2708_v21 = vmax.f32 %v2695_v62, 0.0  ;;  %v2696_v37 = vadd.f32 %v8616_v26, %v2678_v13 }
 0x2ff   : > { %v2709_v33 = vmax.f32 %v2696_v37, 0.0  ;;  %v2721_v42 = vmul.f32 %v2708_v21, %v7786_v0 }
 0x300   : > { %v2631_v39 = vpop.f32.mrb[116].mxu0 }
 0x301   : > { %v2722_v44 = vmul.f32 %v2709_v33, %v7791_v1  ;;  %v2679_v25 = vadd.f32 %v2631_v39, %v8584_v23  ;;  %v6846_v59 = vpop.f32.mrb[117].mxu0 }
 0x302   : > { %v2634_v32 = vpop.f32.mrb[118].mxu0  ;;  %v7555_v59 = vld [vmem:[%s7857_s22 + $0x2c8] sm:$0xff]  }
 0x303   : > { %v8625_v30 = vpack.c.bf16 %v2722_v44, %v2721_v42  ;;  %v2697_v50 = vadd.f32 %v8616_v26, %v2679_v25  ;;  %v2680_v47 = vadd.f32 %v2634_v32, %v8586_v46  ;;  %v6847_v20 = vpop.f32.mrb[119].mxu0  ;;  %v7561_v25 = vld [vmem:[%s7857_s22 + $0x310] sm:$0xff]  }
 0x305   : > { %2741 = vst [vmem:[#allocation3 + $0x8] sm:$0xff] %v8625_v30  ;;  %v2710_v57 = vmax.f32 %v2697_v50, 0.0  ;;  %v2698_v41 = vadd.f32 %v8616_v26, %v2680_v47  ;;  %v3006_v40 = vrot.slane %v8625_v30, 2  ;;  %v8633_v23 = vshrl.u32 %v8625_v30, 16 }
 0x306   : > { %v8637_v52 = vshll.u32 %v8625_v30, 16 }
 0x307   : > { %v2711_v46 = vmax.f32 %v2698_v41, 0.0  ;;  %v3007_v53 = vsel %vm1136_vm8, %v3005_v16, %v3006_v40  ;;  %v2804_v29 = vrot.slane %v8633_v23, 2  ;;  %v2723_v63 = vmul.f32 %v2710_v57, %v7796_v2 }
 0x308   : > { %v2639_v34 = vpop.f32.mrb[120].mxu0  ;;  %6929 = vmatmul.mubr.bf16.vlgmr.msra.gmra.mrb[140].mxu0 %v3007_v53  ;;  %v2807_v15 = vrot.slane %v8637_v52, 3  ;;  %v3776_v51 = vrot.slane %v8637_v52, 1 }
 0x309   : > { %v2724_v27 = vmul.f32 %v2711_v46, %v7801_v3  ;;  %v2681_v45 = vadd.f32 %v2639_v34, %v8590_v24  ;;  %v6850_v22 = vpop.f32.mrb[121].mxu0  ;;  %6932 = vmatprep.mubr.msk.bf16.mxu0 %vm7670_vm6, %v7669_v58  ;;  %7001 = vmatpush3.bf16.msra.mxu0 %v7557_v56  ;;  %v7562_v56 = vld [vmem:[%s7857_s22 + $0x318] sm:$0xff]  }
 0x30a   : > { %v2642_v62 = vpop.f32.mrb[122].mxu0  ;;  %v2808_v13 = vor.u32 %v2807_v15, %v2804_v29  ;;  %7002 = vmatprep.subr.bf16.mxu0 %v7669_v58  ;;  %v3777_v21 = vor.u32 %v3776_v51, %v8633_v23  ;;  %v7556_v29 = vld [vmem:[%s7857_s22 + $0x2d0] sm:$0xff]  }
 0x30b   : > { %v8652_v37 = vpack.c.bf16 %v2724_v27, %v2723_v63  ;;  %v2699_v61 = vadd.f32 %v8616_v26, %v2681_v45  ;;  %v2682_v24 = vadd.f32 %v2642_v62, %v8592_v38  ;;  %v6851_v33 = vpop.f32.mrb[123].mxu0 }
 0x30c   : > { %v2809_v39 = vsel %vm923_vm7, %v2800_v54, %v2808_v13 }
 0x30d   : > { %2742 = vst [vmem:[#allocation3 + $0x10] sm:$0xff] %v8652_v37  ;;  %v2712_v43 = vmax.f32 %v2699_v61, 0.0  ;;  %v2700_v14 = vadd.f32 %v8616_v26, %v2682_v24  ;;  %6885 = vmatmul.mubr.bf16.vlgmr.msra.gmra.mrb[112].mxu1 %v2809_v39  ;;  %v3008_v42 = vrot.slane %v8652_v37, 2  ;;  %v8661_v44 = vshrl.u32 %v8652_v37, 16  ;;  %7003 = vmatpush3.bf16.msra.mxu0 %v7559_v35 }
 0x30e   : > { %6957 = vmatpush3.bf16.msra.mxu1 %v7554_v19  ;;  %6888 = vmatprep.mubr.msk.bf16.mxu1 %vm7670_vm6, %v7669_v58  ;;  %v8667_v38 = vshll.u32 %v8652_v37, 16 }
 0x30f   : > { %v2713_v32 = vmax.f32 %v2700_v14, 0.0  ;;  %v3009_v50 = vsel %vm1136_vm8, %v3006_v40, %v3008_v42  ;;  %6958 = vmatprep.subr.bf16.mxu1 %v7669_v58  ;;  %v2813_v47 = vrot.slane %v8661_v44, 2  ;;  %7004 = vmatprep.subr.bf16.mxu0 %v7669_v58  ;;  %v2725_v36 = vmul.f32 %v2712_v43, %v7806_v4 }
 0x310   : > { %v2647_v20 = vpop.f32.mrb[124].mxu0  ;;  %6933 = vmatmul.mubr.bf16.gmra.mrb[144].mxu0 %v3009_v50  ;;  %v2816_v16 = vrot.slane %v8667_v38, 3  ;;  %v3778_v48 = vrot.slane %v8667_v38, 1  ;;  %v4177_v54 = vrot.slane %v8661_v44, 5  ;;  %v4178_v22 = vrot.slane %v8667_v38, 6 }
 0x311   : > { %v2726_v57 = vmul.f32 %v2713_v32, %v7811_v5  ;;  %v2683_v41 = vadd.f32 %v2647_v20, %v8596_v17  ;;  %v6854_v40 = vpop.f32.mrb[125].mxu0  ;;  %6936 = vmatprep.mubr.msk.bf16.mxu0 %vm7670_vm6, %v7669_v58  ;;  %7005 = vmatpush3.bf16.msra.mxu0 %v7561_v25  ;;  %v7565_v20 = vld [vmem:[%s7857_s22 + $0x328] sm:$0xff]  }
 0x312   : > { %v2650_v46 = vpop.f32.mrb[126].mxu0  ;;  %v2817_v53 = vor.u32 %v2816_v16, %v2813_v47  ;;  %6959 = vmatpush3.bf16.msra.mxu1 %v7555_v59  ;;  %7006 = vmatprep.subr.bf16.mxu0 %v7669_v58  ;;  %v8685_v34 = vsel %vm1910_vm9, %v3777_v21, %v3778_v48  ;;  %v3780_v27 = vor.u32 %v3778_v48, %v8661_v44 }
 0x313   : > { %v8688_v15 = vpack.c.bf16 %v2726_v57, %v2725_v36  ;;  %v2701_v17 = vadd.f32 %v8616_v26, %v2683_v41  ;;  %v2684_v51 = vadd.f32 %v2650_v46, %v8598_v18  ;;  %v6855_v63 = vpop.f32.mrb[127].mxu0  ;;  %6960 = vmatprep.subr.bf16.mxu1 %v7669_v58  ;;  %v7564_v18 = vld [vmem:[%s7857_s22 + $0x320] sm:$0xff]   ;;  %v8708_v24 = vor.u32 %v4178_v22, %v4177_v54 }
 0x314   : > { %v2818_v45 = vsel %vm923_vm7, %v2808_v13, %v2817_v53  ;;  %v7558_v13 = vld [vmem:[%s7857_s22 + $0x2d8] sm:$0xff]   ;;  %v7560_v36 = vld [vmem:[%s7857_s22 + $0x2e0] sm:$0xff]  }
 0x315   : > { %v2714_v35 = vmax.f32 %v2701_v17, 0.0  ;;  %v2702_v62 = vadd.f32 %v8616_v26, %v2684_v51  ;;  %6889 = vmatmul.mubr.bf16.gmra.mrb[116].mxu1 %v2818_v45  ;;  %v3010_v19 = vrot.slane %v8688_v15, 2  ;;  %v8699_v21 = vshrl.u32 %v8688_v15, 16  ;;  %7007 = vmatpush3.bf16.msra.mxu0 %v7562_v56 }
 0x316   : > { %6892 = vmatprep.mubr.msk.bf16.mxu1 %vm7670_vm6, %v7669_v58  ;;  %6961 = vmatpush3.bf16.msra.mxu1 %v7556_v29  ;;  %v8705_v61 = vshll.u32 %v8688_v15, 16 }
 0x317   : > { %v2715_v33 = vmax.f32 %v2702_v62, 0.0  ;;  %v3011_v39 = vsel %vm1136_vm8, %v3008_v42, %v3010_v19  ;;  %v2822_v43 = vrot.slane %v8699_v21, 2  ;;  %6962 = vmatprep.subr.bf16.mxu1 %v7669_v58  ;;  %7008 = vmatprep.subr.bf16.mxu0 %v7669_v58  ;;  %v2727_v32 = vmul.f32 %v2714_v35, %v7817_v6 }
 0x318   : > { %v2655_v14 = vpop.f32.mrb[128].mxu0  ;;  %6937 = vmatmul.mubr.bf16.gmra.mrb[148].mxu0 %v3011_v39  ;;  %v2825_v25 = vrot.slane %v8705_v61, 3  ;;  %v3781_v59 = vrot.slane %v8705_v61, 1  ;;  %v4181_v41 = vrot.slane %v8699_v21, 5  ;;  %v4182_v17 = vrot.slane %v8705_v61, 6 }
 0x319   : > { %v2728_v50 = vmul.f32 %v2715_v33, %v7822_v7  ;;  %v2685_v47 = vadd.f32 %v2655_v14, %v8602_v31  ;;  %v6858_v42 = vpop.f32.mrb[129].mxu0  ;;  %6940 = vmatprep.mubr.msk.bf16.mxu0 %vm7670_vm6, %v7669_v58  ;;  %7009 = vmatpush3.bf16.msra.mxu0 %v7564_v18 }
 0x31a   : > { %v2658_v16 = vpop.f32.mrb[130].mxu0  ;;  %v2826_v48 = vor.u32 %v2825_v25, %v2822_v43  ;;  %6963 = vmatpush3.bf16.msra.mxu1 %v7558_v13  ;;  %7010 = vmatprep.subr.bf16.mxu0 %v7669_v58  ;;  %v8725_v57 = vsel %vm1910_vm9, %v3780_v27, %v3781_v59  ;;  %v3783_v29 = vor.u32 %v3781_v59, %v8699_v21 }
 0x31b   : > { %v8728_v40 = vpack.c.bf16 %v2728_v50, %v2727_v32  ;;  %v2703_v31 = vadd.f32 %v8616_v26, %v2685_v47  ;;  %v2686_v56 = vadd.f32 %v2658_v16, %v8604_v60  ;;  %v6859_v46 = vpop.f32.mrb[131].mxu0  ;;  %6964 = vmatprep.subr.bf16.mxu1 %v7669_v58  ;;  %v7567_v60 = vld [vmem:[%s7857_s22 + $0x330] sm:$0xff]   ;;  %v4183_v35 = vor.u32 %v4182_v17, %v4181_v41  ;;  %v7568_v32 = vld [vmem:[%s7857_s22 + $0x338] sm:$0xff]  }
 0x31c   : > { %v2827_v54 = vsel %vm923_vm7, %v2817_v53, %v2826_v48  ;;  %v7563_v53 = vld [vmem:[%s7857_s22 + $0x2e8] sm:$0xff]   ;;  %v7566_v16 = vld [vmem:[%s7857_s22 + $0x2f0] sm:$0xff]  }
 0x31d   : > { %v2716_v51 = vmax.f32 %v2703_v31, 0.0  ;;  %v2704_v63 = vadd.f32 %v8616_v26, %v2686_v56  ;;  %6893 = vmatmul.mubr.bf16.gmra.mrb[120].mxu1 %v2827_v54  ;;  %v3012_v27 = vrot.slane %v8728_v40, 2  ;;  %v8739_v45 = vshrl.u32 %v8728_v40, 16  ;;  %7011 = vmatpush3.bf16.msra.mxu0 %v7565_v20 }
 0x31e   : > { %6896 = vmatprep.mubr.msk.bf16.mxu1 %vm7670_vm6, %v7669_v58  ;;  %v8745_v22 = vshll.u32 %v8728_v40, 16  ;;  %6965 = vmatpush3.bf16.msra.mxu1 %v7560_v36  ;;  %v8762_v50 = vsel %vm2305_vm12, %v8708_v24, %v4183_v35 }
 0x31f   : > { %v2717_v62 = vmax.f32 %v2704_v63, 0.0  ;;  %v3013_v18 = vsel %vm1136_vm8, %v3010_v19, %v3012_v27  ;;  %v2831_v13 = vrot.slane %v8739_v45, 2  ;;  %6966 = vmatprep.subr.bf16.mxu1 %v7669_v58  ;;  %7012 = vmatprep.subr.bf16.mxu0 %v7669_v58  ;;  %v2729_v33 = vmul.f32 %v2716_v51, %v7827_v8 }
 0x320   : > { %v2663_v39 = vpop.f32.mrb[132].mxu0  ;;  %6941 = vmatmul.mubr.bf16.gmra.mrb[152].mxu0 %v3013_v18  ;;  %v2834_v43 = vrot.slane %v8745_v22, 3  ;;  %v3784_v14 = vrot.slane %v8745_v22, 1  ;;  %v4185_v47 = vrot.slane %v8739_v45, 5  ;;  %v4186_v36 = vrot.slane %v8745_v22, 6 }
 0x321   : > { %v2730_v25 = vmul.f32 %v2717_v62, %v7832_v9  ;;  %v2687_v59 = vadd.f32 %v2663_v39, %v8608_v49  ;;  %v6862_v19 = vpop.f32.mrb[133].mxu0  ;;  %6944 = vmatprep.mubr.msk.bf16.mxu0 %vm7670_vm6, %v7669_v58  ;;  %7013 = vmatpush3.bf16.msra.mxu0 %v7567_v60  ;;  %v7569_v62 = vld [vmem:[%s7857_s22 + $0x2f8] sm:$0xff]  }
 0x322   : > { %v2666_v42 = vpop.f32.mrb[134].mxu0  ;;  %v2835_v20 = vor.u32 %v2834_v43, %v2831_v13  ;;  %6967 = vmatpush3.bf16.msra.mxu1 %v7563_v53  ;;  %7014 = vmatprep.subr.bf16.mxu0 %v7669_v58  ;;  %v8768_v49 = vsel %vm1910_vm9, %v3783_v29, %v3784_v14  ;;  %v3786_v54 = vor.u32 %v3784_v14, %v8739_v45 }
 0x323   : > { %v8771_v41 = vpack.c.bf16 %v2730_v25, %v2729_v33  ;;  %v2705_v31 = vadd.f32 %v8616_v26, %v2687_v59  ;;  %v2688_v56 = vadd.f32 %v2666_v42, %v8610_v28  ;;  %v6863_v46 = vpop.f32.mrb[135].mxu0  ;;  %6968 = vmatprep.subr.bf16.mxu1 %v7669_v58  ;;  %v4187_v51 = vor.u32 %v4186_v36, %v4185_v47 }
 0x324   : > { %v2836_v17 = vsel %vm923_vm7, %v2826_v48, %v2835_v20 }
 0x325   : > { %v2718_v63 = vmax.f32 %v2705_v31, 0.0  ;;  %v2706_v29 = vadd.f32 %v8616_v26, %v2688_v56  ;;  %6897 = vmatmul.mubr.bf16.gmra.mrb[124].mxu1 %v2836_v17  ;;  %v3014_v60 = vrot.slane %v8771_v41, 2  ;;  %v8781_v53 = vshrl.u32 %v8771_v41, 16  ;;  %7015 = vmatpush3.bf16.msra.mxu0 %v7568_v32 }
 0x326   : > { %6900 = vmatprep.mubr.msk.bf16.mxu1 %vm7670_vm6, %v7669_v58  ;;  %v8786_v28 = vshll.u32 %v8771_v41, 16  ;;  %6969 = vmatpush3.bf16.msra.mxu1 %v7566_v16  ;;  %v8790_v48 = vsel %vm2305_vm12, %v4183_v35, %v4187_v51 }
 0x327   : > { %v2719_v18 = vmax.f32 %v2706_v29, 0.0  ;;  %v3015_v13 = vsel %vm1136_vm8, %v3012_v27, %v3014_v60  ;;  %v2840_v33 = vrot.slane %v8781_v53, 2  ;;  %6970 = vmatprep.subr.bf16.mxu1 %v7669_v58  ;;  %7088 = vmatprep.subr.bf16.mxu0 %v7669_v58  ;;  %v2731_v25 = vmul.f32 %v2718_v63, %v7837_v10 }
 0x328   : > { %v2671_v39 = vpop.f32.mrb[136].mxu0  ;;  %6945 = vmatmul.mubr.bf16.gmra.mrb[156].mxu0 %v3015_v13  ;;  %v2843_v43 = vrot.slane %v8786_v28, 3  ;;  %v3787_v14 = vrot.slane %v8786_v28, 1  ;;  %v4189_v19 = vrot.slane %v8781_v53, 5  ;;  %v4190_v56 = vrot.slane %v8786_v28, 6 }
 0x329   : > { %v2732_v35 = vmul.f32 %v2719_v18, %v7842_v11  ;;  %v2689_v59 = vadd.f32 %v2671_v39, %v8613_v55  ;;  %6948 = vmatprep.mubr.msk.bf16.mxu0 %vm7670_vm6, %v7669_v58  ;;  %v6866_v27 = vpop.f32.mrb[137].mxu0  ;;  %v2749_v18 = vld [vmem:[#allocation3 + $0x38] sm:$0x3] }
 0x32a   : > { %v2844_v32 = vor.u32 %v2843_v43, %v2840_v33  ;;  %6971 = vmatpush3.bf16.msra.mxu1 %v7569_v62  ;;  %v2674_v47 = vpop.f32.mrb[138].mxu0  ;;  %v8805_v42 = vsel %vm1910_vm9, %v3786_v54, %v3787_v14  ;;  %v8808_v16 = vor.u32 %v3787_v14, %v8781_v53  ;;  %v4191_v29 = vor.u32 %v4190_v56, %v4189_v19 }
 0x32b   : > { %v8810_v36 = vpack.c.bf16 %v2732_v35, %v2731_v25  ;;  %v2707_v31 = vadd.f32 %v8616_v26, %v2689_v59  ;;  %7044 = vmatprep.subr.bf16.mxu1 %v7669_v58  ;;  %v6867_v55 = vpop.f32.mrb[139].mxu0 }
 0x32c   : > { %v2845_v46 = vsel %vm923_vm7, %v2835_v20, %v2844_v32  ;;  %v8827_v62 = vsel %vm2305_vm12, %v4187_v51, %v4191_v29  ;;  %v7620_v20 = vld [vmem:[%s9616_s6 + $0x10] sm:$0xff] (!%p6042_p6)  }
 0x32d   : > { %2746 = vst [vmem:[#allocation3 + $0x30] sm:$0xff] %v8810_v36  ;;  %v2720_v17 = vmax.f32 %v2707_v31, 0.0  ;;  %6901 = vmatmul.mubr.bf16.gmra.mrb[128].mxu1 %v2845_v46  ;;  %v8818_v54 = vshrl.u32 %v8810_v36, 16  ;;  %v8821_v63 = vshll.u32 %v8810_v36, 16  ;;  %v3351_v46 = vld [vmem:[#allocation3] sm:$0x80] }
 0x32e   : > { %6904 = vmatprep.mubr.msk.bf16.mxu1 %vm7670_vm6, %v7669_v58 }
 0x32f   : > { %v2733_v26 = vmul.f32 %v2720_v17, %v7847_v12  ;;  %v4193_v13 = vrot.slane %v8818_v54, 5  ;;  %v4194_v33 = vrot.slane %v8821_v63, 6  ;;  %v3377_v17 = vshrl.u32 %v3351_v46, 16  ;;  %v7580_v46 = vld [vmem:[%s7857_s22 + $0x3a0] sm:$0xff]  }
 0x331   : > { %v2740_v39 = vpack.c.bf16 %v2733_v26, %v2733_v26  ;;  %v8836_v43 = vor.u32 %v4194_v33, %v4193_v13 }
 0x333   : > { %v2750_v14 = vsel %vm8830_vm0, %v2740_v39, %v2749_v18  ;;  %v8842_v51 = vsel %vm2305_vm12, %v4191_v29, %v8836_v43  ;;  %v3383_v29 = vrot.slane %v8633_v23, 7  ;;  %v3161_v18 = vld [vmem:[#allocation3] sm:$0xf8]  ;;  %v3183_v23 = vrot.slane %v8625_v30, 3 }
 0x334   : > { %2751 = vst [vmem:[#allocation3 + $0x38] sm:$0x3] %v2750_v14  ;;  %v2758_v25 = vld [vmem:[#allocation3 + $0x30] sm:$0xf]  ;;  %v3182_v33 = vrot.slane %v3161_v18, 3  ;;  %v3391_v39 = vrot.slane %v8661_v44, 7 }
 0x335   : > { %v3016_v35 = vrot.slane %v2758_v25, 2  ;;  %v2847_v59 = vshrl.u32 %v2758_v25, 16  ;;  %v2850_v27 = vshll.u32 %v2758_v25, 16  ;;  %v3386_v26 = vor.u32 %v3383_v29, %v8637_v52  ;;  %v7570_v14 = vld [vmem:[%s7857_s22 + $0x340] sm:$0xff]   ;;  %v7575_v52 = vld [vmem:[%s7857_s22 + $0x388] sm:$0xff]  }
 0x336   : > { %v3184_v25 = vsel %vm1314_vm10, %v3182_v33, %v3183_v23  ;;  %v7571_v44 = vld [vmem:[%s7857_s22 + $0x348] sm:$0xff]  }
 0x337   : > { %v3017_v19 = vsel %vm1136_vm8, %v3014_v60, %v3016_v35  ;;  %v2849_v47 = vrot.slane %v2847_v59, 2  ;;  %v2852_v31 = vrot.slane %v2850_v27, 3  ;;  %v3379_v60 = vrot.slane %v3377_v17, 7  ;;  %v7577_v59 = vld [vmem:[%s7857_s22 + $0x390] sm:$0xff]  }
 0x338   : > { %6949 = vmatmul.mubr.bf16.gmra.mrb[160].mxu0 %v3017_v19  ;;  %v3185_v19 = vrot.slane %v8652_v37, 3 }
 0x339   : > { %v2853_v55 = vor.u32 %v2852_v31, %v2849_v47  ;;  %6952 = vmatprep.mubr.msk.bf16.mxu0 %vm7670_vm6, %v7669_v58  ;;  %v3387_v13 = vsel %vm1509_vm11, %v3379_v60, %v3386_v26  ;;  %v3399_v47 = vrot.slane %v8699_v21, 7  ;;  %v7578_v31 = vld [vmem:[%s7857_s22 + $0x398] sm:$0xff]   ;;  %v7576_v60 = vld [vmem:[%s7857_s22 + $0x360] sm:$0xff]   ;;  %v7581_v26 = vld [vmem:[%s7857_s22 + $0x3a8] sm:$0xff]  }
 0x33a   : > { %v7574_v21 = vld [vmem:[%s7857_s22 + $0x358] sm:$0xff]  }
 0x33b   : > { %v2854_v56 = vsel %vm923_vm7, %v2844_v32, %v2853_v55  ;;  %v7573_v32 = vld [vmem:[%s7857_s22 + $0x380] sm:$0xff]   ;;  %vm5476_vm7 = vcmask (!%p6042_p6), 10240  }
 0x33c   : > { %6905 = vmatmul.mubr.bf16.gmra.mrb[132].mxu1 %v2854_v56  ;;  %v3402_v56 = vor.u32 %v3399_v47, %v8705_v61  ;;  %v3407_v61 = vrot.slane %v8739_v45, 7  ;;  %v7579_v45 = vld [vmem:[%s7857_s22 + $0x368] sm:$0xff]  }
 0x33d   : > { %6908 = vmatprep.mubr.msk.bf16.mxu1 %vm7670_vm6, %v7669_v58 }
 0x33e   : > { %v3403_v17 = vsel %vm1509_vm11, %v3391_v39, %v3402_v56 }
 0x340   : > { %6953 = vmatmul.mubr.bf16.gmra.mrb[164].mxu0 %v3016_v35  ;;  %v3394_v35 = vor.u32 %v3391_v39, %v8667_v38  ;;  %v7572_v38 = vld [vmem:[%s7857_s22 + $0x350] sm:$0xff]  }
 0x341   : > { %7016 = vmatprep.mubr.msk.bf16.mxu0 %vm7670_vm6, %v7669_v58  ;;  %v7582_v39 = vld [vmem:[%s7857_s22 + $0x370] sm:$0xff]  }
 0x342   : > { %v3395_v27 = vsel %vm1509_vm11, %v3383_v29, %v3394_v35  ;;  %v3187_v29 = vrot.slane %v8688_v15, 3 }
 0x344   : > { %6909 = vmatmul.mubr.bf16.gmra.mrb[136].mxu1 %v2853_v55  ;;  %v3186_v55 = vsel %vm1314_vm10, %v3183_v23, %v3185_v19  ;;  %v3188_v18 = vsel %vm1314_vm10, %v3185_v19, %v3187_v29  ;;  %v3189_v23 = vrot.slane %v8728_v40, 3 }
 0x345   : > { %6972 = vmatprep.mubr.msk.bf16.mxu1 %vm7670_vm6, %v7669_v58 }
 0x348   : > { %7017 = vmatmul.mubr.bf16.vlgmr.msra.gmra.mrb[168].mxu0 %v3387_v13  ;;  %v7583_v13 = vld [vmem:[%s7857_s22 + $0x3b0] sm:$0xff]  }
 0x349   : > { %7020 = vmatprep.mubr.msk.bf16.mxu0 %vm7670_vm6, %v7669_v58  ;;  %7089 = vmatpush3.bf16.msra.mxu0 %v7573_v32  ;;  %v3410_v32 = vor.u32 %v3407_v61, %v8745_v22  ;;  %v3415_v22 = vrot.slane %v8781_v53, 7  ;;  %v7585_v53 = vld [vmem:[%s7857_s22 + $0x378] sm:$0xff]  }
 0x34a   : > { %7090 = vmatprep.subr.bf16.mxu0 %v7669_v58 }
 0x34b   : > { %v3411_v33 = vsel %vm1509_vm11, %v3399_v47, %v3410_v32  ;;  %v7594_v32 = vld [vmem:[%s7857_s22 + $0x418] sm:$0xff]  }
 0x34c   : > { %6973 = vmatmul.mubr.bf16.vlgmr.msra.gmra.mrb[140].mxu1 %v3184_v25  ;;  %v3418_v25 = vor.u32 %v3415_v22, %v8786_v28  ;;  %v3358_v28 = vld [vmem:[#allocation3 + $0x38] sm:$0x1] }
 0x34d   : > { %7045 = vmatpush3.bf16.msra.mxu1 %v7570_v14  ;;  %6976 = vmatprep.mubr.msk.bf16.mxu1 %vm7670_vm6, %v7669_v58  ;;  %v7584_v14 = vld [vmem:[%s7857_s22 + $0x3b8] sm:$0xff]   ;;  %v3429_v47 = vshrl.u32 %v3358_v28, 16 }
 0x34e   : > { %7046 = vmatprep.subr.bf16.mxu1 %v7669_v58  ;;  %7091 = vmatpush3.bf16.msra.mxu0 %v7575_v52  ;;  %v3190_v52 = vsel %vm1314_vm10, %v3187_v29, %v3189_v23  ;;  %v3419_v35 = vsel %vm1509_vm11, %v3407_v61, %v3418_v25  ;;  %v7589_v61 = vld [vmem:[%s7857_s22 + $0x400] sm:$0xff]  }
 0x34f   : > { %7092 = vmatprep.subr.bf16.mxu0 %v7669_v58  ;;  %v3431_v56 = vrot.slane %v3429_v47, 7 }
 0x350   : > { %7021 = vmatmul.mubr.bf16.gmra.mrb[172].mxu0 %v3395_v27 }
 0x351   : > { %7047 = vmatpush3.bf16.msra.mxu1 %v7571_v44  ;;  %7024 = vmatprep.mubr.msk.bf16.mxu0 %vm7670_vm6, %v7669_v58  ;;  %v3191_v44 = vrot.slane %v8771_v41, 3 }
 0x352   : > { %7048 = vmatprep.subr.bf16.mxu1 %v7669_v58  ;;  %7093 = vmatpush3.bf16.msra.mxu0 %v7577_v59  ;;  %v3423_v59 = vrot.slane %v8818_v54, 7 }
 0x353   : > { %7094 = vmatprep.subr.bf16.mxu0 %v7669_v58  ;;  %v3192_v27 = vsel %vm1314_vm10, %v3189_v23, %v3191_v44  ;;  %v7599_v23 = vld [vmem:[%s7857_s22 + $0x430] sm:$0xff]  }
 0x354   : > { %6977 = vmatmul.mubr.bf16.gmra.mrb[144].mxu1 %v3186_v55  ;;  %v3426_v19 = vor.u32 %v8821_v63, %v3423_v59 }
 0x355   : > { %6980 = vmatprep.mubr.msk.bf16.mxu1 %vm7670_vm6, %v7669_v58  ;;  %7049 = vmatpush3.bf16.msra.mxu1 %v7572_v38  ;;  %v3162_v38 = vld [vmem:[#allocation3 + $0x30] sm:$0x1f] }
 0x356   : > { %7050 = vmatprep.subr.bf16.mxu1 %v7669_v58  ;;  %7095 = vmatpush3.bf16.msra.mxu0 %v7578_v31  ;;  %v3427_v31 = vsel %vm1509_vm11, %v3415_v22, %v3426_v19  ;;  %v3193_v55 = vrot.slane %v3162_v38, 3  ;;  %v7598_v22 = vld [vmem:[%s7857_s22 + $0x3f0] sm:$0xff]  }
 0x357   : > { %7096 = vmatprep.subr.bf16.mxu0 %v7669_v58 }
 0x358   : > { %7025 = vmatmul.mubr.bf16.gmra.mrb[176].mxu0 %v3403_v17 }
 0x359   : > { %7028 = vmatprep.mubr.msk.bf16.mxu0 %vm7670_vm6, %v7669_v58  ;;  %7051 = vmatpush3.bf16.msra.mxu1 %v7574_v21  ;;  %v3432_v21 = vshll.u32 %v3358_v28, 16 }
 0x35a   : > { %7052 = vmatprep.subr.bf16.mxu1 %v7669_v58  ;;  %7097 = vmatpush3.bf16.msra.mxu0 %v7580_v46  ;;  %v3194_v46 = vsel %vm1314_vm10, %v3191_v44, %v3193_v55 }
 0x35b   : > { %7098 = vmatprep.subr.bf16.mxu0 %v7669_v58  ;;  %v3434_v17 = vor.u32 %v3432_v21, %v3431_v56  ;;  %v3984_v56 = vrot.slane %v8652_v37, 5  ;;  %v7602_v21 = vld [vmem:[%s7857_s22 + $0x440] sm:$0xff]  }
 0x35c   : > { %6981 = vmatmul.mubr.bf16.gmra.mrb[148].mxu1 %v3188_v18  ;;  %v7587_v18 = vld [vmem:[%s7857_s22 + $0x3c8] sm:$0xff]  }
 0x35d   : > { %6984 = vmatprep.mubr.msk.bf16.mxu1 %vm7670_vm6, %v7669_v58  ;;  %7053 = vmatpush3.bf16.msra.mxu1 %v7576_v60  ;;  %v3435_v29 = vsel %vm1509_vm11, %v3423_v59, %v3434_v17  ;;  %v7586_v60 = vld [vmem:[%s7857_s22 + $0x3c0] sm:$0xff]   ;;  %v7603_v17 = vld [vmem:[%s7857_s22 + $0x448] sm:$0xff]  }
 0x35e   : > { %7054 = vmatprep.subr.bf16.mxu1 %v7669_v58  ;;  %7099 = vmatpush3.bf16.msra.mxu0 %v7581_v26  ;;  %v7591_v26 = vld [vmem:[%s7857_s22 + $0x408] sm:$0xff]  }
 0x35f   : > { %7100 = vmatprep.subr.bf16.mxu0 %v7669_v58 }
 0x360   : > { %7029 = vmatmul.mubr.bf16.gmra.mrb[180].mxu0 %v3411_v33  ;;  %v7597_v33 = vld [vmem:[%s7857_s22 + $0x428] sm:$0xff]  }
 0x361   : > { %7032 = vmatprep.mubr.msk.bf16.mxu0 %vm7670_vm6, %v7669_v58  ;;  %7055 = vmatpush3.bf16.msra.mxu1 %v7579_v45  ;;  %v7596_v45 = vld [vmem:[%s7857_s22 + $0x420] sm:$0xff]  }
 0x362   : > { %7056 = vmatprep.subr.bf16.mxu1 %v7669_v58  ;;  %7101 = vmatpush3.bf16.msra.mxu0 %v7583_v13  ;;  %v7592_v13 = vld [vmem:[%s7857_s22 + $0x3e0] sm:$0xff]  }
 0x363   : > { %7102 = vmatprep.subr.bf16.mxu0 %v7669_v58 }
 0x364   : > { %6985 = vmatmul.mubr.bf16.gmra.mrb[152].mxu1 %v3190_v52  ;;  %v3592_v52 = vld [vmem:[#allocation3 + $0x38] sm:$0x3] }
 0x365   : > { %6988 = vmatprep.mubr.msk.bf16.mxu1 %vm7670_vm6, %v7669_v58  ;;  %7057 = vmatpush3.bf16.msra.mxu1 %v7582_v39  ;;  %v7600_v39 = vld [vmem:[%s7857_s22 + $0x438] sm:$0xff]  }
 0x366   : > { %7058 = vmatprep.subr.bf16.mxu1 %v7669_v58  ;;  %7103 = vmatpush3.bf16.msra.mxu0 %v7584_v14  ;;  %v3790_v14 = vrot.slane %v8821_v63, 1 }
 0x367   : > { %7176 = vmatprep.subr.bf16.mxu0 %v7669_v58 }
 0x368   : > { %7033 = vmatmul.mubr.bf16.gmra.mrb[184].mxu0 %v3419_v35  ;;  %v3791_v25 = vsel %vm1910_vm9, %v8808_v16, %v3790_v14  ;;  %v3792_v35 = vor.u32 %v3790_v14, %v8818_v54  ;;  %v3957_v16 = vld [vmem:[#allocation3 + $0x8] sm:$0xe0] }
 0x369   : > { %7036 = vmatprep.mubr.msk.bf16.mxu0 %vm7670_vm6, %v7669_v58  ;;  %7059 = vmatpush3.bf16.msra.mxu1 %v7585_v53  ;;  %v3794_v53 = vshll.u32 %v3592_v52, 16  ;;  %v4170_v59 = vshrl.u32 %v3957_v16, 16  ;;  %v4173_v28 = vshll.u32 %v3957_v16, 16 }
 0x36a   : > { %7132 = vmatprep.subr.bf16.mxu1 %v7669_v58 }
 0x36b   : > { %v3796_v63 = vrot.slane %v3794_v53, 1  ;;  %v4172_v19 = vrot.slane %v4170_v59, 5  ;;  %v4175_v47 = vrot.slane %v4173_v28, 6 }
 0x36c   : > { %6989 = vmatmul.mubr.bf16.gmra.mrb[156].mxu1 %v3192_v27  ;;  %v3798_v27 = vshrl.u32 %v3592_v52, 16 }
 0x36d   : > { %6992 = vmatprep.mubr.msk.bf16.mxu1 %vm7670_vm6, %v7669_v58  ;;  %v3797_v44 = vsel %vm1910_vm9, %v3792_v35, %v3796_v63  ;;  %v4176_v38 = vor.u32 %v4175_v47, %v4172_v19 }
 0x36e   : > { %v3800_v54 = vor.u32 %v3798_v27, %v3796_v63 }
 0x370   : > { %7037 = vmatmul.mubr.bf16.gmra.mrb[188].mxu0 %v3427_v31  ;;  %v4180_v31 = vsel %vm2305_vm12, %v4176_v38, %v8708_v24  ;;  %v3986_v24 = vrot.slane %v8688_v15, 5 }
 0x371   : > { %7040 = vmatprep.mubr.msk.bf16.mxu0 %vm7670_vm6, %v7669_v58 }
 0x374   : > { %6993 = vmatmul.mubr.bf16.gmra.mrb[160].mxu1 %v3194_v46 }
 0x375   : > { %6996 = vmatprep.mubr.msk.bf16.mxu1 %vm7670_vm6, %v7669_v58 }
 0x378   : > { %7041 = vmatmul.mubr.bf16.gmra.mrb[192].mxu0 %v3435_v29  ;;  %v3987_v29 = vsel %vm2118_vm13, %v3984_v56, %v3986_v24 }
 0x379   : > { %7104 = vmatprep.mubr.msk.bf16.mxu0 %vm7670_vm6, %v7669_v58 }
 0x37c   : > { %6997 = vmatmul.mubr.bf16.gmra.mrb[164].mxu1 %v3193_v55  ;;  %v3983_v55 = vrot.slane %v3957_v16, 5 }
 0x37d   : > { %7060 = vmatprep.mubr.msk.bf16.mxu1 %vm7670_vm6, %v7669_v58 }
 0x37e   : > { %v3985_v46 = vsel %vm2118_vm13, %v3983_v55, %v3984_v56 }
 0x380   : > { %7105 = vmatmul.mubr.bf16.vlgmr.msra.gmra.mrb[196].mxu0 %v8685_v34  ;;  %v7593_v34 = vld [vmem:[%s7857_s22 + $0x410] sm:$0xff]  }
 0x381   : > { %7108 = vmatprep.mubr.msk.bf16.mxu0 %vm7670_vm6, %v7669_v58  ;;  %7177 = vmatpush3.bf16.msra.mxu0 %v7589_v61  ;;  %v7605_v61 = vld [vmem:[%s7857_s22 + $0x458] sm:$0xff]  }
 0x382   : > { %7178 = vmatprep.subr.bf16.mxu0 %v7669_v58 }
 0x384   : > { %7061 = vmatmul.mubr.bf16.vlgmr.msra.gmra.mrb[168].mxu1 %v8625_v30  ;;  %v7588_v30 = vld [vmem:[%s7857_s22 + $0x3d0] sm:$0xff]  }
 0x385   : > { %7133 = vmatpush3.bf16.msra.mxu1 %v7586_v60  ;;  %7064 = vmatprep.mubr.msk.bf16.mxu1 %vm7670_vm6, %v7669_v58  ;;  %v7606_v60 = vld [vmem:[%s7857_s22 + $0x460] sm:$0xff]  }
 0x386   : > { %7134 = vmatprep.subr.bf16.mxu1 %v7669_v58  ;;  %7179 = vmatpush3.bf16.msra.mxu0 %v7591_v26 }
 0x387   : > { %7180 = vmatprep.subr.bf16.mxu0 %v7669_v58 }
 0x388   : > { %7109 = vmatmul.mubr.bf16.gmra.mrb[200].mxu0 %v8725_v57  ;;  %v7590_v57 = vld [vmem:[%s7857_s22 + $0x3d8] sm:$0xff]  }
 0x389   : > { %7135 = vmatpush3.bf16.msra.mxu1 %v7587_v18  ;;  %7112 = vmatprep.mubr.msk.bf16.mxu0 %vm7670_vm6, %v7669_v58  ;;  %v7607_v18 = vld [vmem:[%s7857_s22 + $0x468] sm:$0xff]  }
 0x38a   : > { %7136 = vmatprep.subr.bf16.mxu1 %v7669_v58  ;;  %7181 = vmatpush3.bf16.msra.mxu0 %v7593_v34  ;;  %v3958_v34 = vld [vmem:[#allocation3 + $0x38] sm:$0x7f] }
 0x38b   : > { %7182 = vmatprep.subr.bf16.mxu0 %v7669_v58  ;;  %v3994_v53 = vrot.slane %v3958_v34, 5 }
 0x38c   : > { %7065 = vmatmul.mubr.bf16.gmra.mrb[172].mxu1 %v8652_v37  ;;  %v7604_v37 = vld [vmem:[%s7857_s22 + $0x450] sm:$0xff]  }
 0x38d   : > { %7068 = vmatprep.mubr.msk.bf16.mxu1 %vm7670_vm6, %v7669_v58  ;;  %7137 = vmatpush3.bf16.msra.mxu1 %v7588_v30  ;;  %v7608_v30 = vld [vmem:[%s7857_s22 + $0x470] sm:$0xff]  }
 0x38e   : > { %7138 = vmatprep.subr.bf16.mxu1 %v7669_v58  ;;  %7183 = vmatpush3.bf16.msra.mxu0 %v7594_v32 }
 0x38f   : > { %7184 = vmatprep.subr.bf16.mxu0 %v7669_v58 }
 0x390   : > { %7113 = vmatmul.mubr.bf16.gmra.mrb[204].mxu0 %v8768_v49  ;;  %v7595_v49 = vld [vmem:[%s7857_s22 + $0x3e8] sm:$0xff]  }
 0x391   : > { %7116 = vmatprep.mubr.msk.bf16.mxu0 %vm7670_vm6, %v7669_v58  ;;  %7139 = vmatpush3.bf16.msra.mxu1 %v7590_v57  ;;  %v4198_v57 = vshrl.u32 %v3958_v34, 16 }
 0x392   : > { %7140 = vmatprep.subr.bf16.mxu1 %v7669_v58  ;;  %7185 = vmatpush3.bf16.msra.mxu0 %v7596_v45  ;;  %v4201_v45 = vshll.u32 %v3958_v34, 16 }
 0x393   : > { %7186 = vmatprep.subr.bf16.mxu0 %v7669_v58 }
 0x394   : > { %7069 = vmatmul.mubr.bf16.gmra.mrb[176].mxu1 %v8688_v15 }
 0x395   : > { %7072 = vmatprep.mubr.msk.bf16.mxu1 %vm7670_vm6, %v7669_v58  ;;  %7141 = vmatpush3.bf16.msra.mxu1 %v7592_v13  ;;  %v7609_v13 = vld [vmem:[%s7857_s22 + $0x478] sm:$0xff]  }
 0x396   : > { %7142 = vmatprep.subr.bf16.mxu1 %v7669_v58  ;;  %7187 = vmatpush3.bf16.msra.mxu0 %v7597_v33  ;;  %v4200_v33 = vrot.slane %v4198_v57, 5 }
 0x397   : > { %7188 = vmatprep.subr.bf16.mxu0 %v7669_v58 }
 0x398   : > { %7117 = vmatmul.mubr.bf16.gmra.mrb[208].mxu0 %v8805_v42  ;;  %v7601_v42 = vld [vmem:[%s7857_s22 + $0x3f8] sm:$0xff]  }
 0x399   : > { %7120 = vmatprep.mubr.msk.bf16.mxu0 %vm7670_vm6, %v7669_v58  ;;  %7143 = vmatpush3.bf16.msra.mxu1 %v7595_v49  ;;  %v4203_v49 = vrot.slane %v4201_v45, 6 }
 0x39a   : > { %7144 = vmatprep.subr.bf16.mxu1 %v7669_v58  ;;  %7189 = vmatpush3.bf16.msra.mxu0 %v7599_v23 }
 0x39b   : > { %7190 = vmatprep.subr.bf16.mxu0 %v7669_v58 }
 0x39c   : > { %7073 = vmatmul.mubr.bf16.gmra.mrb[180].mxu1 %v8728_v40 }
 0x39d   : > { %7076 = vmatprep.mubr.msk.bf16.mxu1 %vm7670_vm6, %v7669_v58  ;;  %7145 = vmatpush3.bf16.msra.mxu1 %v7598_v22  ;;  %v4204_v22 = vor.u32 %v4203_v49, %v4200_v33  ;;  %v4386_v49 = vrot.slane %v8688_v15, 6  ;;  %v4388_v15 = vrot.slane %v8728_v40, 6 }
 0x39e   : > { %7146 = vmatprep.subr.bf16.mxu1 %v7669_v58  ;;  %7191 = vmatpush3.bf16.msra.mxu0 %v7600_v39 }
 0x3a0   : > { %7121 = vmatmul.mubr.bf16.gmra.mrb[212].mxu0 %v3791_v25  ;;  %v4205_v25 = vsel %vm2305_vm12, %v8836_v43, %v4204_v22 }
 0x3a1   : > { %7124 = vmatprep.mubr.msk.bf16.mxu0 %vm7670_vm6, %v7669_v58  ;;  %7147 = vmatpush3.bf16.msra.mxu1 %v7601_v42 }
 0x3a2   : > { %7220 = vmatprep.subr.bf16.mxu1 %v7669_v58 }
 0x3a4   : > { %7077 = vmatmul.mubr.bf16.gmra.mrb[184].mxu1 %v8771_v41 }
 0x3a5   : > { %7080 = vmatprep.mubr.msk.bf16.mxu1 %vm7670_vm6, %v7669_v58 }
 0x3a8   : > { %7125 = vmatmul.mubr.bf16.gmra.mrb[216].mxu0 %v3797_v44 }
 0x3a9   : > { %7128 = vmatprep.mubr.msk.bf16.mxu0 %vm7670_vm6, %v7669_v58 }
 0x3ac   : > { %7081 = vmatmul.mubr.bf16.gmra.mrb[188].mxu1 %v8810_v36 }
 0x3ad   : > { %7084 = vmatprep.mubr.msk.bf16.mxu1 %vm7670_vm6, %v7669_v58 }
 0x3b0   : > { %7129 = vmatmul.mubr.bf16.gmra.mrb[220].mxu0 %v3800_v54 }
 0x3b1   : > { %7192 = vmatprep.mubr.msk.bf16.mxu0 %vm7670_vm6, %v7669_v58 }
 0x3b4   : > { %7085 = vmatmul.mubr.bf16.gmra.mrb[192].mxu1 %v3592_v52 }
 0x3b5   : > { %7148 = vmatprep.mubr.msk.bf16.mxu1 %vm7670_vm6, %v7669_v58 }
 0x3b8   : > { %7193 = vmatmul.mubr.bf16.vlgmr.msra.gmra.mrb[224].mxu0 %v4180_v31 }
 0x3b9   : > { %7196 = vmatprep.mubr.msk.bf16.mxu0 %vm7670_vm6, %v7669_v58 }
 0x3bc   : > { %7149 = vmatmul.mubr.bf16.vlgmr.msra.gmra.mrb[196].mxu1 %v3985_v46 }
 0x3bd   : > { %7221 = vmatpush3.bf16.msra.mxu1 %v7602_v21  ;;  %7152 = vmatprep.mubr.msk.bf16.mxu1 %vm7670_vm6, %v7669_v58 }
 0x3be   : > { %7222 = vmatprep.subr.bf16.mxu1 %v7669_v58 }
 0x3c0   : > { %7197 = vmatmul.mubr.bf16.gmra.mrb[228].mxu0 %v8762_v50  ;;  %v3988_v50 = vrot.slane %v8728_v40, 5 }
 0x3c1   : > { %7223 = vmatpush3.bf16.msra.mxu1 %v7603_v17  ;;  %7200 = vmatprep.mubr.msk.bf16.mxu0 %vm7670_vm6, %v7669_v58 }
 0x3c2   : > { %7224 = vmatprep.subr.bf16.mxu1 %v7669_v58  ;;  %v3989_v26 = vsel %vm2118_vm13, %v3986_v24, %v3988_v50  ;;  %v4362_v24 = vld [vmem:[#allocation3 + $0x8] sm:$0xc0] }
 0x3c4   : > { %7153 = vmatmul.mubr.bf16.gmra.mrb[200].mxu1 %v3987_v29 }
 0x3c5   : > { %7156 = vmatprep.mubr.msk.bf16.mxu1 %vm7670_vm6, %v7669_v58  ;;  %7225 = vmatpush3.bf16.msra.mxu1 %v7604_v37 }
 0x3c6   : > { %7226 = vmatprep.subr.bf16.mxu1 %v7669_v58 }
 0x3c8   : > { %7201 = vmatmul.mubr.bf16.gmra.mrb[232].mxu0 %v8790_v48  ;;  %v3990_v48 = vrot.slane %v8771_v41, 5 }
 0x3c9   : > { %7204 = vmatprep.mubr.msk.bf16.mxu0 %vm7670_vm6, %v7669_v58  ;;  %7227 = vmatpush3.bf16.msra.mxu1 %v7605_v61  ;;  %v4383_v61 = vrot.slane %v4362_v24, 6 }
 0x3ca   : > { %7228 = vmatprep.subr.bf16.mxu1 %v7669_v58  ;;  %v3991_v32 = vsel %vm2118_vm13, %v3988_v50, %v3990_v48  ;;  %v7615_v50 = vld [vmem:[#allocation3 + $0x10] sm:$0xff] }
 0x3cc   : > { %7157 = vmatmul.mubr.bf16.gmra.mrb[204].mxu1 %v3989_v26 }
 0x3cd   : > { %7160 = vmatprep.mubr.msk.bf16.mxu1 %vm7670_vm6, %v7669_v58  ;;  %7229 = vmatpush3.bf16.msra.mxu1 %v7606_v60  ;;  %v4384_v60 = vrot.slane %v7615_v50, 6 }
 0x3ce   : > { %7230 = vmatprep.subr.bf16.mxu1 %v7669_v58 }
 0x3d0   : > { %7205 = vmatmul.mubr.bf16.gmra.mrb[236].mxu0 %v8827_v62  ;;  %v3992_v62 = vrot.slane %v8810_v36, 5 }
 0x3d1   : > { %7208 = vmatprep.mubr.msk.bf16.mxu0 %vm7670_vm6, %v7669_v58  ;;  %7231 = vmatpush3.bf16.msra.mxu1 %v7607_v18 }
 0x3d2   : > { %7232 = vmatprep.subr.bf16.mxu1 %v7669_v58  ;;  %v3993_v23 = vsel %vm2118_vm13, %v3990_v48, %v3992_v62  ;;  %v3995_v16 = vsel %vm2118_vm13, %v3992_v62, %v3994_v53 }
 0x3d4   : > { %7161 = vmatmul.mubr.bf16.gmra.mrb[208].mxu1 %v3991_v32 }
 0x3d5   : > { %7164 = vmatprep.mubr.msk.bf16.mxu1 %vm7670_vm6, %v7669_v58  ;;  %7233 = vmatpush3.bf16.msra.mxu1 %v7608_v30  ;;  %v4385_v30 = vsel %vm2520_vm14, %v4383_v61, %v4384_v60 }
 0x3d6   : > { %7234 = vmatprep.subr.bf16.mxu1 %v7669_v58 }
 0x3d8   : > { %7209 = vmatmul.mubr.bf16.gmra.mrb[240].mxu0 %v8842_v51 }
 0x3d9   : > { %7212 = vmatprep.mubr.msk.bf16.mxu0 %vm7670_vm6, %v7669_v58  ;;  %7235 = vmatpush3.bf16.msra.mxu1 %v7609_v13 }
 0x3db   : > { %v3107_v39 = vpop.f32.mrb[140].mxu0 }
 0x3dc   : > { %7165 = vmatmul.mubr.bf16.gmra.mrb[212].mxu1 %v3993_v23  ;;  %v6930_v14 = vpop.f32.mrb[141].mxu0 }
 0x3dd   : > { %7168 = vmatprep.mubr.msk.bf16.mxu1 %vm7670_vm6, %v7669_v58  ;;  %v3110_v52 = vpop.f32.mrb[142].mxu0 }
 0x3de   : > { %v6931_v42 = vpop.f32.mrb[143].mxu0 }
 0x3e0   : > { %7213 = vmatmul.mubr.bf16.gmra.mrb[244].mxu0 %v4205_v25  ;;  %v2944_v51 = vpop.f32.mrb[112].mxu1 }
 0x3e1   : > { %v9071_v63 = vadd.f32 %v3107_v39, %v2944_v51  ;;  %7216 = vmatprep.mubr.msk.bf16.mxu0 %vm7670_vm6, %v7669_v58  ;;  %v6886_v35 = vpop.f32.mrb[113].mxu1 }
 0x3e2   : > { %v2947_v44 = vpop.f32.mrb[114].mxu1 }
 0x3e3   : > { %v9076_v59 = vadd.f32 %v3110_v52, %v2947_v44  ;;  %v6887_v28 = vpop.f32.mrb[115].mxu1  ;;  %v3115_v27 = vpop.f32.mrb[144].mxu0  ;;  %v4387_v52 = vsel %vm2520_vm14, %v4384_v60, %v4386_v49 }
 0x3e4   : > { %7169 = vmatmul.mubr.bf16.gmra.mrb[216].mxu1 %v3995_v16  ;;  %v6934_v54 = vpop.f32.mrb[145].mxu0 }
 0x3e5   : > { %7172 = vmatprep.mubr.msk.bf16.mxu1 %vm7670_vm6, %v7669_v58  ;;  %v3118_v43 = vpop.f32.mrb[146].mxu0 }
 0x3e6   : > { %v6935_v19 = vpop.f32.mrb[147].mxu0 }
 0x3e8   : > { %7217 = vmatmul.mubr.bf16.gmra.mrb[248].mxu0 %v4204_v22  ;;  %v2952_v47 = vpop.f32.mrb[116].mxu1 }
 0x3e9   : > { %v9080_v38 = vadd.f32 %v3115_v27, %v2952_v47  ;;  %v6890_v31 = vpop.f32.mrb[117].mxu1 }
 0x3ea   : > { %v2955_v55 = vpop.f32.mrb[118].mxu1  ;;  %v4390_v31 = vrot.slane %v8771_v41, 6 }
 0x3eb   : > { %v9082_v56 = vadd.f32 %v3118_v43, %v2955_v55  ;;  %v6891_v21 = vpop.f32.mrb[119].mxu1  ;;  %v3123_v46 = vpop.f32.mrb[148].mxu0  ;;  %v4389_v43 = vsel %vm2520_vm14, %v4386_v49, %v4388_v15 }
 0x3ec   : > { %7173 = vmatmul.mubr.bf16.gmra.mrb[220].mxu1 %v3994_v53  ;;  %v6938_v17 = vpop.f32.mrb[149].mxu0  ;;  %v4391_v21 = vsel %vm2520_vm14, %v4388_v15, %v4390_v31 }
 0x3ed   : > { %7236 = vmatprep.mubr.msk.bf16.mxu1 %vm7670_vm6, %v7669_v58  ;;  %v3126_v37 = vpop.f32.mrb[150].mxu0 }
 0x3ee   : > { %v6939_v29 = vpop.f32.mrb[151].mxu0 }
 0x3f0   : > { %v2960_v26 = vpop.f32.mrb[120].mxu1 }
 0x3f1   : > { %v9086_v18 = vadd.f32 %v3123_v46, %v2960_v26  ;;  %v6894_v48 = vpop.f32.mrb[121].mxu1 }
 0x3f2   : > { %v2963_v34 = vpop.f32.mrb[122].mxu1 }
 0x3f3   : > { %v9089_v32 = vadd.f32 %v3126_v37, %v2963_v34  ;;  %v6895_v57 = vpop.f32.mrb[123].mxu1  ;;  %v3131_v45 = vpop.f32.mrb[152].mxu0  ;;  %v4392_v37 = vrot.slane %v8810_v36, 6 }
 0x3f4   : > { %7237 = vmatmul.mubr.bf16.vlgmr.msra.gmra.mrb[224].mxu1 %v4385_v30  ;;  %v6942_v13 = vpop.f32.mrb[153].mxu0  ;;  %v4363_v30 = vld [vmem:[#allocation3 + $0x38] sm:$0xff] }
 0x3f5   : > { %7240 = vmatprep.mubr.msk.bf16.mxu1 %vm7670_vm6, %v7669_v58  ;;  %v3134_v62 = vpop.f32.mrb[154].mxu0  ;;  %v4393_v48 = vsel %vm2520_vm14, %v4390_v31, %v4392_v37  ;;  %v4394_v36 = vrot.slane %v4363_v30, 6 }
 0x3f6   : > { %v6943_v33 = vpop.f32.mrb[155].mxu0 }
 0x3f8   : > { %v2968_v23 = vpop.f32.mrb[124].mxu1 }
 0x3f9   : > { %v9094_v22 = vadd.f32 %v3131_v45, %v2968_v23  ;;  %v6898_v39 = vpop.f32.mrb[125].mxu1 }
 0x3fa   : > { %v2971_v14 = vpop.f32.mrb[126].mxu1 }
 0x3fb   : > { %v9097_v42 = vadd.f32 %v3134_v62, %v2971_v14  ;;  %v6899_v25 = vpop.f32.mrb[127].mxu1  ;;  %v3139_v53 = vpop.f32.mrb[156].mxu0  ;;  %v4395_v14 = vsel %vm2520_vm14, %v4392_v37, %v4394_v36 }
 0x3fc   : > { %7241 = vmatmul.mubr.bf16.gmra.mrb[228].mxu1 %v4387_v52  ;;  %v6946_v51 = vpop.f32.mrb[157].mxu0 }
 0x3fd   : > { %7244 = vmatprep.mubr.msk.bf16.mxu1 %vm7670_vm6, %v7669_v58  ;;  %v3142_v35 = vpop.f32.mrb[158].mxu0 }
 0x3fe   : > { %v6947_v44 = vpop.f32.mrb[159].mxu0 }
 0x400   : > { %v2976_v16 = vpop.f32.mrb[128].mxu1 }
 0x401   : > { %v9102_v28 = vadd.f32 %v3139_v53, %v2976_v16  ;;  %v6902_v27 = vpop.f32.mrb[129].mxu1 }
 0x402   : > { %v2979_v54 = vpop.f32.mrb[130].mxu1 }
 0x403   : > { %v9105_v19 = vadd.f32 %v3142_v35, %v2979_v54  ;;  %v6903_v47 = vpop.f32.mrb[131].mxu1 }
 0x404   : > { %7245 = vmatmul.mubr.bf16.gmra.mrb[232].mxu1 %v4389_v43 }
 0x405   : > { %7248 = vmatprep.mubr.msk.bf16.mxu1 %vm7670_vm6, %v7669_v58 }
 0x40b   : > { %v3147_v55 = vpop.f32.mrb[160].mxu0 }
 0x40c   : > { %v6950_v40 = vpop.f32.mrb[161].mxu0  ;;  %7249 = vmatmul.mubr.bf16.gmra.mrb[236].mxu1 %v4391_v21 }
 0x40d   : > { %v3150_v46 = vpop.f32.mrb[162].mxu0  ;;  %7252 = vmatprep.mubr.msk.bf16.mxu1 %vm7670_vm6, %v7669_v58 }
 0x40e   : > { %v6951_v17 = vpop.f32.mrb[163].mxu0 }
 0x40f   : > { %v2984_v24 = vpop.f32.mrb[132].mxu1 }
 0x410   : > { %v9114_v29 = vadd.f32 %v3147_v55, %v2984_v24  ;;  %v6906_v61 = vpop.f32.mrb[133].mxu1 }
 0x411   : > { %v2987_v50 = vpop.f32.mrb[134].mxu1 }
 0x412   : > { %v9116_v60 = vadd.f32 %v3150_v46, %v2987_v50  ;;  %v6907_v41 = vpop.f32.mrb[135].mxu1 }
 0x413   : > { %v3155_v26 = vpop.f32.mrb[164].mxu0 }
 0x414   : > { %v6954_v34 = vpop.f32.mrb[165].mxu0  ;;  %7253 = vmatmul.mubr.bf16.gmra.mrb[240].mxu1 %v4393_v48 }
 0x415   : > { %v3158_v57 = vpop.f32.mrb[166].mxu0  ;;  %7256 = vmatprep.mubr.msk.bf16.mxu1 %vm7670_vm6, %v7669_v58 }
 0x416   : > { %v6955_v45 = vpop.f32.mrb[167].mxu0 }
 0x417   : > { %v2992_v13 = vpop.f32.mrb[136].mxu1 }
 0x418   : > { %v9121_v62 = vadd.f32 %v3155_v26, %v2992_v13  ;;  %v6910_v33 = vpop.f32.mrb[137].mxu1 }
 0x419   : > { %v2995_v49 = vpop.f32.mrb[138].mxu1 }
 0x41a   : > { %v6911_v23 = vpop.f32.mrb[139].mxu1 }
 0x41b   : > { %v3525_v39 = vpop.f32.mrb[168].mxu0 }
 0x41c   : > { %v7018_v52 = vpop.f32.mrb[169].mxu0  ;;  %7257 = vmatmul.mubr.bf16.gmra.mrb[244].mxu1 %v4395_v14 }
 0x41d   : > { %v3528_v25 = vpop.f32.mrb[170].mxu0  ;;  %7260 = vmatprep.mubr.msk.bf16.mxu1 %vm7670_vm6, %v7669_v58  ;;  %vm5419_vm6 = vcmask (!%p6042_p6), 523264  }
 0x41e   : > { %v7019_v53 = vpop.f32.mrb[171].mxu0 }
 0x41f   : > { %v3284_v51 = vpop.f32.mrb[140].mxu1 }
 0x420   : > { %v3338_v35 = vadd.f32 %v3284_v51, %v9071_v63  ;;  %v6974_v44 = vpop.f32.mrb[141].mxu1 }
 0x421   : > { %v3287_v15 = vpop.f32.mrb[142].mxu1 }
 0x422   : > { %v3339_v16 = vadd.f32 %v3287_v15, %v9076_v59  ;;  %v6975_v27 = vpop.f32.mrb[143].mxu1  ;;  %v9128_v54 = vadd.f32 %v3525_v39, %v3338_v35 }
 0x423   : > { %v3533_v43 = vpop.f32.mrb[172].mxu0 }
 0x424   : > { %v7022_v47 = vpop.f32.mrb[173].mxu0  ;;  %7261 = vmatmul.mubr.bf16.gmra.mrb[248].mxu1 %v4394_v36  ;;  %v9130_v31 = vadd.f32 %v3528_v25, %v3339_v16 }
 0x425   : > { %v3536_v55 = vpop.f32.mrb[174].mxu0 }
 0x426   : > { %v7023_v21 = vpop.f32.mrb[175].mxu0 }
 0x427   : > { %v3292_v40 = vpop.f32.mrb[144].mxu1 }
 0x428   : > { %v3340_v58 = vadd.f32 %v3292_v40, %v9080_v38  ;;  %v6978_v46 = vpop.f32.mrb[145].mxu1 }
 0x429   : > { %v3295_v17 = vpop.f32.mrb[146].mxu1 }
 0x42a   : > { %v3341_v63 = vadd.f32 %v3295_v17, %v9082_v56  ;;  %v6979_v24 = vpop.f32.mrb[147].mxu1  ;;  %v9134_v37 = vadd.f32 %v3533_v43, %v3340_v58 }
 0x42b   : > { %v3541_v59 = vpop.f32.mrb[176].mxu0 }
 0x42c   : > { %v7026_v61 = vpop.f32.mrb[177].mxu0  ;;  %v9136_v50 = vadd.f32 %v3536_v55, %v3341_v63 }
 0x42d   : > { %v3544_v41 = vpop.f32.mrb[178].mxu0 }
 0x42e   : > { %v7027_v26 = vpop.f32.mrb[179].mxu0 }
 0x42f   : > { %v3300_v48 = vpop.f32.mrb[148].mxu1 }
 0x430   : > { %v3342_v34 = vadd.f32 %v3300_v48, %v9086_v18  ;;  %v6982_v30 = vpop.f32.mrb[149].mxu1 }
 0x431   : > { %v3303_v57 = vpop.f32.mrb[150].mxu1 }
 0x432   : > { %v3343_v38 = vadd.f32 %v3303_v57, %v9089_v32  ;;  %v6983_v45 = vpop.f32.mrb[151].mxu1  ;;  %v9140_v13 = vadd.f32 %v3541_v59, %v3342_v34 }
 0x433   : > { %v3549_v56 = vpop.f32.mrb[180].mxu0 }
 0x434   : > { %v7030_v36 = vpop.f32.mrb[181].mxu0  ;;  %v9142_v33 = vadd.f32 %v3544_v41, %v3343_v38 }
 0x435   : > { %v3552_v49 = vpop.f32.mrb[182].mxu0 }
 0x436   : > { %v7031_v23 = vpop.f32.mrb[183].mxu0 }
 0x437   : > { %v3308_v39 = vpop.f32.mrb[152].mxu1 }
 0x438   : > { %v3344_v14 = vadd.f32 %v3308_v39, %v9094_v22  ;;  %v6986_v52 = vpop.f32.mrb[153].mxu1 }
 0x439   : > { %v3311_v25 = vpop.f32.mrb[154].mxu1 }
 0x43a   : > { %v3345_v18 = vadd.f32 %v3311_v25, %v9097_v42  ;;  %v6987_v53 = vpop.f32.mrb[155].mxu1  ;;  %v9146_v51 = vadd.f32 %v3549_v56, %v3344_v14 }
 0x43b   : > { %v3557_v32 = vpop.f32.mrb[184].mxu0 }
 0x43c   : > { %v7034_v35 = vpop.f32.mrb[185].mxu0  ;;  %v9148_v44 = vadd.f32 %v3552_v49, %v3345_v18 }
 0x43d   : > { %v3560_v15 = vpop.f32.mrb[186].mxu0 }
 0x43e   : > { %v7035_v16 = vpop.f32.mrb[187].mxu0 }
 0x43f   : > { %v3316_v27 = vpop.f32.mrb[156].mxu1 }
 0x440   : > { %v3346_v43 = vadd.f32 %v3316_v27, %v9102_v28  ;;  %v6990_v47 = vpop.f32.mrb[157].mxu1 }
 0x441   : > { %v3319_v55 = vpop.f32.mrb[158].mxu1 }
 0x442   : > { %v3347_v22 = vadd.f32 %v3319_v55, %v9105_v19  ;;  %v6991_v21 = vpop.f32.mrb[159].mxu1  ;;  %v9152_v40 = vadd.f32 %v3557_v32, %v3346_v43 }
 0x443   : > { %v3565_v42 = vpop.f32.mrb[188].mxu0 }
 0x444   : > { %v7038_v58 = vpop.f32.mrb[189].mxu0  ;;  %v9154_v46 = vadd.f32 %v3560_v15, %v3347_v22 }
 0x445   : > { %v3568_v17 = vpop.f32.mrb[190].mxu0 }
 0x446   : > { %v7039_v63 = vpop.f32.mrb[191].mxu0 }
 0x447   : > { %v3324_v24 = vpop.f32.mrb[160].mxu1 }
 0x448   : > { %v3348_v59 = vadd.f32 %v3324_v24, %v9114_v29  ;;  %v6994_v61 = vpop.f32.mrb[161].mxu1 }
 0x449   : > { %v3327_v41 = vpop.f32.mrb[162].mxu1 }
 0x44a   : > { %v3349_v28 = vadd.f32 %v3327_v41, %v9116_v60  ;;  %v6995_v26 = vpop.f32.mrb[163].mxu1  ;;  %v9158_v48 = vadd.f32 %v3565_v42, %v3348_v59 }
 0x44b   : > { %v3573_v19 = vpop.f32.mrb[192].mxu0 }
 0x44c   : > { %v7042_v34 = vpop.f32.mrb[193].mxu0  ;;  %v9160_v30 = vadd.f32 %v3568_v17, %v3349_v28 }
 0x44d   : > { %v3576_v57 = vpop.f32.mrb[194].mxu0 }
 0x44e   : > { %v7043_v38 = vpop.f32.mrb[195].mxu0 }
 0x44f   : > { %v3332_v45 = vpop.f32.mrb[164].mxu1 }
 0x450   : > { %v3350_v56 = vadd.f32 %v3332_v45, %v9121_v62  ;;  %v6998_v36 = vpop.f32.mrb[165].mxu1 }
 0x451   : > { %v3335_v49 = vpop.f32.mrb[166].mxu1 }
 0x452   : > { %v6999_v23 = vpop.f32.mrb[167].mxu1  ;;  %v9163_v29 = vadd.f32 %v3573_v19, %v3350_v56 }
 0x453   : > { %v3890_v39 = vpop.f32.mrb[196].mxu0 }
 0x454   : > { %v7106_v14 = vpop.f32.mrb[197].mxu0 }
 0x455   : > { %v3893_v60 = vpop.f32.mrb[198].mxu0 }
 0x456   : > { %v7107_v52 = vpop.f32.mrb[199].mxu0 }
 0x457   : > { %v3692_v25 = vpop.f32.mrb[168].mxu1 }
 0x458   : > { %v3746_v18 = vadd.f32 %v3692_v25, %v9128_v54  ;;  %v7062_v53 = vpop.f32.mrb[169].mxu1 }
 0x459   : > { %v3695_v32 = vpop.f32.mrb[170].mxu1 }
 0x45a   : > { %v3747_v35 = vadd.f32 %v3695_v32, %v9130_v31  ;;  %v7063_v15 = vpop.f32.mrb[171].mxu1  ;;  %v9167_v16 = vadd.f32 %v3890_v39, %v3746_v18 }
 0x45b   : > { %v3898_v62 = vpop.f32.mrb[200].mxu0 }
 0x45c   : > { %v7110_v27 = vpop.f32.mrb[201].mxu0  ;;  %v9169_v43 = vadd.f32 %v3893_v60, %v3747_v35 }
 0x45d   : > { %v3901_v47 = vpop.f32.mrb[202].mxu0 }
 0x45e   : > { %v7111_v55 = vpop.f32.mrb[203].mxu0 }
 0x45f   : > { %v3700_v22 = vpop.f32.mrb[172].mxu1 }
 0x460   : > { %v3748_v21 = vadd.f32 %v3700_v22, %v9134_v37  ;;  %v7066_v42 = vpop.f32.mrb[173].mxu1 }
 0x461   : > { %v3703_v58 = vpop.f32.mrb[174].mxu1 }
 0x462   : > { %v3749_v54 = vadd.f32 %v3703_v58, %v9136_v50  ;;  %v7067_v17 = vpop.f32.mrb[175].mxu1  ;;  %v9173_v63 = vadd.f32 %v3898_v62, %v3748_v21 }
 0x463   : > { %v3906_v31 = vpop.f32.mrb[204].mxu0 }
 0x464   : > { %v7114_v24 = vpop.f32.mrb[205].mxu0  ;;  %v9175_v59 = vadd.f32 %v3901_v47, %v3749_v54 }
 0x465   : > { %v3909_v61 = vpop.f32.mrb[206].mxu0 }
 0x466   : > { %v7115_v41 = vpop.f32.mrb[207].mxu0 }
 0x467   : > { %v3708_v28 = vpop.f32.mrb[176].mxu1 }
 0x468   : > { %v3750_v26 = vadd.f32 %v3708_v28, %v9140_v13  ;;  %v7070_v19 = vpop.f32.mrb[177].mxu1 }
 0x469   : > { %v3711_v34 = vpop.f32.mrb[178].mxu1 }
 0x46a   : > { %v3751_v37 = vadd.f32 %v3711_v34, %v9142_v33  ;;  %v7071_v57 = vpop.f32.mrb[179].mxu1  ;;  %v9179_v38 = vadd.f32 %v3906_v31, %v3750_v26 }
 0x46b   : > { %v3914_v50 = vpop.f32.mrb[208].mxu0 }
 0x46c   : > { %v7118_v45 = vpop.f32.mrb[209].mxu0  ;;  %v9181_v56 = vadd.f32 %v3909_v61, %v3751_v37 }
 0x46d   : > { %v3917_v36 = vpop.f32.mrb[210].mxu0 }
 0x46e   : > { %v7119_v49 = vpop.f32.mrb[211].mxu0 }
 0x46f   : > { %v3716_v23 = vpop.f32.mrb[180].mxu1 }
 0x470   : > { %v3752_v39 = vadd.f32 %v3716_v23, %v9146_v51  ;;  %v7074_v14 = vpop.f32.mrb[181].mxu1 }
 0x471   : > { %v3719_v60 = vpop.f32.mrb[182].mxu1 }
 0x472   : > { %v3753_v13 = vadd.f32 %v3719_v60, %v9148_v44  ;;  %v7075_v52 = vpop.f32.mrb[183].mxu1  ;;  %v9185_v25 = vadd.f32 %v3914_v50, %v3752_v39 }
 0x473   : > { %v3922_v33 = vpop.f32.mrb[212].mxu0 }
 0x474   : > { %v7122_v18 = vpop.f32.mrb[213].mxu0  ;;  %v9187_v53 = vadd.f32 %v3917_v36, %v3753_v13 }
 0x475   : > { %v3925_v32 = vpop.f32.mrb[214].mxu0 }
 0x476   : > { %v7123_v35 = vpop.f32.mrb[215].mxu0 }
 0x477   : > { %v3724_v15 = vpop.f32.mrb[184].mxu1 }
 0x478   : > { %v3754_v62 = vadd.f32 %v3724_v15, %v9152_v40  ;;  %v7078_v27 = vpop.f32.mrb[185].mxu1 }
 0x479   : > { %v3727_v47 = vpop.f32.mrb[186].mxu1 }
 0x47a   : > { %v3755_v51 = vadd.f32 %v3727_v47, %v9154_v46  ;;  %v7079_v55 = vpop.f32.mrb[187].mxu1  ;;  %v9191_v22 = vadd.f32 %v3922_v33, %v3754_v62 }
 0x47b   : > { %v3930_v44 = vpop.f32.mrb[216].mxu0 }
 0x47c   : > { %v7126_v21 = vpop.f32.mrb[217].mxu0  ;;  %v9193_v42 = vadd.f32 %v3925_v32, %v3755_v51 }
 0x47d   : > { %v3933_v58 = vpop.f32.mrb[218].mxu0 }
 0x47e   : > { %v7127_v54 = vpop.f32.mrb[219].mxu0 }
 0x47f   : > { %v3732_v17 = vpop.f32.mrb[188].mxu1 }
 0x480   : > { %v3756_v31 = vadd.f32 %v3732_v17, %v9158_v48  ;;  %v7082_v24 = vpop.f32.mrb[189].mxu1 }
 0x481   : > { %v3735_v61 = vpop.f32.mrb[190].mxu1 }
 0x482   : > { %v3757_v40 = vadd.f32 %v3735_v61, %v9160_v30  ;;  %v7083_v41 = vpop.f32.mrb[191].mxu1  ;;  %v9197_v28 = vadd.f32 %v3930_v44, %v3756_v31 }
 0x483   : > { %v3938_v46 = vpop.f32.mrb[220].mxu0 }
 0x484   : > { %v7130_v26 = vpop.f32.mrb[221].mxu0  ;;  %v9199_v19 = vadd.f32 %v3933_v58, %v3757_v40 }
 0x485   : > { %v3941_v34 = vpop.f32.mrb[222].mxu0 }
 0x486   : > { %v7131_v37 = vpop.f32.mrb[223].mxu0 }
 0x487   : > { %v3740_v57 = vpop.f32.mrb[192].mxu1 }
 0x488   : > { %v3758_v50 = vadd.f32 %v3740_v57, %v9163_v29  ;;  %v7086_v45 = vpop.f32.mrb[193].mxu1 }
 0x489   : > { %v3743_v36 = vpop.f32.mrb[194].mxu1 }
 0x48a   : > { %v7087_v49 = vpop.f32.mrb[195].mxu1  ;;  %v9202_v48 = vadd.f32 %v3938_v46, %v3758_v50 }
 0x48b   : > { %v4295_v23 = vpop.f32.mrb[224].mxu0 }
 0x48c   : > { %v7194_v39 = vpop.f32.mrb[225].mxu0 }
 0x48d   : > { %v4298_v30 = vpop.f32.mrb[226].mxu0 }
 0x48e   : > { %v7195_v14 = vpop.f32.mrb[227].mxu0 }
 0x48f   : > { %v4085_v60 = vpop.f32.mrb[196].mxu1 }
 0x490   : > { %v4139_v13 = vadd.f32 %v4085_v60, %v9167_v16  ;;  %v7150_v52 = vpop.f32.mrb[197].mxu1 }
 0x491   : > { %v4088_v33 = vpop.f32.mrb[198].mxu1 }
 0x492   : > { %v4140_v18 = vadd.f32 %v4088_v33, %v9169_v43  ;;  %v7151_v32 = vpop.f32.mrb[199].mxu1  ;;  %v9206_v35 = vadd.f32 %v4295_v23, %v4139_v13 }
 0x493   : > { %v4303_v29 = vpop.f32.mrb[228].mxu0 }
 0x494   : > { %v7198_v15 = vpop.f32.mrb[229].mxu0  ;;  %v9208_v62 = vadd.f32 %v4298_v30, %v4140_v18 }
 0x495   : > { %v4306_v27 = vpop.f32.mrb[230].mxu0 }
 0x496   : > { %v7199_v47 = vpop.f32.mrb[231].mxu0 }
 0x497   : > { %v4093_v51 = vpop.f32.mrb[200].mxu1 }
 0x498   : > { %v4141_v55 = vadd.f32 %v4093_v51, %v9173_v63  ;;  %v7154_v44 = vpop.f32.mrb[201].mxu1 }
 0x499   : > { %v4096_v21 = vpop.f32.mrb[202].mxu1 }
 0x49a   : > { %v4142_v16 = vadd.f32 %v4096_v21, %v9175_v59  ;;  %v7155_v58 = vpop.f32.mrb[203].mxu1  ;;  %v9212_v54 = vadd.f32 %v4303_v29, %v4141_v55 }
 0x49b   : > { %v4311_v43 = vpop.f32.mrb[232].mxu0 }
 0x49c   : > { %v7202_v17 = vpop.f32.mrb[233].mxu0  ;;  %v9214_v31 = vadd.f32 %v4306_v27, %v4142_v16 }
 0x49d   : > { %v4314_v24 = vpop.f32.mrb[234].mxu0 }
 0x49e   : > { %v7203_v61 = vpop.f32.mrb[235].mxu0 }
 0x49f   : > { %v4101_v40 = vpop.f32.mrb[204].mxu1 }
 0x4a0   : > { %v4143_v41 = vadd.f32 %v4101_v40, %v9179_v38  ;;  %v7158_v46 = vpop.f32.mrb[205].mxu1 }
 0x4a1   : > { %v4104_v26 = vpop.f32.mrb[206].mxu1 }
 0x4a2   : > { %v4144_v63 = vadd.f32 %v4104_v26, %v9181_v56  ;;  %v7159_v34 = vpop.f32.mrb[207].mxu1  ;;  %v9218_v37 = vadd.f32 %v4311_v43, %v4143_v41 }
 0x4a3   : > { %v4319_v59 = vpop.f32.mrb[236].mxu0 }
 0x4a4   : > { %v7206_v57 = vpop.f32.mrb[237].mxu0  ;;  %v9220_v50 = vadd.f32 %v4314_v24, %v4144_v63 }
 0x4a5   : > { %v4322_v45 = vpop.f32.mrb[238].mxu0 }
 0x4a6   : > { %v7207_v36 = vpop.f32.mrb[239].mxu0 }
 0x4a7   : > { %v4109_v49 = vpop.f32.mrb[208].mxu1 }
 0x4a8   : > { %v4145_v23 = vadd.f32 %v4109_v49, %v9185_v25  ;;  %v7162_v39 = vpop.f32.mrb[209].mxu1  ;;  %v4552_v49 = vld [vmem:[#allocation2 + $0x8] sm:$0xff] }
 0x4a9   : > { %v4112_v30 = vpop.f32.mrb[210].mxu1 }
 0x4aa   : > { %v4146_v38 = vadd.f32 %v4112_v30, %v9187_v53  ;;  %v7163_v14 = vpop.f32.mrb[211].mxu1  ;;  %v9224_v60 = vadd.f32 %v4319_v59, %v4145_v23  ;;  %v9244_v23 = vld [vmem:[%s7852_s24 + $0x1] ss:$0 sm:$0xff]  ;;  %v4559_v30 = vunpack.c.l.bf16 %v4552_v49 }
 0x4ab   : > { %v4327_v56 = vpop.f32.mrb[240].mxu0 }
 0x4ac   : > { %v7210_v13 = vpop.f32.mrb[241].mxu0  ;;  %v9226_v52 = vadd.f32 %v4322_v45, %v4146_v38 }
 0x4ad   : > { %v4330_v33 = vpop.f32.mrb[242].mxu0 }
 0x4ae   : > { %v7211_v18 = vpop.f32.mrb[243].mxu0 }
 0x4af   : > { %v4117_v32 = vpop.f32.mrb[212].mxu1 }
 0x4b0   : > { %v4147_v29 = vadd.f32 %v4117_v32, %v9191_v22  ;;  %v7166_v15 = vpop.f32.mrb[213].mxu1 }
 0x4b1   : > { %v4120_v27 = vpop.f32.mrb[214].mxu1 }
 0x4b2   : > { %v4148_v25 = vadd.f32 %v4120_v27, %v9193_v42  ;;  %v7167_v47 = vpop.f32.mrb[215].mxu1  ;;  %v9230_v51 = vadd.f32 %v4327_v56, %v4147_v29  ;;  %v4553_v29 = vld [vmem:[#allocation2 + $0x10] sm:$0xff] }
 0x4b3   : > { %v4335_v53 = vpop.f32.mrb[244].mxu0 }
 0x4b4   : > { %v7214_v55 = vpop.f32.mrb[245].mxu0  ;;  %v9232_v44 = vadd.f32 %v4330_v33, %v4148_v25  ;;  %v4560_v33 = vunpack.c.h.bf16 %v4552_v49 }
 0x4b5   : > { %v4338_v21 = vpop.f32.mrb[246].mxu0 }
 0x4b6   : > { %v7215_v16 = vpop.f32.mrb[247].mxu0 }
 0x4b7   : > { %v4125_v58 = vpop.f32.mrb[216].mxu1  ;;  %v4562_v16 = vunpack.c.h.bf16 %v4553_v29 }
 0x4b8   : > { %v4149_v43 = vadd.f32 %v4125_v58, %v9197_v28  ;;  %v7170_v17 = vpop.f32.mrb[217].mxu1 }
 0x4b9   : > { %v4128_v24 = vpop.f32.mrb[218].mxu1 }
 0x4ba   : > { %v4150_v22 = vadd.f32 %v4128_v24, %v9199_v19  ;;  %v7171_v61 = vpop.f32.mrb[219].mxu1  ;;  %v9236_v40 = vadd.f32 %v4335_v53, %v4149_v43 }
 0x4bb   : > { %v4343_v42 = vpop.f32.mrb[248].mxu0 }
 0x4bc   : > { %v7218_v41 = vpop.f32.mrb[249].mxu0  ;;  %v9238_v46 = vadd.f32 %v4338_v21, %v4150_v22 }
 0x4bd   : > { %v4346_v26 = vpop.f32.mrb[250].mxu0  ;;  %v4554_v41 = vld [vmem:[#allocation2 + $0x18] sm:$0xff] }
 0x4be   : > { %v7219_v63 = vpop.f32.mrb[251].mxu0 }
 0x4bf   : > { %v4133_v34 = vpop.f32.mrb[220].mxu1 }
 0x4c0   : > { %v4151_v59 = vadd.f32 %v4133_v34, %v9202_v48  ;;  %v7174_v57 = vpop.f32.mrb[221].mxu1 }
 0x4c1   : > { %v4136_v45 = vpop.f32.mrb[222].mxu1 }
 0x4c2   : > { %v7175_v28 = vpop.f32.mrb[223].mxu1  ;;  %v9241_v36 = vadd.f32 %v4343_v42, %v4151_v59  ;;  %v4564_v45 = vunpack.c.h.bf16 %v4554_v41 }
 0x4c7   : > { %v4485_v19 = vpop.f32.mrb[224].mxu1 }
 0x4c8   : > { %v4539_v39 = vadd.f32 %v4485_v19, %v9206_v35  ;;  %v7238_v38 = vpop.f32.mrb[225].mxu1  ;;  %v4561_v35 = vunpack.c.l.bf16 %v4553_v29 }
 0x4c9   : > { %v4488_v14 = vpop.f32.mrb[226].mxu1 }
 0x4ca   : > { %v4577_v56 = vadd.f32 %v9244_v23, %v4539_v39  ;;  %v4540_v13 = vadd.f32 %v4488_v14, %v9208_v62  ;;  %v7239_v48 = vpop.f32.mrb[227].mxu1 }
 0x4cc   : > { %v4590_v18 = vadd.f32 %v4577_v56, %v4559_v30  ;;  %v4578_v32 = vadd.f32 %v9244_v23, %v4540_v13  ;;  %v4555_v56 = vld [vmem:[#allocation2 + $0x20] sm:$0xff] }
 0x4cd   : > { %v4566_v29 = vunpack.c.h.bf16 %v4555_v56 }
 0x4ce   : > { %v4603_v15 = vmax.f32 %v4590_v18, 0.0  ;;  %v4591_v27 = vadd.f32 %v4578_v32, %v4560_v33 }
 0x4cf   : > { %v4493_v25 = vpop.f32.mrb[228].mxu1 }
 0x4d0   : > { %v4604_v47 = vmax.f32 %v4591_v27, 0.0  ;;  %v4541_v53 = vadd.f32 %v4493_v25, %v9212_v54  ;;  %v7242_v55 = vpop.f32.mrb[229].mxu1  ;;  %v4616_v58 = vmul.f32 %v4603_v15, %v7786_v0  ;;  %v4563_v0 = vunpack.c.l.bf16 %v4554_v41 }
 0x4d1   : > { %v4496_v21 = vpop.f32.mrb[230].mxu1 }
 0x4d2   : > { %v4617_v62 = vmul.f32 %v4604_v47, %v7791_v1  ;;  %v4579_v43 = vadd.f32 %v9244_v23, %v4541_v53  ;;  %v4542_v17 = vadd.f32 %v4496_v21, %v9214_v31  ;;  %v7243_v24 = vpop.f32.mrb[231].mxu1  ;;  %v4556_v21 = vld [vmem:[#allocation2 + $0x28] sm:$0xff] }
 0x4d3   : > { %v4568_v24 = vunpack.c.h.bf16 %v4556_v21 }
 0x4d4   : > { %v4629_v22 = vpack.c.bf16 %v4617_v62, %v4616_v58  ;;  %v4592_v61 = vadd.f32 %v4579_v43, %v4561_v35  ;;  %v4580_v42 = vadd.f32 %v9244_v23, %v4542_v17 }
 0x4d6   : > { %4636 = vst [vmem:[#allocation2 + $0x8] sm:$0xff] %v4629_v22  ;;  %v4605_v54 = vmax.f32 %v4592_v61, 0.0  ;;  %v4593_v26 = vadd.f32 %v4580_v42, %v4562_v16 }
 0x4d7   : > { %v4501_v63 = vpop.f32.mrb[232].mxu1 }
 0x4d8   : > { %v4606_v34 = vmax.f32 %v4593_v26, 0.0  ;;  %v4543_v59 = vadd.f32 %v4501_v63, %v9218_v37  ;;  %v7246_v57 = vpop.f32.mrb[233].mxu1  ;;  %v4618_v28 = vmul.f32 %v4605_v54, %v7796_v2  ;;  %v4565_v2 = vunpack.c.l.bf16 %v4555_v56  ;;  %v4558_v56 = vld [vmem:[#allocation2 + $0x38] sm:$0x3] }
 0x4d9   : > { %v4504_v1 = vpop.f32.mrb[234].mxu1 }
 0x4da   : > { %v4619_v31 = vmul.f32 %v4606_v34, %v7801_v3  ;;  %v4581_v49 = vadd.f32 %v9244_v23, %v4543_v59  ;;  %v4544_v19 = vadd.f32 %v4504_v1, %v9220_v50  ;;  %v7247_v39 = vpop.f32.mrb[235].mxu1  ;;  %v4557_v34 = vld [vmem:[#allocation2 + $0x30] sm:$0xff] }
 0x4dc   : > { %v4630_v30 = vpack.c.bf16 %v4619_v31, %v4618_v28  ;;  %v4594_v38 = vadd.f32 %v4581_v49, %v4563_v0  ;;  %v4582_v14 = vadd.f32 %v9244_v23, %v4544_v19  ;;  %v4570_v28 = vunpack.c.h.bf16 %v4557_v34 }
 0x4de   : > { %4637 = vst [vmem:[#allocation2 + $0x10] sm:$0xff] %v4630_v30  ;;  %v4607_v37 = vmax.f32 %v4594_v38, 0.0  ;;  %v4595_v13 = vadd.f32 %v4582_v14, %v4564_v45 }
 0x4df   : > { %v4509_v33 = vpop.f32.mrb[236].mxu1 }
 0x4e0   : > { %v4608_v48 = vmax.f32 %v4595_v13, 0.0  ;;  %v4545_v18 = vadd.f32 %v4509_v33, %v9224_v60  ;;  %v7250_v32 = vpop.f32.mrb[237].mxu1  ;;  %v4620_v15 = vmul.f32 %v4607_v37, %v7806_v4  ;;  %v4567_v4 = vunpack.c.l.bf16 %v4556_v21  ;;  %v7625_v21 = vld [vmem:[%s9616_s6 + $0x38] sm:$0xff] (!%p6042_p6)  }
 0x4e1   : > { %v4512_v3 = vpop.f32.mrb[238].mxu1 }
 0x4e2   : > { %v4621_v50 = vmul.f32 %v4608_v48, %v7811_v5  ;;  %v4583_v27 = vadd.f32 %v9244_v23, %v4545_v18  ;;  %v4546_v25 = vadd.f32 %v4512_v3, %v9226_v52  ;;  %v7251_v47 = vpop.f32.mrb[239].mxu1 }
 0x4e4   : > { %v4631_v53 = vpack.c.bf16 %v4621_v50, %v4620_v15  ;;  %v4596_v35 = vadd.f32 %v4583_v27, %v4565_v2  ;;  %v4584_v55 = vadd.f32 %v9244_v23, %v4546_v25  ;;  %v4642_v25 = vld [vmem:[#allocation2 + $0x38] sm:$0x3] }
 0x4e6   : > { %4638 = vst [vmem:[#allocation2 + $0x18] sm:$0xff] %v4631_v53  ;;  %v4609_v60 = vmax.f32 %v4596_v35, 0.0  ;;  %v4597_v16 = vadd.f32 %v4584_v55, %v4566_v29  ;;  %v7622_v53 = vld [vmem:[%s9616_s6 + $0x20] sm:$0xff] (!%p6042_p6)   ;;  %v7623_v35 = vld [vmem:[%s9616_s6 + $0x28] sm:$0xff] (!%p6042_p6)   ;;  %v7624_v55 = vld [vmem:[%s9616_s6 + $0x30] sm:$0xff] (!%p6042_p6)  }
 0x4e7   : > { %v4517_v58 = vpop.f32.mrb[240].mxu1 }
 0x4e8   : > { %v4610_v62 = vmax.f32 %v4597_v16, 0.0  ;;  %v4547_v43 = vadd.f32 %v4517_v58, %v9230_v51  ;;  %v7254_v17 = vpop.f32.mrb[241].mxu1  ;;  %v4622_v22 = vmul.f32 %v4609_v60, %v7817_v6  ;;  %v4569_v6 = vunpack.c.l.bf16 %v4557_v34  ;;  %v4649_v60 = vld [vmem:[#allocation2 + $0x8] sm:$0xff] (!%p6042_p6)  ;;  %v4650_v16 = vld [vmem:[#allocation2 + $0x10] sm:$0xff] (!%p6042_p6) }
 0x4e9   : > { %v4520_v5 = vpop.f32.mrb[242].mxu1 }
 0x4ea   : > { %v4623_v52 = vmul.f32 %v4610_v62, %v7822_v7  ;;  %v4585_v61 = vadd.f32 %v9244_v23, %v4547_v43  ;;  %v4548_v42 = vadd.f32 %v4520_v5, %v9232_v44  ;;  %v7255_v41 = vpop.f32.mrb[243].mxu1  ;;  %v9340_v5 = vld [vmem:[%s9617_s7] ss:$0 sm:$0xff] (!%p6042_p6) }
 0x4ec   : > { %v4632_v54 = vpack.c.bf16 %v4623_v52, %v4622_v22  ;;  %v4598_v26 = vadd.f32 %v4585_v61, %v4567_v4  ;;  %v4586_v63 = vadd.f32 %v9244_v23, %v4548_v42 }
 0x4ed   : > { %v4651_v58 = vld [vmem:[#allocation2 + $0x18] sm:$0xff] (!%p6042_p6) }
 0x4ee   : > { %4639 = vst [vmem:[#allocation2 + $0x20] sm:$0xff] %v4632_v54  ;;  %v4611_v51 = vmax.f32 %v4598_v26, 0.0  ;;  %v4599_v59 = vadd.f32 %v4586_v63, %v4568_v24 }
 0x4ef   : > { %v4525_v0 = vpop.f32.mrb[244].mxu1 }
 0x4f0   : > { %v4612_v57 = vmax.f32 %v4599_v59, 0.0  ;;  %v4549_v1 = vadd.f32 %v4525_v0, %v9236_v40  ;;  %v7258_v45 = vpop.f32.mrb[245].mxu1  ;;  %v4624_v31 = vmul.f32 %v4611_v51, %v7827_v8  ;;  %v4571_v8 = vunpack.c.l.bf16 %v4558_v56 }
 0x4f1   : > { %v4528_v7 = vpop.f32.mrb[246].mxu1 }
 0x4f2   : > { %v4625_v44 = vmul.f32 %v4612_v57, %v7832_v9  ;;  %v4587_v49 = vadd.f32 %v9244_v23, %v4549_v1  ;;  %v4550_v19 = vadd.f32 %v4528_v7, %v9238_v46  ;;  %v7259_v39 = vpop.f32.mrb[247].mxu1 }
 0x4f4   : > { %v4633_v30 = vpack.c.bf16 %v4625_v44, %v4624_v31  ;;  %v4600_v38 = vadd.f32 %v4587_v49, %v4569_v6  ;;  %v4588_v14 = vadd.f32 %v9244_v23, %v4550_v19 }
 0x4f5   : > { %v4652_v62 = vld [vmem:[#allocation2 + $0x20] sm:$0xff] (!%p6042_p6) }
 0x4f6   : > { %4640 = vst [vmem:[#allocation2 + $0x28] sm:$0xff] %v4633_v30  ;;  %v4613_v40 = vmax.f32 %v4600_v38, 0.0  ;;  %v4601_v37 = vadd.f32 %v4588_v14, %v4570_v28 }
 0x4f7   : > { %v4533_v13 = vpop.f32.mrb[248].mxu1 }
 0x4f8   : > { %v4614_v33 = vmax.f32 %v4601_v37, 0.0  ;;  %v4551_v48 = vadd.f32 %v4533_v13, %v9241_v36  ;;  %v7262_v18 = vpop.f32.mrb[249].mxu1  ;;  %v4626_v2 = vmul.f32 %v4613_v40, %v7837_v10  ;;  %v7618_v10 = vld [vmem:[%s9616_s6] sm:$0xff] (!%p6042_p6)  }
 0x4f9   : > { %v4536_v9 = vpop.f32.mrb[250].mxu1 }
 0x4fa   : > { %v4627_v46 = vmul.f32 %v4614_v33, %v7842_v11  ;;  %v4589_v32 = vadd.f32 %v9244_v23, %v4551_v48  ;;  %v7263_v3 = vpop.f32.mrb[251].mxu1  ;;  %v7671_v11 = vmov (!%p6042_p6), 0.0   ;;  %v7621_v23 = vld [vmem:[%s9616_s6 + $0x18] sm:$0xff] (!%p6042_p6)  }
 0x4fb   : > { %7264 = vmatprep.subr.bf16.mxu0 (!%p6042_p6), %v7671_v11  ;;  %7280 = vmatprep.mubr.msk.bf16.mxu0 (!%p6042_p6), %vm7672_vm1, %v7671_v11 }
 0x4fc   : > { %v4634_v29 = vpack.c.bf16 %v4627_v46, %v4626_v2  ;;  %v4602_v15 = vadd.f32 %v4589_v32, %v4571_v8  ;;  %7265 = vmatpush3.bf16.msra.mxu0 (!%p6042_p6), %v7618_v10 }
 0x4fd   : > { %7266 = vmatprep.subr.bf16.mxu0 (!%p6042_p6), %v7671_v11  ;;  %v4653_v43 = vld [vmem:[#allocation2 + $0x28] sm:$0xff] (!%p6042_p6) }
 0x4fe   : > { %4641 = vst [vmem:[#allocation2 + $0x30] sm:$0xff] %v4634_v29  ;;  %v4615_v50 = vmax.f32 %v4602_v15, 0.0 }
 0x4ff   : > { %4648 = sbr.rel (%p6042_p6) target bundleno = 2202 (0x89a), region = 88 }
 0x500   : > { %v4628_v27 = vmul.f32 %v4615_v50, %v7847_v12  ;;  %v7619_v12 = vld [vmem:[%s9616_s6 + $0x8] sm:$0xff] (!%p6042_p6)  }
 0x501   : > { %7267 = vmatpush3.bf16.msra.mxu0 (!%p6042_p6), %v7619_v12 }
 0x502   : > { %v4635_v47 = vpack.c.bf16 %v4628_v27, %v4628_v27  ;;  %7268 = vmatprep.subr.bf16.mxu0 (!%p6042_p6), %v7671_v11 }
 0x504   : > { %v4643_v36 = vsel %vm8830_vm0, %v4635_v47, %v4642_v25 }
 0x505   : > { %4644 = vst [vmem:[#allocation2 + $0x38] sm:$0x3] %v4643_v36  ;;  %7269 = vmatpush3.bf16.msra.mxu0 (!%p6042_p6), %v7620_v20  ;;  %v4654_v4 = vld [vmem:[#allocation2 + $0x30] sm:$0xff] (!%p6042_p6) }
 0x506   : > { %7270 = vmatprep.subr.bf16.mxu0 %v7671_v11 }
 0x509   : > { %7271 = vmatpush3.bf16.msra.mxu0 %v7621_v23 }
 0x50a   : > { %7272 = vmatprep.subr.bf16.mxu0 %v7671_v11 }
 0x50c   : > { %v4655_v17 = vld [vmem:[#allocation2 + $0x38] sm:$0x3] }
 0x50d   : > { %7273 = vmatpush3.bf16.msra.mxu0 %v7622_v53 }
 0x50e   : > { %7274 = vmatprep.subr.bf16.mxu0 %v7671_v11 }
 0x511   : > { %7275 = vmatpush3.bf16.msra.mxu0 %v7623_v35 }
 0x512   : > { %7276 = vmatprep.subr.bf16.mxu0 %v7671_v11 }
 0x515   : > { %7277 = vmatpush3.bf16.msra.mxu0 %v7624_v55  ;;  %v7626_v55 = vld [vmem:[%s9619_s9] sm:$0xff]  }
 0x516   : > { %7278 = vmatprep.subr.bf16.mxu0 %v7671_v11  ;;  %7322 = vmatprep.mubr.msk.bf16.mxu1 %vm4912_vm2, %v7626_v55  ;;  %v7640_v55 = vld [vmem:[%s9621_s11 + $0x10] sm:$0xff]  }
 0x519   : > { %7279 = vmatpush3.bf16.msra.mxu0 %v7625_v21 }
 0x51a   : > { %7382 = vmatprep.subr.bf16.mxu0 %v7671_v11 }
 0x51c   : > { %7281 = vmatmul.mubr.bf16.vlgmr.msra.gmra.mrb[0].mxu0 %v4649_v60 }
 0x51d   : > { %7284 = vmatprep.mubr.msk.bf16.mxu0 %vm7672_vm1, %v7671_v11 }
 0x524   : > { %7285 = vmatmul.mubr.bf16.gmra.mrb[4].mxu0 %v4650_v16 }
 0x525   : > { %7288 = vmatprep.mubr.msk.bf16.mxu0 %vm7672_vm1, %v7671_v11 }
 0x52c   : > { %7289 = vmatmul.mubr.bf16.gmra.mrb[8].mxu0 %v4651_v58 }
 0x52d   : > { %7292 = vmatprep.mubr.msk.bf16.mxu0 %vm7672_vm1, %v7671_v11 }
 0x534   : > { %7293 = vmatmul.mubr.bf16.gmra.mrb[12].mxu0 %v4652_v62 }
 0x535   : > { %7296 = vmatprep.mubr.msk.bf16.mxu0 %vm7672_vm1, %v7671_v11 }
 0x53c   : > { %7297 = vmatmul.mubr.bf16.gmra.mrb[16].mxu0 %v4653_v43 }
 0x53d   : > { %7300 = vmatprep.mubr.msk.bf16.mxu0 %vm7672_vm1, %v7671_v11 }
 0x544   : > { %7301 = vmatmul.mubr.bf16.gmra.mrb[20].mxu0 %v4654_v4 }
 0x545   : > { %7304 = vmatprep.mubr.msk.bf16.mxu0 %vm7672_vm1, %v7671_v11 }
 0x54c   : > { %7305 = vmatmul.mubr.bf16.gmra.mrb[24].mxu0 %v4655_v17 }
 0x54d   : > { %7390 = vmatprep.mubr.msk.bf16.mxu0 %vm7672_vm1, %v7671_v11 }
 0x5ef   : > { %v4761_v24 = vpop.f32.mrb[0].mxu0 }
 0x5f0   : > { %v4762_v22 = vadd.f32 %v9340_v5, %v4761_v24  ;;  %v7282_v52 = vpop.f32.mrb[1].mxu0  ;;  %v5232_v24 = vld [vmem:[%s9622_s12] sm:$0xff] }
 0x5f1   : > { %v4764_v61 = vpop.f32.mrb[2].mxu0  ;;  %v5234_v52 = vld [vmem:[%s9622_s12 + $0x10] sm:$0xff] }
 0x5f2   : > { %v4765_v42 = vadd.f32 %v9340_v5, %v4764_v61  ;;  %v7283_v41 = vpop.f32.mrb[3].mxu0  ;;  %v4815_v54 = vmax.f32 %v4762_v22, 0.0  ;;  %v7675_v22 = vmov 0   ;;  %v5235_v61 = vld [vmem:[%s9622_s12 + $0x18] sm:$0xff] }
 0x5f3   : > { %7617 = vset.pattern.permute.xlu1 %v7675_v22  ;;  %7616 = vset.pattern.permute.xlu0 %v7675_v22  ;;  %v5237_v41 = vld [vmem:[%s9622_s12 + $0x28] sm:$0xff] }
 0x5f4   : > { %v4816_v26 = vmax.f32 %v4765_v42, 0.0  ;;  %v5236_v42 = vld [vmem:[%s9622_s12 + $0x20] sm:$0xff] }
 0x5f6   : > { %v9344_v63 = vpack.c.bf16 %v4816_v26, %v4815_v54  ;;  %v5238_v26 = vld [vmem:[%s9622_s12 + $0x30] sm:$0xff] }
 0x5f7   : > { %v4769_v34 = vpop.f32.mrb[4].mxu0 }
 0x5f8   : > { %v4770_v51 = vadd.f32 %v9340_v5, %v4769_v34  ;;  %4892 = vrot.lane.b32.xlu0 %v9344_v63, %s7673_s26  ;;  %v7286_v59 = vpop.f32.mrb[5].mxu0  ;;  %v5239_v34 = vld [vmem:[%s9622_s12 + $0x38] sm:$0xff] }
 0x5f9   : > { %v4772_v0 = vpop.f32.mrb[6].mxu0  ;;  %v5148_v59 = vld [vmem:[%s9620_s10 + $0x8] sm:$0xff] }
 0x5fa   : > { %v4773_v57 = vadd.f32 %v9340_v5, %v4772_v0  ;;  %v7287_v1 = vpop.f32.mrb[7].mxu0  ;;  %v4817_v6 = vmax.f32 %v4770_v51, 0.0  ;;  %v5147_v51 = vld [vmem:[%s9620_s10] sm:$0xff] }
 0x5fb   : > { %v5150_v1 = vld [vmem:[%s9620_s10 + $0x18] sm:$0xff] }
 0x5fc   : > { %v4818_v45 = vmax.f32 %v4773_v57, 0.0  ;;  %v5149_v57 = vld [vmem:[%s9620_s10 + $0x10] sm:$0xff] }
 0x5fe   : > { %v9350_v7 = vpack.c.bf16 %v4818_v45, %v4817_v6  ;;  %v5151_v6 = vld [vmem:[%s9620_s10 + $0x20] sm:$0xff]  ;;  %v5152_v45 = vld [vmem:[%s9620_s10 + $0x28] sm:$0xff] }
 0x5ff   : > { %v4777_v28 = vpop.f32.mrb[8].mxu0 }
 0x600   : > { %v4778_v31 = vadd.f32 %v9340_v5, %v4777_v28  ;;  %4894 = vrot.lane.b32.xlu0 %v9350_v7, %s7673_s26  ;;  %v7290_v44 = vpop.f32.mrb[9].mxu0 }
 0x601   : > { %v4780_v49 = vpop.f32.mrb[10].mxu0  ;;  %v5154_v44 = vld [vmem:[%s9620_s10 + $0x38] sm:$0xff] }
 0x602   : > { %v4781_v19 = vadd.f32 %v9340_v5, %v4780_v49  ;;  %v7291_v39 = vpop.f32.mrb[11].mxu0  ;;  %v4819_v30 = vmax.f32 %v4778_v31, 0.0  ;;  %v5153_v31 = vld [vmem:[%s9620_s10 + $0x30] sm:$0xff]  ;;  %v5155_v49 = vld [vmem:[%s9620_s10 + $0x40] sm:$0xff] }
 0x604   : > { %v4820_v38 = vmax.f32 %v4781_v19, 0.0  ;;  %v5156_v19 = vld [vmem:[%s9620_s10 + $0x48] sm:$0xff] }
 0x606   : > { %v9356_v14 = vpack.c.bf16 %v4820_v38, %v4819_v30  ;;  %v5157_v30 = vld [vmem:[%s9620_s10 + $0x50] sm:$0x3]  ;;  %v5413_v38 = vld [vmem:[%s9624_s14] sm:$0x7] }
 0x607   : > { %v4785_v56 = vpop.f32.mrb[12].mxu0 }
 0x608   : > { %v4786_v40 = vadd.f32 %v9340_v5, %v4785_v56  ;;  %4896 = vrot.lane.b32.xlu1 %v9356_v14, %s7673_s26  ;;  %v7294_v37 = vpop.f32.mrb[13].mxu0 }
 0x609   : > { %v4788_v13 = vpop.f32.mrb[14].mxu0  ;;  %v7676_v37 = vmov 65535  }
 0x60a   : > { %v4789_v33 = vadd.f32 %v9340_v5, %v4788_v13  ;;  %v7295_v48 = vpop.f32.mrb[15].mxu0  ;;  %v4821_v8 = vmax.f32 %v4786_v40, 0.0  ;;  %v4933_v13 = vsel %vm4931_vm3, 4294967295, %v7676_v37 }
 0x60c   : > { %v4822_v18 = vmax.f32 %v4789_v33, 0.0  ;;  %v4934_v33 = vsel %vm2520_vm14, %v4933_v13, 0 }
 0x60e   : > { %v9362_v9 = vpack.c.bf16 %v4822_v18, %v4821_v8  ;;  %v7627_v18 = vld [vmem:[%s9619_s9 + $0x8] sm:$0xff]  }
 0x60f   : > { %v4793_v2 = vpop.f32.mrb[16].mxu0 }
 0x610   : > { %v4794_v46 = vadd.f32 %v9340_v5, %v4793_v2  ;;  %4898 = vrot.lane.b32.xlu1 %v9362_v9, %s7673_s26  ;;  %v7298_v32 = vpop.f32.mrb[17].mxu0  ;;  %v7628_v2 = vld [vmem:[%s9619_s9 + $0x10] sm:$0xff]  }
 0x611   : > { %v4796_v3 = vpop.f32.mrb[18].mxu0  ;;  %v7630_v32 = vld [vmem:[%s9619_s9 + $0x20] sm:$0xff]  }
 0x612   : > { %v4797_v29 = vadd.f32 %v9340_v5, %v4796_v3  ;;  %v7299_v15 = vpop.f32.mrb[19].mxu0  ;;  %v4823_v50 = vmax.f32 %v4794_v46, 0.0  ;;  %v7629_v46 = vld [vmem:[%s9619_s9 + $0x18] sm:$0xff]  }
 0x614   : > { %v4824_v27 = vmax.f32 %v4797_v29, 0.0  ;;  %v7634_v29 = vld [vmem:[%s9618_s8 + $0x10] sm:$0xff]  }
 0x616   : > { %v9368_v25 = vpack.c.bf16 %v4824_v27, %v4823_v50  ;;  %v7635_v50 = vld [vmem:[%s9618_s8 + $0x18] sm:$0xff]  }
 0x617   : > { %v4801_v47 = vpop.f32.mrb[20].mxu0 }
 0x618   : > { %v4802_v36 = vadd.f32 %v9340_v5, %v4801_v47  ;;  %4900 = vrot.lane.b32.xlu0 %v9368_v25, %s7673_s26  ;;  %v7302_v10 = vpop.f32.mrb[21].mxu0 }
 0x619   : > { %v4804_v12 = vpop.f32.mrb[22].mxu0  ;;  %v7637_v10 = vld [vmem:[%s9618_s8 + $0x28] ss:$0 sps:$4 sm:$0x11]  }
 0x61a   : > { %v4805_v20 = vadd.f32 %v9340_v5, %v4804_v12  ;;  %v7303_v23 = vpop.f32.mrb[23].mxu0  ;;  %v4825_v53 = vmax.f32 %v4802_v36, 0.0  ;;  %v7638_v12 = vld [vmem:[%s9621_s11] sm:$0xff]  }
 0x61c   : > { %v4826_v35 = vmax.f32 %v4805_v20, 0.0 }
 0x61e   : > { %v9377_v21 = vpack.c.bf16 %v4826_v35, %v4825_v53  ;;  %v7639_v35 = vld [vmem:[%s9621_s11 + $0x8] sm:$0xff]  }
 0x61f   : > { %v4809_v60 = vpop.f32.mrb[24].mxu0 }
 0x620   : > { %v4810_v16 = vadd.f32 %v9340_v5, %v4809_v60  ;;  %4902 = vrot.lane.b32.xlu1 %v9377_v21, %s7673_s26  ;;  %v7306_v58 = vpop.f32.mrb[25].mxu0  ;;  %v5233_v5 = vld [vmem:[%s9622_s12 + $0x8] sm:$0xff] }
 0x621   : > { %v4812_v62 = vpop.f32.mrb[26].mxu0 }
 0x622   : > { %v4827_v43 = vmax.f32 %v4810_v16, 0.0  ;;  %v7307_v4 = vpop.f32.mrb[27].mxu0 }
 0x624   : > { %v9383_v17 = vpack.c.bf16 %v4827_v43, %v4827_v43  ;;  %5300 = vrot.lane.b32.xlu1 %v9344_v63, %s7674_s29 }
 0x626   : > { %4904 = vrot.lane.b32.xlu0 %v9383_v17, %s7673_s26 }
 0x628   : > { %5304 = vrot.lane.b32.xlu1 %v9356_v14, %s7674_s29 }
 0x62a   : > { %5302 = vrot.lane.b32.xlu0 %v9350_v7, %s7674_s29 }
 0x62c   : > { %5308 = vrot.lane.b32.xlu1 %v9368_v25, %s7674_s29 }
 0x62e   : > { %5306 = vrot.lane.b32.xlu0 %v9362_v9, %s7674_s29 }
 0x630   : > { %5312 = vrot.lane.b32.xlu1 %v9383_v17, %s7674_s29 }
 0x632   : > { %5310 = vrot.lane.b32.xlu0 %v9377_v21, %s7674_s29 }
 0x634   : > { %5247 = vperm.xlu1 %7617, %v5233_v5  }
 0x636   : > { %5242 = vperm.xlu0 %7616, %v5232_v24  }
 0x638   : > { %5252 = vperm.xlu1 %7617, %v5234_v52  }
 0x63a   : > { %5257 = vperm.xlu0 %7616, %v5235_v61  }
 0x63c   : > { %5262 = vperm.xlu1 %7617, %v5236_v42  }
 0x63e   : > { %5267 = vperm.xlu0 %7616, %v5237_v41  }
 0x640   : > { %5272 = vperm.xlu1 %7617, %v5238_v26  }
 0x642   : > { %5277 = vperm.xlu0 %7616, %v5239_v34  }
 0x644   : > { %5160 = vperm.xlu1 %7617, %v5147_v51  }
 0x646   : > { %5165 = vperm.xlu0 %7616, %v5148_v59  }
 0x648   : > { %5170 = vperm.xlu1 %7617, %v5149_v57  }
 0x64a   : > { %5175 = vperm.xlu0 %7616, %v5150_v1  }
 0x64c   : > { %5180 = vperm.xlu1 %7617, %v5151_v6  }
 0x64e   : > { %5185 = vperm.xlu0 %7616, %v5152_v45  }
 0x650   : > { %5190 = vperm.xlu1 %7617, %v5153_v31  }
 0x652   : > { %5195 = vperm.xlu0 %7616, %v5154_v44  }
 0x654   : > { %5200 = vperm.xlu1 %7617, %v5155_v49  }
 0x656   : > { %5205 = vperm.xlu0 %7616, %v5156_v19  }
 0x658   : > { %5210 = vperm.xlu1 %7617, %v5157_v30  }
 0x65a   : > { %5416 = vperm.xlu0 %7616, %v5413_v38  }
 0x66a   : > { %v4893_v54 = vpop.permute.xlu0 %4892 }
 0x66b   : > { %7308 = vmatprep.subr.bf16.mxu1 %v4893_v54 }
 0x66c   : > { %7309 = vmatpush3.bf16.msra.mxu1 %v4893_v54 }
 0x672   : > { %v4895_v0 = vpop.permute.xlu0 %4894 }
 0x673   : > { %7310 = vmatprep.subr.bf16.mxu1 %v4895_v0 }
 0x674   : > { %7311 = vmatpush3.bf16.msra.mxu1 %v4895_v0 }
 0x67a   : > { %v4897_v28 = vpop.permute.xlu1 %4896 }
 0x67b   : > { %7312 = vmatprep.subr.bf16.mxu1 %v4897_v28 }
 0x67c   : > { %7313 = vmatpush3.bf16.msra.mxu1 %v4897_v28 }
 0x682   : > { %v4899_v39 = vpop.permute.xlu1 %4898 }
 0x683   : > { %7314 = vmatprep.subr.bf16.mxu1 %v4899_v39 }
 0x684   : > { %7315 = vmatpush3.bf16.msra.mxu1 %v4899_v39 }
 0x68a   : > { %v4901_v56 = vpop.permute.xlu0 %4900 }
 0x68b   : > { %7316 = vmatprep.subr.bf16.mxu1 %v4901_v56 }
 0x68c   : > { %7317 = vmatpush3.bf16.msra.mxu1 %v4901_v56 }
 0x692   : > { %v4903_v40 = vpop.permute.xlu1 %4902 }
 0x693   : > { %7318 = vmatprep.subr.bf16.mxu1 %v4903_v40 }
 0x694   : > { %7319 = vmatpush3.bf16.msra.mxu1 %v4903_v40 }
 0x696   : > { %v5301_v3 = vpop.permute.xlu1 %5300 }
 0x698   : > { %v4905_v48 = vpop.permute.xlu0 %4904 }
 0x699   : > { %v4936_v8 = vand.u32 %v4934_v33, %v4905_v48 }
 0x69a   : > { %v5305_v27 = vpop.permute.xlu1 %5304 }
 0x69b   : > { %7320 = vmatprep.subr.bf16.mxu1 %v4936_v8 }
 0x69c   : > { %7321 = vmatpush3.bf16.msra.mxu1 %v4936_v8  ;;  %v5303_v15 = vpop.permute.xlu0 %5302 }
 0x69d   : > { %7334 = vmatprep.subr.bf16.mxu1 %v9344_v63 }
 0x69e   : > { %v5309_v36 = vpop.permute.xlu1 %5308 }
 0x69f   : > { %7323 = vmatmul.mubr.msk.bf16.vlgmr.msra.gmra.mrb[0].mxu1 %vm4912_vm2, %v7627_v18 }
 0x6a0   : > { %7335 = vmatpush3.bf16.msra.mxu1 %v9344_v63  ;;  %7326 = vmatprep.mubr.msk.bf16.mxu1 %vm4912_vm2, %v7628_v2  ;;  %v7631_v63 = vld [vmem:[%s9619_s9 + $0x28] ss:$0 sps:$4 sm:$0x11]   ;;  %v5307_v47 = vpop.permute.xlu0 %5306 }
 0x6a1   : > { %7336 = vmatprep.subr.bf16.mxu1 %v9350_v7 }
 0x6a2   : > { %v5313_v20 = vpop.permute.xlu1 %5312 }
 0x6a3   : > { %v5333_v53 = vand.u32 %v5313_v20, %v4934_v33 }
 0x6a4   : > { %7337 = vmatpush3.bf16.msra.mxu1 %v9350_v7  ;;  %v7632_v7 = vld [vmem:[%s9618_s8] sm:$0xff]   ;;  %v5311_v23 = vpop.permute.xlu0 %5310 }
 0x6a5   : > { %7338 = vmatprep.subr.bf16.mxu1 %v9356_v14 }
 0x6a7   : > { %7327 = vmatmul.mubr.msk.bf16.gmra.mrb[4].mxu1 %vm4912_vm2, %v7629_v46 }
 0x6a8   : > { %7339 = vmatpush3.bf16.msra.mxu1 %v9356_v14  ;;  %7330 = vmatprep.mubr.msk.bf16.mxu1 %vm4912_vm2, %v7630_v32  ;;  %v5065_v14 = vand.u32 %v4934_v33, %v9383_v17 }
 0x6a9   : > { %7340 = vmatprep.subr.bf16.mxu1 %v9362_v9 }
 0x6ac   : > { %7341 = vmatpush3.bf16.msra.mxu1 %v9362_v9  ;;  %v7633_v9 = vld [vmem:[%s9618_s8 + $0x8] sm:$0xff]  }
 0x6ad   : > { %7342 = vmatprep.subr.bf16.mxu1 %v9368_v25 }
 0x6af   : > { %7331 = vmatmul.mubr.msk.bf16.gmra.mrb[8].mxu1 %vm4912_vm2, %v7631_v63 }
 0x6b0   : > { %7343 = vmatpush3.bf16.msra.mxu1 %v9368_v25  ;;  %7348 = vmatprep.mubr.msk.bf16.mxu1 %vm4912_vm2, %v7632_v7  ;;  %v7636_v25 = vld [vmem:[%s9618_s8 + $0x20] sm:$0xff]  }
 0x6b1   : > { %7344 = vmatprep.subr.bf16.mxu1 %v9377_v21 }
 0x6b3   : > { %v9528_v60 = vpop.permute.xlu1 %5247 }
 0x6b4   : > { %7345 = vmatpush3.bf16.msra.mxu1 %v9377_v21  ;;  %v7641_v21 = vld [vmem:[%s9621_s11 + $0x18] sm:$0xff]  }
 0x6b5   : > { %7346 = vmatprep.subr.bf16.mxu1 %v5065_v14  ;;  %v9530_v16 = vpop.permute.xlu0 %5242 }
 0x6b7   : > { %v5253_v58 = vpop.permute.xlu1 %5252 }
 0x6b8   : > { %7347 = vmatpush3.bf16.msra.mxu1 %v5065_v14 }
 0x6b9   : > { %7360 = vmatprep.subr.bf16.mxu1 %v5301_v3  ;;  %v9532_v62 = vpop.permute.xlu0 %5257 }
 0x6bb   : > { %7349 = vmatmul.mubr.msk.bf16.vlgmr.msra.gmra.mrb[0].mxu1 %vm4912_vm2, %v7633_v9  ;;  %v9534_v43 = vpop.permute.xlu1 %5262 }
 0x6bc   : > { %7361 = vmatpush3.bf16.msra.mxu1 %v5301_v3  ;;  %7352 = vmatprep.mubr.msk.bf16.mxu1 %vm4912_vm2, %v7634_v29 }
 0x6bd   : > { %7362 = vmatprep.subr.bf16.mxu1 %v5303_v15  ;;  %v9536_v4 = vpop.permute.xlu0 %5267 }
 0x6bf   : > { %v9538_v17 = vpop.permute.xlu1 %5272 }
 0x6c0   : > { %7363 = vmatpush3.bf16.msra.mxu1 %v5303_v15 }
 0x6c1   : > { %7364 = vmatprep.subr.bf16.mxu1 %v5305_v27  ;;  %v9540_v5 = vpop.permute.xlu0 %5277 }
 0x6c3   : > { %7353 = vmatmul.mubr.msk.bf16.gmra.mrb[4].mxu1 %vm4912_vm2, %v7635_v50  ;;  %v5161_v22 = vpop.permute.xlu1 %5160 }
 0x6c4   : > { %7365 = vmatpush3.bf16.msra.mxu1 %v5305_v27  ;;  %7356 = vmatprep.mubr.msk.bf16.mxu1 %vm4912_vm2, %v7636_v25 }
 0x6c5   : > { %7366 = vmatprep.subr.bf16.mxu1 %v5307_v47  ;;  %v5166_v42 = vpop.permute.xlu0 %5165 }
 0x6c7   : > { %v5171_v54 = vpop.permute.xlu1 %5170 }
 0x6c8   : > { %7367 = vmatpush3.bf16.msra.mxu1 %v5307_v47 }
 0x6c9   : > { %7368 = vmatprep.subr.bf16.mxu1 %v5309_v36  ;;  %v5176_v26 = vpop.permute.xlu0 %5175 }
 0x6cb   : > { %7357 = vmatmul.mubr.msk.bf16.gmra.mrb[12].mxu1 %vm4912_vm2, %v7637_v10  ;;  %v5181_v51 = vpop.permute.xlu1 %5180 }
 0x6cc   : > { %7369 = vmatpush3.bf16.msra.mxu1 %v5309_v36  ;;  %7374 = vmatprep.mubr.msk.bf16.mxu1 %vm4912_vm2, %v7638_v12 }
 0x6cd   : > { %7370 = vmatprep.subr.bf16.mxu1 %v5311_v23  ;;  %v5186_v6 = vpop.permute.xlu0 %5185 }
 0x6cf   : > { %v5191_v44 = vpop.permute.xlu1 %5190 }
 0x6d0   : > { %7371 = vmatpush3.bf16.msra.mxu1 %v5311_v23 }
 0x6d1   : > { %7372 = vmatprep.subr.bf16.mxu1 %v5333_v53  ;;  %v5196_v19 = vpop.permute.xlu0 %5195 }
 0x6d3   : > { %v5201_v40 = vpop.permute.xlu1 %5200 }
 0x6d4   : > { %7373 = vmatpush3.bf16.msra.mxu1 %v5333_v53 }
 0x6d5   : > { %v5206_v14 = vpop.permute.xlu0 %5205 }
 0x6d7   : > { %7375 = vmatmul.mubr.msk.bf16.vlgmr.msra.gmra.mrb[16].mxu1 %vm4912_vm2, %v7639_v35  ;;  %v5211_v8 = vpop.permute.xlu1 %5210 }
 0x6d8   : > { %7378 = vmatprep.mubr.msk.bf16.mxu1 %vm4912_vm2, %v7640_v55 }
 0x6df   : > { %7379 = vmatmul.mubr.msk.bf16.gmra.mrb[20].mxu1 %vm4912_vm2, %v7641_v21 }
 0x782   : > { %v7332_v24 = vpop.f32.mrb[8].mxu1 }
 0x783   : > { %v5004_v52 = vpop.f32.mrb[9].mxu1 }
 0x784   : > { %v7333_v61 = vpop.f32.mrb[10].mxu1 }
 0x785   : > { %v5007_v41 = vpop.f32.mrb[11].mxu1 }
 0x78e   : > { %v7350_v34 = vpop.f32.mrb[0].mxu1 }
 0x78f   : > { %v5215_v59 = vadd.f32 %v7350_v34, %v5171_v54  ;;  %v5101_v0 = vpop.f32.mrb[1].mxu1 }
 0x790   : > { %v5213_v57 = vadd.f32 %v5161_v22, %v5101_v0  ;;  %v7351_v1 = vpop.f32.mrb[2].mxu1 }
 0x791   : > { %5466 = vst.msk [vmem:[%s9625_s15 + $0x10] sm:$0xff] %vm5463_vm4, %v5215_v59  ;;  %v5216_v45 = vadd.f32 %v7351_v1, %v5176_v26  ;;  %v5104_v28 = vpop.f32.mrb[3].mxu1 }
 0x792   : > { %5464 = vst.msk [vmem:[%s9625_s15] sm:$0xff] %vm5463_vm4, %v5213_v57  ;;  %v5214_v31 = vadd.f32 %v5166_v42, %v5104_v28 }
 0x793   : > { %5467 = vst.msk [vmem:[%s9625_s15 + $0x18] sm:$0xff] %vm5463_vm4, %v5216_v45 }
 0x794   : > { %5465 = vst.msk [vmem:[%s9625_s15 + $0x8] sm:$0xff] %vm5463_vm4, %v5214_v31 }
 0x796   : > { %v7354_v49 = vpop.f32.mrb[4].mxu1 }
 0x797   : > { %v5219_v39 = vadd.f32 %v7354_v49, %v5191_v44  ;;  %v5117_v30 = vpop.f32.mrb[5].mxu1 }
 0x798   : > { %v5217_v38 = vadd.f32 %v5181_v51, %v5117_v30  ;;  %v7355_v56 = vpop.f32.mrb[6].mxu1 }
 0x799   : > { %5470 = vst.msk [vmem:[%s9625_s15 + $0x30] sm:$0xff] %vm5463_vm4, %v5219_v39  ;;  %v5220_v37 = vadd.f32 %v7355_v56, %v5196_v19  ;;  %v5120_v13 = vpop.f32.mrb[7].mxu1 }
 0x79a   : > { %5468 = vst.msk [vmem:[%s9625_s15 + $0x20] sm:$0xff] %vm5463_vm4, %v5217_v38  ;;  %v5218_v33 = vadd.f32 %v5186_v6, %v5120_v13 }
 0x79b   : > { %5471 = vst.msk [vmem:[%s9625_s15 + $0x38] sm:$0xff] %vm5463_vm4, %v5220_v37 }
 0x79c   : > { %5469 = vst.msk [vmem:[%s9625_s15 + $0x28] sm:$0xff] %vm5463_vm4, %v5218_v33 }
 0x79e   : > { %v7358_v48 = vpop.f32.mrb[12].mxu1 }
 0x79f   : > { %v5142_v18 = vadd.f32 %v7358_v48, %v7332_v24  ;;  %v5133_v2 = vpop.f32.mrb[13].mxu1 }
 0x7a0   : > { %v5134_v46 = vadd.f32 %v5133_v2, %v5004_v52  ;;  %v7359_v32 = vpop.f32.mrb[14].mxu1 }
 0x7a1   : > { %v5223_v63 = vadd.f32 %v5211_v8, %v5142_v18  ;;  %v5136_v7 = vpop.f32.mrb[15].mxu1 }
 0x7a2   : > { %v5221_v9 = vadd.f32 %v5201_v40, %v5134_v46  ;;  %v5137_v3 = vadd.f32 %v5136_v7, %v5007_v41 }
 0x7a3   : > { %5475 = vst.msk [vmem:[%s9625_s15 + $0x50] sm:$0x3] %vm5474_vm5, %v5223_v63 }
 0x7a4   : > { %5472 = vst.msk [vmem:[%s9625_s15 + $0x40] sm:$0xff] %vm5463_vm4, %v5221_v9  ;;  %v5222_v29 = vadd.f32 %v5206_v14, %v5137_v3 }
 0x7a6   : > { %5473 = vst.msk [vmem:[%s9625_s15 + $0x48] sm:$0xff] %vm5463_vm4, %v5222_v29 }
 0x7aa   : > { %v7376_v15 = vpop.f32.mrb[16].mxu1 }
 0x7ab   : > { %v5378_v50 = vadd.f32 %v7376_v15, %v5253_v58  ;;  %v5369_v27 = vpop.f32.mrb[17].mxu1 }
 0x7ac   : > { %v5370_v25 = vadd.f32 %v5369_v27, %v9530_v16  ;;  %v7377_v47 = vpop.f32.mrb[18].mxu1 }
 0x7ad   : > { %v5381_v36 = vadd.f32 %v7377_v47, %v9532_v62  ;;  %v5372_v10 = vpop.f32.mrb[19].mxu1  ;;  %v5402_v20 = vmax.f32 %v5378_v50, 0.0 }
 0x7ae   : > { %v5373_v12 = vadd.f32 %v5372_v10, %v9528_v60  ;;  %v5400_v53 = vmax.f32 %v5370_v25, 0.0 }
 0x7af   : > { %v5403_v23 = vmax.f32 %v5381_v36, 0.0 }
 0x7b0   : > { %v5401_v35 = vmax.f32 %v5373_v12, 0.0 }
 0x7b1   : > { %v5410_v55 = vpack.c.bf16 %v5403_v23, %v5402_v20 }
 0x7b2   : > { %v5409_v21 = vpack.c.bf16 %v5401_v35, %v5400_v53  ;;  %v7380_v24 = vpop.f32.mrb[20].mxu1 }
 0x7b3   : > { %v5394_v22 = vadd.f32 %v7380_v24, %v9538_v17  ;;  %v5385_v52 = vpop.f32.mrb[21].mxu1 }
 0x7b4   : > { %v5386_v58 = vadd.f32 %v5385_v52, %v9534_v43  ;;  %v7381_v61 = vpop.f32.mrb[22].mxu1  ;;  %7383 = vmatpush3.bf16.msra.mxu0 %v5409_v21  ;;  %v5408_v43 = vld [vmem:[%s9623_s13] sm:$0x3] }
 0x7b5   : > { %v5397_v16 = vadd.f32 %v7381_v61, %v9540_v5  ;;  %v5388_v62 = vpop.f32.mrb[23].mxu1  ;;  %7384 = vmatprep.subr.bf16.mxu0 %v7671_v11  ;;  %v5406_v42 = vmax.f32 %v5394_v22, 0.0 }
 0x7b6   : > { %v5389_v60 = vadd.f32 %v5388_v62, %v9536_v4  ;;  %v5404_v54 = vmax.f32 %v5386_v58, 0.0  ;;  %v5417_v4 = vpop.permute.xlu0 %5416 }
 0x7b7   : > { %v5407_v41 = vmax.f32 %v5397_v16, 0.0 }
 0x7b8   : > { %v5405_v26 = vmax.f32 %v5389_v60, 0.0  ;;  %7385 = vmatpush3.bf16.msra.mxu0 %v5410_v55 }
 0x7b9   : > { %v5412_v34 = vpack.c.bf16 %v5407_v41, %v5406_v42  ;;  %7386 = vmatprep.subr.bf16.mxu0 %v7671_v11 }
 0x7ba   : > { %v5411_v17 = vpack.c.bf16 %v5405_v26, %v5404_v54 }
 0x7bc   : > { %7387 = vmatpush3.bf16.msra.mxu0 %v5411_v17 }
 0x7bd   : > { %7388 = vmatprep.subr.bf16.mxu0 %v7671_v11 }
 0x7c0   : > { %7389 = vmatpush3.bf16.msra.mxu0 %v5412_v34 }
 0x7c3   : > { %7391 = vmatmul.mubr.msk.bf16.vlgmr.msra.gmra.mrb[28].mxu0 %vm5419_vm6, %v5408_v43 }
 0x896   : > { %v5457_v5 = vpop.f32.mrb[28].mxu0 }
 0x897   : > { %v5458_v51 = vadd.f32 %v5457_v5, %v5417_v4  ;;  %v7392_v59 = vpop.f32.mrb[29].mxu0 }
 0x898   : > { %v5460_v0 = vpop.f32.mrb[30].mxu0 }
 0x899   : > { %5477 = vst.msk [vmem:[%s9626_s16] sm:$0x7] %vm5476_vm7, %v5458_v51  ;;  %v7393_v57 = vpop.f32.mrb[31].mxu0 }
 0x89a PF: > { %s27_s23 = sadd.s32 1, %s7664_s23   ;;  %s9635_s21 = sld [smem:[#allocation4_spill]] }
 0x89b   : > { %p24_p7 = scmp.ge.s32.totalorder %s27_s23, 8   ;;  %s9636_s22 = sld [smem:[#allocation5_spill]] }
 0x89d   :  { %26 = sbr.rel (!%p24_p7) target bundleno = 2 (0x2), region = 153 }

</bundles_post_ra>
